<compile_context>
chip_gen: v6e
topology: v6e:2x2x1
jax: 0.10.0
libtpu: 0.0.40
codegen_flags: <defaults>
</compile_context>

<pallas_src>
import numpy as np
import jax
import jax.numpy as jnp
from jax.experimental import pallas as pl
from jax.experimental.pallas import tpu as pltpu

# ---- configuration (mirrors the PyTorch globals / constructor choices) ----
N_HEADS = 2
HIDDEN_D = 8
N_PATCHES = 7
OUT_D = 10
N_BLOCKS = 2
MLP_RATIO = 4
CHW = (1, 14, 14)          # (c, h, w); h, w divisible by n_patches
BATCH = 2

D_HEAD = HIDDEN_D // N_HEADS
PATCH = CHW[1] // N_PATCHES                 # patch side = 2
INPUT_D = CHW[0] * PATCH * PATCH            # flattened patch dim = 4
SEQ = N_PATCHES * N_PATCHES + 1             # 49 patches + 1 class token = 50
MLP_D = MLP_RATIO * HIDDEN_D                # 32
LN_EPS = 1e-5

# padded / aligned sizes
SEQ_P = 56                                  # SEQ padded to multiple of 8
INPUT_D_P = 8                               # INPUT_D padded to 8
QKV_D = 3 * HIDDEN_D                        # merged QKV width = 24
OUT_PAD = 128                               # lane-dense classifier output
OUT_SUB = 8                                 # sublane-padded output rows / tile
NEG_BIG = np.float32(-1e30)

BATCH_TILE = max(1, BATCH // 2)             # >=2 grid steps -> v7x megacore
ROWS = BATCH_TILE * SEQ_P                   # folded batch*seq rows per tile

# ---------------- parameter-slab layout (all offsets multiple of 8) ---------
SLAB_W = 128
R_CLSPOS = 0                                # SEQ_P rows (cls fixup + pos, padded)
R_WM = R_CLSPOS + SEQ_P                     # INPUT_D_P rows
R_BM = R_WM + INPUT_D_P                     # 8-row slot, row 0 = bm
R_WH = R_BM + 8                             # HIDDEN_D rows (classifier W, lane-padded)
R_BH = R_WH + 8                             # 8-row slot, row 0 = bh (padded lanes = -1e30)
R_BLOCKS = R_BH + 8
# per transformer-block offsets
O_LN = 0                                    # rows 0..3: ln1w, ln1b, ln2w, ln2b
O_WQKV = 8                                  # HIDDEN_D rows, lanes 0:24 (Q|K|V block-diag)
O_BQKV = 16                                 # 8-row slot, row 0
O_W1 = 24                                   # HIDDEN_D rows, lanes 0:MLP_D
O_B1 = 32                                   # 8-row slot
O_W2 = 40                                   # MLP_D rows, lanes 0:HIDDEN_D
O_B2 = 72                                   # 8-row slot
BLOCK_ROWS = 80
SLAB_ROWS = R_BLOCKS + N_BLOCKS * BLOCK_ROWS    # 248 rows x 128 lanes (~127 KiB)


# --------------------------- host-side glue ---------------------------------

def get_positional_embeddings_np(seq_len, d):
    res = np.ones((seq_len, d), dtype=np.float32)
    for i in range(seq_len):
        for j in range(d):
            if j % 2 == 0:
                res[i, j] = np.sin(i / 10000 ** (j / d))
            else:
                res[i, j] = np.cos(i / 10000 ** ((j - 1) / d))
    return res


def patchify_jax(images, n_patches):
    # exact equivalent of the PyTorch patchify loop (flatten order: c, ph, pw)
    n, c, h, w = images.shape
    ps = h // n_patches
    x = images.reshape(n, c, n_patches, ps, n_patches, ps)
    x = x.transpose(0, 2, 4, 1, 3, 5)
    return x.reshape(n, n_patches * n_patches, c * ps * ps).astype(jnp.float32)


def init_params(key):
    keys = iter(jax.random.split(key, 24))
    nrm = lambda k, shape, s=0.3: (s * jax.random.normal(k, shape)).astype(jnp.float32)

    p = {}
    p['wm'] = nrm(next(keys), (HIDDEN_D, INPUT_D))
    p['bm'] = nrm(next(keys), (HIDDEN_D,), 0.1)
    p['cls'] = jax.random.uniform(next(keys), (1, HIDDEN_D), jnp.float32)
    p['pos'] = jnp.asarray(get_positional_embeddings_np(SEQ, HIDDEN_D))
    p['ln1w'] = jnp.ones((N_BLOCKS, HIDDEN_D), jnp.float32)
    p['ln1b'] = jnp.zeros((N_BLOCKS, HIDDEN_D), jnp.float32)
    p['ln2w'] = jnp.ones((N_BLOCKS, HIDDEN_D), jnp.float32)
    p['ln2b'] = jnp.zeros((N_BLOCKS, HIDDEN_D), jnp.float32)
    p['wq'] = nrm(next(keys), (N_BLOCKS, N_HEADS, D_HEAD, D_HEAD))
    p['bq'] = nrm(next(keys), (N_BLOCKS, N_HEADS, D_HEAD), 0.1)
    p['wk'] = nrm(next(keys), (N_BLOCKS, N_HEADS, D_HEAD, D_HEAD))
    p['bk'] = nrm(next(keys), (N_BLOCKS, N_HEADS, D_HEAD), 0.1)
    p['wv'] = nrm(next(keys), (N_BLOCKS, N_HEADS, D_HEAD, D_HEAD))
    p['bv'] = nrm(next(keys), (N_BLOCKS, N_HEADS, D_HEAD), 0.1)
    p['w1'] = nrm(next(keys), (N_BLOCKS, MLP_D, HIDDEN_D))
    p['b1'] = nrm(next(keys), (N_BLOCKS, MLP_D), 0.1)
    p['w2'] = nrm(next(keys), (N_BLOCKS, HIDDEN_D, MLP_D))
    p['b2'] = nrm(next(keys), (N_BLOCKS, HIDDEN_D), 0.1)
    p['wh'] = nrm(next(keys), (OUT_D, HIDDEN_D))
    p['bh'] = nrm(next(keys), (OUT_D,), 0.1)
    p['slab'] = build_slab(p)
    return p


def build_slab(p):
    """Pack every parameter into one tile-aligned (SLAB_ROWS, 128) f32 slab.

    Per-head Q/K/V Linears become one block-diagonal (HIDDEN, 3*HIDDEN) matrix
    (1/sqrt(d_head) folded into Wq/bq).  The class-token prepend is an additive
    fix-up on row 0 of the cls+pos slab (row 0 of the patch tensor is zeros, so
    the linear mapper emits bm there; adding (cls - bm) + pos gives cls + pos).
    Padded classifier lanes get bias -1e30 so their softmax prob is exactly 0."""
    scale = np.float32(1.0 / np.sqrt(D_HEAD))
    wq = np.asarray(p['wq']); wk = np.asarray(p['wk']); wv = np.asarray(p['wv'])
    bq = np.asarray(p['bq']); bk = np.asarray(p['bk']); bv = np.asarray(p['bv'])

    slab = np.zeros((SLAB_ROWS, SLAB_W), np.float32)

    clspos = np.zeros((SEQ_P, HIDDEN_D), np.float32)
    clspos[:SEQ] = np.asarray(p['pos'])
    clspos[0] += np.asarray(p['cls'])[0] - np.asarray(p['bm'])
    slab[R_CLSPOS:R_CLSPOS + SEQ_P, :HIDDEN_D] = clspos

    slab[R_WM:R_WM + INPUT_D, :HIDDEN_D] = np.asarray(p['wm']).T  # padded rows stay 0
    slab[R_BM, :HIDDEN_D] = np.asarray(p['bm'])
    slab[R_WH:R_WH + HIDDEN_D, :OUT_D] = np.asarray(p['wh']).T
    slab[R_BH, :OUT_D] = np.asarray(p['bh'])
    slab[R_BH, OUT_D:] = NEG_BIG                                  # padded classes -> prob 0

    for blk in range(N_BLOCKS):
        base = R_BLOCKS + blk * BLOCK_ROWS
        slab[base + O_LN + 0, :HIDDEN_D] = np.asarray(p['ln1w'])[blk]
        slab[base + O_LN + 1, :HIDDEN_D] = np.asarray(p['ln1b'])[blk]
        slab[base + O_LN + 2, :HIDDEN_D] = np.asarray(p['ln2w'])[blk]
        slab[base + O_LN + 3, :HIDDEN_D] = np.asarray(p['ln2b'])[blk]
        wqkv = slab[base + O_WQKV:base + O_WQKV + HIDDEN_D, :QKV_D]   # numpy view
        for h in range(N_HEADS):
            r = slice(h * D_HEAD, (h + 1) * D_HEAD)
            wqkv[r, h * D_HEAD:(h + 1) * D_HEAD] = wq[blk, h].T * scale
            wqkv[r, HIDDEN_D + h * D_HEAD:HIDDEN_D + (h + 1) * D_HEAD] = wk[blk, h].T
            wqkv[r, 2 * HIDDEN_D + h * D_HEAD:2 * HIDDEN_D + (h + 1) * D_HEAD] = wv[blk, h].T
            slab[base + O_BQKV, h * D_HEAD:(h + 1) * D_HEAD] = bq[blk, h] * scale
            slab[base + O_BQKV, HIDDEN_D + h * D_HEAD:HIDDEN_D + (h + 1) * D_HEAD] = bk[blk, h]
            slab[base + O_BQKV, 2 * HIDDEN_D + h * D_HEAD:2 * HIDDEN_D + (h + 1) * D_HEAD] = bv[blk, h]
        slab[base + O_W1:base + O_W1 + HIDDEN_D, :MLP_D] = np.asarray(p['w1'])[blk].T
        slab[base + O_B1, :MLP_D] = np.asarray(p['b1'])[blk]
        slab[base + O_W2:base + O_W2 + MLP_D, :HIDDEN_D] = np.asarray(p['w2'])[blk].T
        slab[base + O_B2, :HIDDEN_D] = np.asarray(p['b2'])[blk]
    return jnp.asarray(slab)


# --------------------------- in-kernel math ----------------------------------

def _layernorm(x, w, b):
    mu = jnp.mean(x, axis=-1, keepdims=True)
    var = jnp.mean(jnp.square(x - mu), axis=-1, keepdims=True)
    return (x - mu) * jax.lax.rsqrt(var + LN_EPS) * w + b


def _softmax(x, approx):
    m = jnp.max(x, axis=-1, keepdims=True)
    e = jnp.exp(x - m)
    s = jnp.sum(e, axis=-1, keepdims=True)
    if approx:
        return e * pl.reciprocal(s, approx=True)   # EUP slot instead of vdiv
    return e / s


def _erf(x):
    # Abramowitz & Stegun 7.1.26 rational approximation, |err| < 1.5e-7.
    a1, a2, a3, a4, a5 = 0.254829592, -0.284496736, 1.421413741, -1.453152027, 1.061405429
    pp = 0.3275911
    sgn = jnp.where(x >= 0.0, 1.0, -1.0)
    ax = jnp.abs(x)
    t = pl.reciprocal(1.0 + pp * ax, approx=True)      # EUP instead of VPU divide
    poly = ((((a5 * t + a4) * t + a3) * t + a2) * t + a1) * t
    return sgn * (1.0 - poly * jnp.exp(-ax * ax))


def _gelu(x):
    # exact (erf-based) GELU as in torch.nn.GELU()
    return 0.5 * x * (1.0 + _erf(x * np.float32(1.0 / np.sqrt(2.0))))


# --------------------------- Pallas kernel -----------------------------------

def vit_kernel(patches_ref, params_ref, out_ref):
    def prow(row, nrows, ncols):
        return params_ref[row:row + nrows, 0:ncols]

    # ---- hoisted parameter loads (tile-aligned row offsets) ----
    wm = prow(R_WM, INPUT_D_P, HIDDEN_D)                    # (8, 8), padded rows zero
    bm = prow(R_BM, 1, HIDDEN_D)                            # (1, 8)
    clspos = prow(R_CLSPOS, SEQ_P, HIDDEN_D)                # (56, 8)
    wh = params_ref[R_WH:R_WH + HIDDEN_D, :]                # (8, 128), padded cols zero
    bh = params_ref[R_BH:R_BH + 1, :]                       # (1, 128), padded lanes -1e30

    if BATCH_TILE > 1:
        clspos = jnp.concatenate([clspos] * BATCH_TILE, axis=0)

    # per-head lane masks and padded-key mask, built once
    lane_h = jax.lax.broadcasted_iota(jnp.int32, (1, HIDDEN_D), 1)
    head_masks = [jnp.logical_and(lane_h >= h * D_HEAD, lane_h < (h + 1) * D_HEAD)
                  for h in range(N_HEADS)]
    key_lane = jax.lax.broadcasted_iota(jnp.int32, (1, SEQ_P), 1)
    key_valid = key_lane < SEQ

    # ---- patch embed on the whole folded (B*SEQ_P, INPUT_D_P) slab ----
    # row 0 of each image's slice is zero -> emits bm there; clspos row 0 holds
    # (cls - bm + pos[0]) so the class token comes out exactly right.
    x = jnp.dot(patches_ref[...], wm, preferred_element_type=jnp.float32) + bm + clspos

    for blk in range(N_BLOCKS):                             # static unroll
        base = R_BLOCKS + blk * BLOCK_ROWS
        ln1w = prow(base + O_LN + 0, 1, HIDDEN_D)
        ln1b = prow(base + O_LN + 1, 1, HIDDEN_D)
        ln2w = prow(base + O_LN + 2, 1, HIDDEN_D)
        ln2b = prow(base + O_LN + 3, 1, HIDDEN_D)
        wqkv = prow(base + O_WQKV, HIDDEN_D, QKV_D)         # (8, 24) block-diag, scale folded
        bqkv = prow(base + O_BQKV, 1, QKV_D)
        w1 = prow(base + O_W1, HIDDEN_D, MLP_D)
        b1 = prow(base + O_B1, 1, MLP_D)
        w2 = prow(base + O_W2, MLP_D, HIDDEN_D)
        b2 = prow(base + O_B2, 1, HIDDEN_D)

        # LayerNorm + single merged QKV matmul on the whole folded slab
        xn = _layernorm(x, ln1w, ln1b)
        qkv = jnp.dot(xn, wqkv, preferred_element_type=jnp.float32) + bqkv
        q = qkv[:, 0:HIDDEN_D]
        k = qkv[:, HIDDEN_D:2 * HIDDEN_D]
        v = qkv[:, 2 * HIDDEN_D:3 * HIDDEN_D]

        # attention: per image, both heads stacked along sublanes
        attn_parts = []
        for b in range(BATCH_TILE):                         # static unroll
            lo = b * SEQ_P
            qb = q[lo:lo + SEQ_P, :]
            kb = k[lo:lo + SEQ_P, :]
            vb = v[lo:lo + SEQ_P, :]
            # head-h rows keep only head-h columns of q -> q_stack @ kb.T gives
            # exactly the per-head scores stacked along sublanes (2*SEQ_P, SEQ_P)
            q_stack = jnp.concatenate(
                [jnp.where(head_masks[h], qb, 0.0) for h in range(N_HEADS)], axis=0)
            scores = jax.lax.dot_general(
                q_stack, kb, dimension_numbers=(((1,), (1,)), ((), ())),
                preferred_element_type=jnp.float32)
            scores = jnp.where(key_valid, scores, NEG_BIG)   # mask padded keys
            att = _softmax(scores, approx=True)              # one pass for both heads
            o_stack = jnp.dot(att, vb, preferred_element_type=jnp.float32)  # (2*SEQ_P, 8)
            ob = None
            for h in range(N_HEADS):
                part = jnp.where(head_masks[h],
                                 o_stack[h * SEQ_P:(h + 1) * SEQ_P, :], 0.0)
                ob = part if ob is None else ob + part
            attn_parts.append(ob)
        attn = attn_parts[0] if BATCH_TILE == 1 else jnp.concatenate(attn_parts, axis=0)
        x = x + attn

        # MLP on the whole folded slab
        xn2 = _layernorm(x, ln2w, ln2b)
        h1 = _gelu(jnp.dot(xn2, w1, preferred_element_type=jnp.float32) + b1)
        x = x + jnp.dot(h1, w2, preferred_element_type=jnp.float32) + b2

    # ---- batched classifier head, lane-dense (8, 128) store ----
    cls_rows = [x[b * SEQ_P:b * SEQ_P + 1, :] for b in range(BATCH_TILE)]
    while len(cls_rows) < OUT_SUB:                          # sublane padding (discarded)
        cls_rows.append(cls_rows[0])
    cls = jnp.concatenate(cls_rows, axis=0)                 # (8, HIDDEN)
    logits = jnp.dot(cls, wh, preferred_element_type=jnp.float32) + bh   # (8, 128)
    out_ref[...] = _softmax(logits, approx=False)           # padded lanes -> exactly 0


def vit_forward_pallas(images, params):
    n = images.shape[0]
    assert n % BATCH_TILE == 0
    num_tiles = n // BATCH_TILE

    patches = patchify_jax(images, N_PATCHES)               # (n, 49, 4)
    buf = jnp.zeros((n, SEQ_P, INPUT_D_P), jnp.float32)     # row 0 & pad rows stay zero
    buf = buf.at[:, 1:1 + N_PATCHES * N_PATCHES, :INPUT_D].set(patches)
    patches_flat = buf.reshape(n * SEQ_P, INPUT_D_P)        # batch folded into sublanes

    out = pl.pallas_call(
        vit_kernel,
        out_shape=jax.ShapeDtypeStruct((num_tiles * OUT_SUB, OUT_PAD), jnp.float32),
        grid_spec=pltpu.PrefetchScalarGridSpec(
            num_scalar_prefetch=0,
            grid=(num_tiles,),                               # >=2 steps: v7x megacore
            in_specs=[
                pl.BlockSpec((ROWS, INPUT_D_P), lambda b: (b, 0)),
                pl.BlockSpec((SLAB_ROWS, SLAB_W), lambda b: (0, 0)),
            ],
            out_specs=pl.BlockSpec((OUT_SUB, OUT_PAD), lambda b: (b, 0)),
        ),
        compiler_params=pltpu.CompilerParams(
            dimension_semantics=("parallel",),
            vmem_limit_bytes=32 * 1024 * 1024),
    )(patches_flat, params['slab'])

    out = out.reshape(num_tiles, OUT_SUB, OUT_PAD)[:, :BATCH_TILE, :OUT_D]
    return out.reshape(n, OUT_D)


# --------------------------- pure-JAX reference ------------------------------

def _layernorm_ref(x, w, b):
    mu = jnp.mean(x, axis=-1, keepdims=True)
    var = jnp.mean(jnp.square(x - mu), axis=-1, keepdims=True)
    return (x - mu) / jnp.sqrt(var + LN_EPS) * w + b


def vit_reference(images, p):
    n = images.shape[0]
    patches = patchify_jax(images, N_PATCHES)
    tokens = jnp.einsum('npd,hd->nph', patches, p['wm']) + p['bm']
    cls = jnp.broadcast_to(p['cls'][None], (n, 1, HIDDEN_D))
    x = jnp.concatenate([cls, tokens], axis=1) + p['pos'][None]
    for blk in range(N_BLOCKS):
        xn = _layernorm_ref(x, p['ln1w'][blk], p['ln1b'][blk])
        heads = []
        for h in range(N_HEADS):
            seq = xn[..., h * D_HEAD:(h + 1) * D_HEAD]
            q = jnp.einsum('nsd,ed->nse', seq, p['wq'][blk, h]) + p['bq'][blk, h]
            k = jnp.einsum('nsd,ed->nse', seq, p['wk'][blk, h]) + p['bk'][blk, h]
            v = jnp.einsum('nsd,ed->nse', seq, p['wv'][blk, h]) + p['bv'][blk, h]
            att = jax.nn.softmax(jnp.einsum('nqe,nke->nqk', q, k) / (D_HEAD ** 0.5), axis=-1)
            heads.append(jnp.einsum('nqk,nke->nqe', att, v))
        x = x + jnp.concatenate(heads, axis=-1)
        xn2 = _layernorm_ref(x, p['ln2w'][blk], p['ln2b'][blk])
        h1 = jax.nn.gelu(jnp.einsum('nsd,md->nsm', xn2, p['w1'][blk]) + p['b1'][blk],
                         approximate=False)
        x = x + jnp.einsum('nsm,dm->nsd', h1, p['w2'][blk]) + p['b2'][blk]
    cls_out = x[:, 0]
    return jax.nn.softmax(cls_out @ p['wh'].T + p['bh'], axis=-1)


# --------------------------------- main ---------------------------------------

if __name__ == "__main__":
    key = jax.random.PRNGKey(0)
    pkey, xkey = jax.random.split(key)
    params = init_params(pkey)
    images = jax.random.normal(xkey, (BATCH,) + CHW, dtype=jnp.float32)  # NCHW

    out = vit_forward_pallas(images, params)
    out = jax.block_until_ready(out)

    ref = vit_reference(images, params)
    assert out.shape == (BATCH, OUT_D)
    np.testing.assert_allclose(np.asarray(out), np.asarray(ref), atol=2e-3, rtol=0)
    np.testing.assert_allclose(np.asarray(out).sum(axis=-1), np.ones(BATCH), atol=1e-4)
    print("KERNEL_OK")
</pallas_src>

<mosaic_0001>
module attributes {stable_mosaic.version = 11 : i64} {
  func.func @vit_kernel(%arg0: i32, %arg1: memref<56x8xf32, #tpu.memory_space<vmem>>, %arg2: memref<248x128xf32, #tpu.memory_space<vmem>>, %arg3: memref<8x128xf32, #tpu.memory_space<vmem>>) attributes {dimension_semantics = [#tpu.dimension_semantics<parallel>], iteration_bounds = array<i64: 2>, scalar_prefetch = 0 : i64, scratch_operands = 0 : i64, tpu.core_type = #tpu.core_type<tc>, window_params = [{transform_indices = @transform_0, window_bounds = array<i64: 56, 8>}, {pipeline_mode = #tpu.pipeline_mode<synchronous>, transform_indices = @transform_1, window_bounds = array<i64: 248, 128>}, {transform_indices = @transform_2, window_bounds = array<i64: 8, 128>}]} {
    %c56 = arith.constant 56 : index
    %c0 = arith.constant 0 : index
    %0 = vector.load %arg2[%c56, %c0] : memref<248x128xf32, #tpu.memory_space<vmem>>, vector<8x8xf32>
    %c64 = arith.constant 64 : index
    %c0_0 = arith.constant 0 : index
    %1 = vector.load %arg2[%c64, %c0_0] : memref<248x128xf32, #tpu.memory_space<vmem>>, vector<1x8xf32>
    %c0_1 = arith.constant 0 : index
    %c0_2 = arith.constant 0 : index
    %2 = vector.load %arg2[%c0_1, %c0_2] : memref<248x128xf32, #tpu.memory_space<vmem>>, vector<56x8xf32>
    %c72 = arith.constant 72 : index
    %c0_3 = arith.constant 0 : index
    %3 = vector.load %arg2[%c72, %c0_3] : memref<248x128xf32, #tpu.memory_space<vmem>>, vector<8x128xf32>
    %c80 = arith.constant 80 : index
    %c0_4 = arith.constant 0 : index
    %4 = vector.load %arg2[%c80, %c0_4] : memref<248x128xf32, #tpu.memory_space<vmem>>, vector<1x128xf32>
    %5 = tpu.iota {dimensions = array<i32: 1>} : vector<1x8xi32>
    %c0_i32 = arith.constant 0 : i32
    %6 = vector.broadcast %c0_i32 : i32 to vector<1x8xi32>
    %7 = arith.cmpi sge, %5, %6 : vector<1x8xi32>
    %c4_i32 = arith.constant 4 : i32
    %8 = vector.broadcast %c4_i32 : i32 to vector<1x8xi32>
    %9 = arith.cmpi slt, %5, %8 : vector<1x8xi32>
    %10 = arith.andi %7, %9 : vector<1x8xi1>
    %c4_i32_5 = arith.constant 4 : i32
    %11 = vector.broadcast %c4_i32_5 : i32 to vector<1x8xi32>
    %12 = arith.cmpi sge, %5, %11 : vector<1x8xi32>
    %c8_i32 = arith.constant 8 : i32
    %13 = vector.broadcast %c8_i32 : i32 to vector<1x8xi32>
    %14 = arith.cmpi slt, %5, %13 : vector<1x8xi32>
    %15 = arith.andi %12, %14 : vector<1x8xi1>
    %16 = tpu.iota {dimensions = array<i32: 1>} : vector<1x56xi32>
    %c50_i32 = arith.constant 50 : i32
    %17 = vector.broadcast %c50_i32 : i32 to vector<1x56xi32>
    %18 = arith.cmpi slt, %16, %17 : vector<1x56xi32>
    %c0_6 = arith.constant 0 : index
    %c0_7 = arith.constant 0 : index
    %19 = vector.load %arg1[%c0_6, %c0_7] : memref<56x8xf32, #tpu.memory_space<vmem>>, vector<56x8xf32>
    %cst = arith.constant dense<0.000000e+00> : vector<56x8xf32>
    %20 = tpu.matmul %19, %0, %cst {dimension_numbers = #tpu.dot_dimension_numbers<[1], [0], [0], [1], [0, 0, 1, 1], [], []>} : vector<56x8xf32>, vector<8x8xf32>, vector<56x8xf32> -> vector<56x8xf32>
    %21 = vector.broadcast %1 : vector<1x8xf32> to vector<56x8xf32>
    %22 = arith.addf %20, %21 : vector<56x8xf32>
    %23 = arith.addf %22, %2 : vector<56x8xf32>
    %c88 = arith.constant 88 : index
    %c0_8 = arith.constant 0 : index
    %24 = vector.load %arg2[%c88, %c0_8] : memref<248x128xf32, #tpu.memory_space<vmem>>, vector<1x8xf32>
    %c89 = arith.constant 89 : index
    %c0_9 = arith.constant 0 : index
    %25 = vector.load %arg2[%c89, %c0_9] : memref<248x128xf32, #tpu.memory_space<vmem>>, vector<1x8xf32>
    %c90 = arith.constant 90 : index
    %c0_10 = arith.constant 0 : index
    %26 = vector.load %arg2[%c90, %c0_10] : memref<248x128xf32, #tpu.memory_space<vmem>>, vector<1x8xf32>
    %c91 = arith.constant 91 : index
    %c0_11 = arith.constant 0 : index
    %27 = vector.load %arg2[%c91, %c0_11] : memref<248x128xf32, #tpu.memory_space<vmem>>, vector<1x8xf32>
    %c96 = arith.constant 96 : index
    %c0_12 = arith.constant 0 : index
    %28 = vector.load %arg2[%c96, %c0_12] : memref<248x128xf32, #tpu.memory_space<vmem>>, vector<8x24xf32>
    %c104 = arith.constant 104 : index
    %c0_13 = arith.constant 0 : index
    %29 = vector.load %arg2[%c104, %c0_13] : memref<248x128xf32, #tpu.memory_space<vmem>>, vector<1x24xf32>
    %c112 = arith.constant 112 : index
    %c0_14 = arith.constant 0 : index
    %30 = vector.load %arg2[%c112, %c0_14] : memref<248x128xf32, #tpu.memory_space<vmem>>, vector<8x32xf32>
    %c120 = arith.constant 120 : index
    %c0_15 = arith.constant 0 : index
    %31 = vector.load %arg2[%c120, %c0_15] : memref<248x128xf32, #tpu.memory_space<vmem>>, vector<1x32xf32>
    %c128 = arith.constant 128 : index
    %c0_16 = arith.constant 0 : index
    %32 = vector.load %arg2[%c128, %c0_16] : memref<248x128xf32, #tpu.memory_space<vmem>>, vector<32x8xf32>
    %c160 = arith.constant 160 : index
    %c0_17 = arith.constant 0 : index
    %33 = vector.load %arg2[%c160, %c0_17] : memref<248x128xf32, #tpu.memory_space<vmem>>, vector<1x8xf32>
    %cst_18 = arith.constant dense<0.000000e+00> : vector<56xf32>
    %34 = vector.multi_reduction <add>, %23, %cst_18 [1] : vector<56x8xf32> to vector<56xf32>
    %35 = vector.shape_cast %34 : vector<56xf32> to vector<56x1xf32>
    %cst_19 = arith.constant 8.000000e+00 : f32
    %36 = vector.broadcast %cst_19 : f32 to vector<56x1xf32>
    %37 = arith.divf %35, %36 : vector<56x1xf32>
    %38 = vector.broadcast %37 : vector<56x1xf32> to vector<56x8xf32>
    %39 = arith.subf %23, %38 : vector<56x8xf32>
    %40 = arith.mulf %39, %39 : vector<56x8xf32>
    %cst_20 = arith.constant dense<0.000000e+00> : vector<56xf32>
    %41 = vector.multi_reduction <add>, %40, %cst_20 [1] : vector<56x8xf32> to vector<56xf32>
    %42 = vector.shape_cast %41 : vector<56xf32> to vector<56x1xf32>
    %cst_21 = arith.constant 8.000000e+00 : f32
    %43 = vector.broadcast %cst_21 : f32 to vector<56x1xf32>
    %44 = arith.divf %42, %43 : vector<56x1xf32>
    %45 = vector.broadcast %37 : vector<56x1xf32> to vector<56x8xf32>
    %46 = arith.subf %23, %45 : vector<56x8xf32>
    %cst_22 = arith.constant 9.99999974E-6 : f32
    %47 = vector.broadcast %cst_22 : f32 to vector<56x1xf32>
    %48 = arith.addf %44, %47 : vector<56x1xf32>
    %49 = math.rsqrt %48 : vector<56x1xf32>
    %50 = vector.broadcast %49 : vector<56x1xf32> to vector<56x8xf32>
    %51 = arith.mulf %46, %50 : vector<56x8xf32>
    %52 = vector.broadcast %24 : vector<1x8xf32> to vector<56x8xf32>
    %53 = arith.mulf %51, %52 : vector<56x8xf32>
    %54 = vector.broadcast %25 : vector<1x8xf32> to vector<56x8xf32>
    %55 = arith.addf %53, %54 : vector<56x8xf32>
    %cst_23 = arith.constant dense<0.000000e+00> : vector<56x24xf32>
    %56 = tpu.matmul %55, %28, %cst_23 {dimension_numbers = #tpu.dot_dimension_numbers<[1], [0], [0], [1], [0, 0, 1, 1], [], []>} : vector<56x8xf32>, vector<8x24xf32>, vector<56x24xf32> -> vector<56x24xf32>
    %57 = vector.broadcast %29 : vector<1x24xf32> to vector<56x24xf32>
    %58 = arith.addf %56, %57 : vector<56x24xf32>
    %59 = vector.extract_strided_slice %58 {offsets = [0, 0], sizes = [56, 8], strides = [1, 1]} : vector<56x24xf32> to vector<56x8xf32>
    %60 = vector.extract_strided_slice %58 {offsets = [0, 8], sizes = [56, 8], strides = [1, 1]} : vector<56x24xf32> to vector<56x8xf32>
    %61 = vector.extract_strided_slice %58 {offsets = [0, 16], sizes = [56, 8], strides = [1, 1]} : vector<56x24xf32> to vector<56x8xf32>
    %cst_24 = arith.constant 0.000000e+00 : f32
    %62 = vector.shape_cast %10 : vector<1x8xi1> to vector<1x8xi1>
    %63 = vector.broadcast %62 : vector<1x8xi1> to vector<56x8xi1>
    %64 = vector.broadcast %cst_24 : f32 to vector<56x8xf32>
    %65 = arith.select %63, %59, %64 : vector<56x8xi1>, vector<56x8xf32>
    %cst_25 = arith.constant 0.000000e+00 : f32
    %66 = vector.shape_cast %15 : vector<1x8xi1> to vector<1x8xi1>
    %67 = vector.broadcast %66 : vector<1x8xi1> to vector<56x8xi1>
    %68 = vector.broadcast %cst_25 : f32 to vector<56x8xf32>
    %69 = arith.select %67, %59, %68 : vector<56x8xi1>, vector<56x8xf32>
    %70 = tpu.concatenate %65, %69 in 0 : vector<56x8xf32>, vector<56x8xf32> -> vector<112x8xf32>
    %cst_26 = arith.constant dense<0.000000e+00> : vector<112x56xf32>
    %71 = tpu.matmul %70, %60, %cst_26 {dimension_numbers = #tpu.dot_dimension_numbers<[1], [1], [0], [0], [0, 0, 1, 0], [], []>} : vector<112x8xf32>, vector<56x8xf32>, vector<112x56xf32> -> vector<112x56xf32>
    %cst_27 = arith.constant -1.000000e+30 : f32
    %72 = vector.shape_cast %18 : vector<1x56xi1> to vector<1x56xi1>
    %73 = vector.broadcast %72 : vector<1x56xi1> to vector<112x56xi1>
    %74 = vector.broadcast %cst_27 : f32 to vector<112x56xf32>
    %75 = arith.select %73, %71, %74 : vector<112x56xi1>, vector<112x56xf32>
    %cst_28 = arith.constant dense<0xFF800000> : vector<112xf32>
    %76 = vector.multi_reduction <maximumf>, %75, %cst_28 [1] : vector<112x56xf32> to vector<112xf32>
    %77 = vector.shape_cast %76 : vector<112xf32> to vector<112x1xf32>
    %78 = vector.broadcast %77 : vector<112x1xf32> to vector<112x56xf32>
    %79 = arith.subf %75, %78 : vector<112x56xf32>
    %80 = math.exp %79 : vector<112x56xf32>
    %cst_29 = arith.constant dense<0.000000e+00> : vector<112xf32>
    %81 = vector.multi_reduction <add>, %80, %cst_29 [1] : vector<112x56xf32> to vector<112xf32>
    %82 = vector.shape_cast %81 : vector<112xf32> to vector<112x1xf32>
    %83 = tpu.reciprocal %82 {approx = true} : vector<112x1xf32> -> vector<112x1xf32>
    %84 = vector.broadcast %83 : vector<112x1xf32> to vector<112x56xf32>
    %85 = arith.mulf %80, %84 : vector<112x56xf32>
    %cst_30 = arith.constant dense<0.000000e+00> : vector<112x8xf32>
    %86 = tpu.matmul %85, %61, %cst_30 {dimension_numbers = #tpu.dot_dimension_numbers<[1], [0], [0], [1], [0, 0, 1, 1], [], []>} : vector<112x56xf32>, vector<56x8xf32>, vector<112x8xf32> -> vector<112x8xf32>
    %87 = vector.extract_strided_slice %86 {offsets = [0, 0], sizes = [56, 8], strides = [1, 1]} : vector<112x8xf32> to vector<56x8xf32>
    %cst_31 = arith.constant 0.000000e+00 : f32
    %88 = vector.shape_cast %10 : vector<1x8xi1> to vector<1x8xi1>
    %89 = vector.broadcast %88 : vector<1x8xi1> to vector<56x8xi1>
    %90 = vector.broadcast %cst_31 : f32 to vector<56x8xf32>
    %91 = arith.select %89, %87, %90 : vector<56x8xi1>, vector<56x8xf32>
    %92 = vector.extract_strided_slice %86 {offsets = [56, 0], sizes = [56, 8], strides = [1, 1]} : vector<112x8xf32> to vector<56x8xf32>
    %cst_32 = arith.constant 0.000000e+00 : f32
    %93 = vector.shape_cast %15 : vector<1x8xi1> to vector<1x8xi1>
    %94 = vector.broadcast %93 : vector<1x8xi1> to vector<56x8xi1>
    %95 = vector.broadcast %cst_32 : f32 to vector<56x8xf32>
    %96 = arith.select %94, %92, %95 : vector<56x8xi1>, vector<56x8xf32>
    %97 = arith.addf %91, %96 : vector<56x8xf32>
    %98 = arith.addf %23, %97 : vector<56x8xf32>
    %cst_33 = arith.constant dense<0.000000e+00> : vector<56xf32>
    %99 = vector.multi_reduction <add>, %98, %cst_33 [1] : vector<56x8xf32> to vector<56xf32>
    %100 = vector.shape_cast %99 : vector<56xf32> to vector<56x1xf32>
    %cst_34 = arith.constant 8.000000e+00 : f32
    %101 = vector.broadcast %cst_34 : f32 to vector<56x1xf32>
    %102 = arith.divf %100, %101 : vector<56x1xf32>
    %103 = vector.broadcast %102 : vector<56x1xf32> to vector<56x8xf32>
    %104 = arith.subf %98, %103 : vector<56x8xf32>
    %105 = arith.mulf %104, %104 : vector<56x8xf32>
    %cst_35 = arith.constant dense<0.000000e+00> : vector<56xf32>
    %106 = vector.multi_reduction <add>, %105, %cst_35 [1] : vector<56x8xf32> to vector<56xf32>
    %107 = vector.shape_cast %106 : vector<56xf32> to vector<56x1xf32>
    %cst_36 = arith.constant 8.000000e+00 : f32
    %108 = vector.broadcast %cst_36 : f32 to vector<56x1xf32>
    %109 = arith.divf %107, %108 : vector<56x1xf32>
    %110 = vector.broadcast %102 : vector<56x1xf32> to vector<56x8xf32>
    %111 = arith.subf %98, %110 : vector<56x8xf32>
    %cst_37 = arith.constant 9.99999974E-6 : f32
    %112 = vector.broadcast %cst_37 : f32 to vector<56x1xf32>
    %113 = arith.addf %109, %112 : vector<56x1xf32>
    %114 = math.rsqrt %113 : vector<56x1xf32>
    %115 = vector.broadcast %114 : vector<56x1xf32> to vector<56x8xf32>
    %116 = arith.mulf %111, %115 : vector<56x8xf32>
    %117 = vector.broadcast %26 : vector<1x8xf32> to vector<56x8xf32>
    %118 = arith.mulf %116, %117 : vector<56x8xf32>
    %119 = vector.broadcast %27 : vector<1x8xf32> to vector<56x8xf32>
    %120 = arith.addf %118, %119 : vector<56x8xf32>
    %cst_38 = arith.constant dense<0.000000e+00> : vector<56x32xf32>
    %121 = tpu.matmul %120, %30, %cst_38 {dimension_numbers = #tpu.dot_dimension_numbers<[1], [0], [0], [1], [0, 0, 1, 1], [], []>} : vector<56x8xf32>, vector<8x32xf32>, vector<56x32xf32> -> vector<56x32xf32>
    %122 = vector.broadcast %31 : vector<1x32xf32> to vector<56x32xf32>
    %123 = arith.addf %121, %122 : vector<56x32xf32>
    %cst_39 = arith.constant 5.000000e-01 : f32
    %124 = vector.broadcast %cst_39 : f32 to vector<56x32xf32>
    %125 = arith.mulf %124, %123 : vector<56x32xf32>
    %cst_40 = arith.constant 0.707106769 : f32
    %126 = vector.broadcast %cst_40 : f32 to vector<56x32xf32>
    %127 = arith.mulf %123, %126 : vector<56x32xf32>
    %cst_41 = arith.constant 0.000000e+00 : f32
    %128 = vector.broadcast %cst_41 : f32 to vector<56x32xf32>
    %129 = arith.cmpf oge, %127, %128 : vector<56x32xf32>
    %cst_42 = arith.constant 1.000000e+00 : f32
    %cst_43 = arith.constant -1.000000e+00 : f32
    %130 = vector.broadcast %cst_42 : f32 to vector<56x32xf32>
    %131 = vector.broadcast %cst_43 : f32 to vector<56x32xf32>
    %132 = arith.select %129, %130, %131 : vector<56x32xi1>, vector<56x32xf32>
    %133 = math.absf %127 : vector<56x32xf32>
    %cst_44 = arith.constant 0.327591091 : f32
    %134 = vector.broadcast %cst_44 : f32 to vector<56x32xf32>
    %135 = arith.mulf %134, %133 : vector<56x32xf32>
    %cst_45 = arith.constant 1.000000e+00 : f32
    %136 = vector.broadcast %cst_45 : f32 to vector<56x32xf32>
    %137 = arith.addf %136, %135 : vector<56x32xf32>
    %138 = tpu.reciprocal %137 {approx = true} : vector<56x32xf32> -> vector<56x32xf32>
    %cst_46 = arith.constant 1.06140542 : f32
    %139 = vector.broadcast %cst_46 : f32 to vector<56x32xf32>
    %140 = arith.mulf %139, %138 : vector<56x32xf32>
    %cst_47 = arith.constant -1.45315206 : f32
    %141 = vector.broadcast %cst_47 : f32 to vector<56x32xf32>
    %142 = arith.addf %140, %141 : vector<56x32xf32>
    %143 = arith.mulf %142, %138 : vector<56x32xf32>
    %cst_48 = arith.constant 1.42141378 : f32
    %144 = vector.broadcast %cst_48 : f32 to vector<56x32xf32>
    %145 = arith.addf %143, %144 : vector<56x32xf32>
    %146 = arith.mulf %145, %138 : vector<56x32xf32>
    %cst_49 = arith.constant -0.284496725 : f32
    %147 = vector.broadcast %cst_49 : f32 to vector<56x32xf32>
    %148 = arith.addf %146, %147 : vector<56x32xf32>
    %149 = arith.mulf %148, %138 : vector<56x32xf32>
    %cst_50 = arith.constant 0.254829586 : f32
    %150 = vector.broadcast %cst_50 : f32 to vector<56x32xf32>
    %151 = arith.addf %149, %150 : vector<56x32xf32>
    %152 = arith.mulf %151, %138 : vector<56x32xf32>
    %cst_51 = arith.constant 0.000000e+00 : f32
    %153 = vector.broadcast %cst_51 : f32 to vector<56x32xf32>
    %154 = arith.subf %153, %133 : vector<56x32xf32>
    %155 = arith.mulf %154, %133 : vector<56x32xf32>
    %156 = math.exp %155 : vector<56x32xf32>
    %157 = arith.mulf %152, %156 : vector<56x32xf32>
    %cst_52 = arith.constant 1.000000e+00 : f32
    %158 = vector.broadcast %cst_52 : f32 to vector<56x32xf32>
    %159 = arith.subf %158, %157 : vector<56x32xf32>
    %160 = arith.mulf %132, %159 : vector<56x32xf32>
    %cst_53 = arith.constant 1.000000e+00 : f32
    %161 = vector.broadcast %cst_53 : f32 to vector<56x32xf32>
    %162 = arith.addf %161, %160 : vector<56x32xf32>
    %163 = arith.mulf %125, %162 : vector<56x32xf32>
    %cst_54 = arith.constant dense<0.000000e+00> : vector<56x8xf32>
    %164 = tpu.matmul %163, %32, %cst_54 {dimension_numbers = #tpu.dot_dimension_numbers<[1], [0], [0], [1], [0, 0, 1, 1], [], []>} : vector<56x32xf32>, vector<32x8xf32>, vector<56x8xf32> -> vector<56x8xf32>
    %165 = arith.addf %98, %164 : vector<56x8xf32>
    %166 = vector.broadcast %33 : vector<1x8xf32> to vector<56x8xf32>
    %167 = arith.addf %165, %166 : vector<56x8xf32>
    %c168 = arith.constant 168 : index
    %c0_55 = arith.constant 0 : index
    %168 = vector.load %arg2[%c168, %c0_55] : memref<248x128xf32, #tpu.memory_space<vmem>>, vector<1x8xf32>
    %c169 = arith.constant 169 : index
    %c0_56 = arith.constant 0 : index
    %169 = vector.load %arg2[%c169, %c0_56] : memref<248x128xf32, #tpu.memory_space<vmem>>, vector<1x8xf32>
    %c170 = arith.constant 170 : index
    %c0_57 = arith.constant 0 : index
    %170 = vector.load %arg2[%c170, %c0_57] : memref<248x128xf32, #tpu.memory_space<vmem>>, vector<1x8xf32>
    %c171 = arith.constant 171 : index
    %c0_58 = arith.constant 0 : index
    %171 = vector.load %arg2[%c171, %c0_58] : memref<248x128xf32, #tpu.memory_space<vmem>>, vector<1x8xf32>
    %c176 = arith.constant 176 : index
    %c0_59 = arith.constant 0 : index
    %172 = vector.load %arg2[%c176, %c0_59] : memref<248x128xf32, #tpu.memory_space<vmem>>, vector<8x24xf32>
    %c184 = arith.constant 184 : index
    %c0_60 = arith.constant 0 : index
    %173 = vector.load %arg2[%c184, %c0_60] : memref<248x128xf32, #tpu.memory_space<vmem>>, vector<1x24xf32>
    %c192 = arith.constant 192 : index
    %c0_61 = arith.constant 0 : index
    %174 = vector.load %arg2[%c192, %c0_61] : memref<248x128xf32, #tpu.memory_space<vmem>>, vector<8x32xf32>
    %c200 = arith.constant 200 : index
    %c0_62 = arith.constant 0 : index
    %175 = vector.load %arg2[%c200, %c0_62] : memref<248x128xf32, #tpu.memory_space<vmem>>, vector<1x32xf32>
    %c208 = arith.constant 208 : index
    %c0_63 = arith.constant 0 : index
    %176 = vector.load %arg2[%c208, %c0_63] : memref<248x128xf32, #tpu.memory_space<vmem>>, vector<32x8xf32>
    %c240 = arith.constant 240 : index
    %c0_64 = arith.constant 0 : index
    %177 = vector.load %arg2[%c240, %c0_64] : memref<248x128xf32, #tpu.memory_space<vmem>>, vector<1x8xf32>
    %cst_65 = arith.constant dense<0.000000e+00> : vector<56xf32>
    %178 = vector.multi_reduction <add>, %167, %cst_65 [1] : vector<56x8xf32> to vector<56xf32>
    %179 = vector.shape_cast %178 : vector<56xf32> to vector<56x1xf32>
    %cst_66 = arith.constant 8.000000e+00 : f32
    %180 = vector.broadcast %cst_66 : f32 to vector<56x1xf32>
    %181 = arith.divf %179, %180 : vector<56x1xf32>
    %182 = vector.broadcast %181 : vector<56x1xf32> to vector<56x8xf32>
    %183 = arith.subf %167, %182 : vector<56x8xf32>
    %184 = arith.mulf %183, %183 : vector<56x8xf32>
    %cst_67 = arith.constant dense<0.000000e+00> : vector<56xf32>
    %185 = vector.multi_reduction <add>, %184, %cst_67 [1] : vector<56x8xf32> to vector<56xf32>
    %186 = vector.shape_cast %185 : vector<56xf32> to vector<56x1xf32>
    %cst_68 = arith.constant 8.000000e+00 : f32
    %187 = vector.broadcast %cst_68 : f32 to vector<56x1xf32>
    %188 = arith.divf %186, %187 : vector<56x1xf32>
    %189 = vector.broadcast %181 : vector<56x1xf32> to vector<56x8xf32>
    %190 = arith.subf %167, %189 : vector<56x8xf32>
    %cst_69 = arith.constant 9.99999974E-6 : f32
    %191 = vector.broadcast %cst_69 : f32 to vector<56x1xf32>
    %192 = arith.addf %188, %191 : vector<56x1xf32>
    %193 = math.rsqrt %192 : vector<56x1xf32>
    %194 = vector.broadcast %193 : vector<56x1xf32> to vector<56x8xf32>
    %195 = arith.mulf %190, %194 : vector<56x8xf32>
    %196 = vector.broadcast %168 : vector<1x8xf32> to vector<56x8xf32>
    %197 = arith.mulf %195, %196 : vector<56x8xf32>
    %198 = vector.broadcast %169 : vector<1x8xf32> to vector<56x8xf32>
    %199 = arith.addf %197, %198 : vector<56x8xf32>
    %cst_70 = arith.constant dense<0.000000e+00> : vector<56x24xf32>
    %200 = tpu.matmul %199, %172, %cst_70 {dimension_numbers = #tpu.dot_dimension_numbers<[1], [0], [0], [1], [0, 0, 1, 1], [], []>} : vector<56x8xf32>, vector<8x24xf32>, vector<56x24xf32> -> vector<56x24xf32>
    %201 = vector.broadcast %173 : vector<1x24xf32> to vector<56x24xf32>
    %202 = arith.addf %200, %201 : vector<56x24xf32>
    %203 = vector.extract_strided_slice %202 {offsets = [0, 0], sizes = [56, 8], strides = [1, 1]} : vector<56x24xf32> to vector<56x8xf32>
    %204 = vector.extract_strided_slice %202 {offsets = [0, 8], sizes = [56, 8], strides = [1, 1]} : vector<56x24xf32> to vector<56x8xf32>
    %205 = vector.extract_strided_slice %202 {offsets = [0, 16], sizes = [56, 8], strides = [1, 1]} : vector<56x24xf32> to vector<56x8xf32>
    %cst_71 = arith.constant 0.000000e+00 : f32
    %206 = vector.shape_cast %10 : vector<1x8xi1> to vector<1x8xi1>
    %207 = vector.broadcast %206 : vector<1x8xi1> to vector<56x8xi1>
    %208 = vector.broadcast %cst_71 : f32 to vector<56x8xf32>
    %209 = arith.select %207, %203, %208 : vector<56x8xi1>, vector<56x8xf32>
    %cst_72 = arith.constant 0.000000e+00 : f32
    %210 = vector.shape_cast %15 : vector<1x8xi1> to vector<1x8xi1>
    %211 = vector.broadcast %210 : vector<1x8xi1> to vector<56x8xi1>
    %212 = vector.broadcast %cst_72 : f32 to vector<56x8xf32>
    %213 = arith.select %211, %203, %212 : vector<56x8xi1>, vector<56x8xf32>
    %214 = tpu.concatenate %209, %213 in 0 : vector<56x8xf32>, vector<56x8xf32> -> vector<112x8xf32>
    %cst_73 = arith.constant dense<0.000000e+00> : vector<112x56xf32>
    %215 = tpu.matmul %214, %204, %cst_73 {dimension_numbers = #tpu.dot_dimension_numbers<[1], [1], [0], [0], [0, 0, 1, 0], [], []>} : vector<112x8xf32>, vector<56x8xf32>, vector<112x56xf32> -> vector<112x56xf32>
    %cst_74 = arith.constant -1.000000e+30 : f32
    %216 = vector.shape_cast %18 : vector<1x56xi1> to vector<1x56xi1>
    %217 = vector.broadcast %216 : vector<1x56xi1> to vector<112x56xi1>
    %218 = vector.broadcast %cst_74 : f32 to vector<112x56xf32>
    %219 = arith.select %217, %215, %218 : vector<112x56xi1>, vector<112x56xf32>
    %cst_75 = arith.constant dense<0xFF800000> : vector<112xf32>
    %220 = vector.multi_reduction <maximumf>, %219, %cst_75 [1] : vector<112x56xf32> to vector<112xf32>
    %221 = vector.shape_cast %220 : vector<112xf32> to vector<112x1xf32>
    %222 = vector.broadcast %221 : vector<112x1xf32> to vector<112x56xf32>
    %223 = arith.subf %219, %222 : vector<112x56xf32>
    %224 = math.exp %223 : vector<112x56xf32>
    %cst_76 = arith.constant dense<0.000000e+00> : vector<112xf32>
    %225 = vector.multi_reduction <add>, %224, %cst_76 [1] : vector<112x56xf32> to vector<112xf32>
    %226 = vector.shape_cast %225 : vector<112xf32> to vector<112x1xf32>
    %227 = tpu.reciprocal %226 {approx = true} : vector<112x1xf32> -> vector<112x1xf32>
    %228 = vector.broadcast %227 : vector<112x1xf32> to vector<112x56xf32>
    %229 = arith.mulf %224, %228 : vector<112x56xf32>
    %cst_77 = arith.constant dense<0.000000e+00> : vector<112x8xf32>
    %230 = tpu.matmul %229, %205, %cst_77 {dimension_numbers = #tpu.dot_dimension_numbers<[1], [0], [0], [1], [0, 0, 1, 1], [], []>} : vector<112x56xf32>, vector<56x8xf32>, vector<112x8xf32> -> vector<112x8xf32>
    %231 = vector.extract_strided_slice %230 {offsets = [0, 0], sizes = [56, 8], strides = [1, 1]} : vector<112x8xf32> to vector<56x8xf32>
    %cst_78 = arith.constant 0.000000e+00 : f32
    %232 = vector.shape_cast %10 : vector<1x8xi1> to vector<1x8xi1>
    %233 = vector.broadcast %232 : vector<1x8xi1> to vector<56x8xi1>
    %234 = vector.broadcast %cst_78 : f32 to vector<56x8xf32>
    %235 = arith.select %233, %231, %234 : vector<56x8xi1>, vector<56x8xf32>
    %236 = vector.extract_strided_slice %230 {offsets = [56, 0], sizes = [56, 8], strides = [1, 1]} : vector<112x8xf32> to vector<56x8xf32>
    %cst_79 = arith.constant 0.000000e+00 : f32
    %237 = vector.shape_cast %15 : vector<1x8xi1> to vector<1x8xi1>
    %238 = vector.broadcast %237 : vector<1x8xi1> to vector<56x8xi1>
    %239 = vector.broadcast %cst_79 : f32 to vector<56x8xf32>
    %240 = arith.select %238, %236, %239 : vector<56x8xi1>, vector<56x8xf32>
    %241 = arith.addf %235, %240 : vector<56x8xf32>
    %242 = arith.addf %167, %241 : vector<56x8xf32>
    %cst_80 = arith.constant dense<0.000000e+00> : vector<56xf32>
    %243 = vector.multi_reduction <add>, %242, %cst_80 [1] : vector<56x8xf32> to vector<56xf32>
    %244 = vector.shape_cast %243 : vector<56xf32> to vector<56x1xf32>
    %cst_81 = arith.constant 8.000000e+00 : f32
    %245 = vector.broadcast %cst_81 : f32 to vector<56x1xf32>
    %246 = arith.divf %244, %245 : vector<56x1xf32>
    %247 = vector.broadcast %246 : vector<56x1xf32> to vector<56x8xf32>
    %248 = arith.subf %242, %247 : vector<56x8xf32>
    %249 = arith.mulf %248, %248 : vector<56x8xf32>
    %cst_82 = arith.constant dense<0.000000e+00> : vector<56xf32>
    %250 = vector.multi_reduction <add>, %249, %cst_82 [1] : vector<56x8xf32> to vector<56xf32>
    %251 = vector.shape_cast %250 : vector<56xf32> to vector<56x1xf32>
    %cst_83 = arith.constant 8.000000e+00 : f32
    %252 = vector.broadcast %cst_83 : f32 to vector<56x1xf32>
    %253 = arith.divf %251, %252 : vector<56x1xf32>
    %254 = vector.broadcast %246 : vector<56x1xf32> to vector<56x8xf32>
    %255 = arith.subf %242, %254 : vector<56x8xf32>
    %cst_84 = arith.constant 9.99999974E-6 : f32
    %256 = vector.broadcast %cst_84 : f32 to vector<56x1xf32>
    %257 = arith.addf %253, %256 : vector<56x1xf32>
    %258 = math.rsqrt %257 : vector<56x1xf32>
    %259 = vector.broadcast %258 : vector<56x1xf32> to vector<56x8xf32>
    %260 = arith.mulf %255, %259 : vector<56x8xf32>
    %261 = vector.broadcast %170 : vector<1x8xf32> to vector<56x8xf32>
    %262 = arith.mulf %260, %261 : vector<56x8xf32>
    %263 = vector.broadcast %171 : vector<1x8xf32> to vector<56x8xf32>
    %264 = arith.addf %262, %263 : vector<56x8xf32>
    %cst_85 = arith.constant dense<0.000000e+00> : vector<56x32xf32>
    %265 = tpu.matmul %264, %174, %cst_85 {dimension_numbers = #tpu.dot_dimension_numbers<[1], [0], [0], [1], [0, 0, 1, 1], [], []>} : vector<56x8xf32>, vector<8x32xf32>, vector<56x32xf32> -> vector<56x32xf32>
    %266 = vector.broadcast %175 : vector<1x32xf32> to vector<56x32xf32>
    %267 = arith.addf %265, %266 : vector<56x32xf32>
    %cst_86 = arith.constant 5.000000e-01 : f32
    %268 = vector.broadcast %cst_86 : f32 to vector<56x32xf32>
    %269 = arith.mulf %268, %267 : vector<56x32xf32>
    %cst_87 = arith.constant 0.707106769 : f32
    %270 = vector.broadcast %cst_87 : f32 to vector<56x32xf32>
    %271 = arith.mulf %267, %270 : vector<56x32xf32>
    %cst_88 = arith.constant 0.000000e+00 : f32
    %272 = vector.broadcast %cst_88 : f32 to vector<56x32xf32>
    %273 = arith.cmpf oge, %271, %272 : vector<56x32xf32>
    %cst_89 = arith.constant 1.000000e+00 : f32
    %cst_90 = arith.constant -1.000000e+00 : f32
    %274 = vector.broadcast %cst_89 : f32 to vector<56x32xf32>
    %275 = vector.broadcast %cst_90 : f32 to vector<56x32xf32>
    %276 = arith.select %273, %274, %275 : vector<56x32xi1>, vector<56x32xf32>
    %277 = math.absf %271 : vector<56x32xf32>
    %cst_91 = arith.constant 0.327591091 : f32
    %278 = vector.broadcast %cst_91 : f32 to vector<56x32xf32>
    %279 = arith.mulf %278, %277 : vector<56x32xf32>
    %cst_92 = arith.constant 1.000000e+00 : f32
    %280 = vector.broadcast %cst_92 : f32 to vector<56x32xf32>
    %281 = arith.addf %280, %279 : vector<56x32xf32>
    %282 = tpu.reciprocal %281 {approx = true} : vector<56x32xf32> -> vector<56x32xf32>
    %cst_93 = arith.constant 1.06140542 : f32
    %283 = vector.broadcast %cst_93 : f32 to vector<56x32xf32>
    %284 = arith.mulf %283, %282 : vector<56x32xf32>
    %cst_94 = arith.constant -1.45315206 : f32
    %285 = vector.broadcast %cst_94 : f32 to vector<56x32xf32>
    %286 = arith.addf %284, %285 : vector<56x32xf32>
    %287 = arith.mulf %286, %282 : vector<56x32xf32>
    %cst_95 = arith.constant 1.42141378 : f32
    %288 = vector.broadcast %cst_95 : f32 to vector<56x32xf32>
    %289 = arith.addf %287, %288 : vector<56x32xf32>
    %290 = arith.mulf %289, %282 : vector<56x32xf32>
    %cst_96 = arith.constant -0.284496725 : f32
    %291 = vector.broadcast %cst_96 : f32 to vector<56x32xf32>
    %292 = arith.addf %290, %291 : vector<56x32xf32>
    %293 = arith.mulf %292, %282 : vector<56x32xf32>
    %cst_97 = arith.constant 0.254829586 : f32
    %294 = vector.broadcast %cst_97 : f32 to vector<56x32xf32>
    %295 = arith.addf %293, %294 : vector<56x32xf32>
    %296 = arith.mulf %295, %282 : vector<56x32xf32>
    %cst_98 = arith.constant 0.000000e+00 : f32
    %297 = vector.broadcast %cst_98 : f32 to vector<56x32xf32>
    %298 = arith.subf %297, %277 : vector<56x32xf32>
    %299 = arith.mulf %298, %277 : vector<56x32xf32>
    %300 = math.exp %299 : vector<56x32xf32>
    %301 = arith.mulf %296, %300 : vector<56x32xf32>
    %cst_99 = arith.constant 1.000000e+00 : f32
    %302 = vector.broadcast %cst_99 : f32 to vector<56x32xf32>
    %303 = arith.subf %302, %301 : vector<56x32xf32>
    %304 = arith.mulf %276, %303 : vector<56x32xf32>
    %cst_100 = arith.constant 1.000000e+00 : f32
    %305 = vector.broadcast %cst_100 : f32 to vector<56x32xf32>
    %306 = arith.addf %305, %304 : vector<56x32xf32>
    %307 = arith.mulf %269, %306 : vector<56x32xf32>
    %cst_101 = arith.constant dense<0.000000e+00> : vector<56x8xf32>
    %308 = tpu.matmul %307, %176, %cst_101 {dimension_numbers = #tpu.dot_dimension_numbers<[1], [0], [0], [1], [0, 0, 1, 1], [], []>} : vector<56x32xf32>, vector<32x8xf32>, vector<56x8xf32> -> vector<56x8xf32>
    %309 = arith.addf %242, %308 : vector<56x8xf32>
    %310 = vector.broadcast %177 : vector<1x8xf32> to vector<56x8xf32>
    %311 = arith.addf %309, %310 : vector<56x8xf32>
    %312 = vector.extract_strided_slice %311 {offsets = [0, 0], sizes = [1, 8], strides = [1, 1]} : vector<56x8xf32> to vector<1x8xf32>
    %313 = tpu.concatenate %312, %312, %312, %312, %312, %312, %312, %312 in 0 : vector<1x8xf32>, vector<1x8xf32>, vector<1x8xf32>, vector<1x8xf32>, vector<1x8xf32>, vector<1x8xf32>, vector<1x8xf32>, vector<1x8xf32> -> vector<8x8xf32>
    %cst_102 = arith.constant dense<0.000000e+00> : vector<8x128xf32>
    %314 = tpu.matmul %313, %3, %cst_102 {dimension_numbers = #tpu.dot_dimension_numbers<[1], [0], [0], [1], [0, 0, 1, 1], [], []>} : vector<8x8xf32>, vector<8x128xf32>, vector<8x128xf32> -> vector<8x128xf32>
    %315 = vector.broadcast %4 : vector<1x128xf32> to vector<8x128xf32>
    %316 = arith.addf %314, %315 : vector<8x128xf32>
    %cst_103 = arith.constant dense<0xFF800000> : vector<8xf32>
    %317 = vector.multi_reduction <maximumf>, %316, %cst_103 [1] : vector<8x128xf32> to vector<8xf32>
    %318 = vector.shape_cast %317 : vector<8xf32> to vector<8x1xf32>
    %319 = vector.broadcast %318 : vector<8x1xf32> to vector<8x128xf32>
    %320 = arith.subf %316, %319 : vector<8x128xf32>
    %321 = math.exp %320 : vector<8x128xf32>
    %cst_104 = arith.constant dense<0.000000e+00> : vector<8xf32>
    %322 = vector.multi_reduction <add>, %321, %cst_104 [1] : vector<8x128xf32> to vector<8xf32>
    %323 = vector.shape_cast %322 : vector<8xf32> to vector<8x1xf32>
    %324 = vector.broadcast %323 : vector<8x1xf32> to vector<8x128xf32>
    %325 = arith.divf %321, %324 : vector<8x128xf32>
    %c0_105 = arith.constant 0 : index
    %c0_106 = arith.constant 0 : index
    %326 = vector.load %arg3[%c0_105, %c0_106] : memref<8x128xf32, #tpu.memory_space<vmem>>, vector<8x128xf32>
    tpu.vector_store %arg3[%c0_105, %c0_106], %325 {strides = array<i32>} : memref<8x128xf32, #tpu.memory_space<vmem>>, vector<8x128xf32>,
    return
  }
  func.func @transform_0(%arg0: i32) -> (i32, i32) {
    %c0_i32 = arith.constant 0 : i32
    %c0_i32_0 = arith.constant 0 : i32
    return %arg0, %c0_i32 : i32, i32
  }
  func.func @transform_1(%arg0: i32) -> (i32, i32) {
    %c0_i32 = arith.constant 0 : i32
    %c0_i32_0 = arith.constant 0 : i32
    %c0_i32_1 = arith.constant 0 : i32
    return %c0_i32, %c0_i32_0 : i32, i32
  }
  func.func @transform_2(%arg0: i32) -> (i32, i32) {
    %c0_i32 = arith.constant 0 : i32
    %c0_i32_0 = arith.constant 0 : i32
    return %arg0, %c0_i32 : i32, i32
  }
}

</mosaic_0001>

<bundles_post_ra>
// kernel: tpu_custom_call.1
= control target key start
LH: loop header
LB: loop body
LE: loop exit
PB: predicated region body
PF: predicated region fallthrough
CT: control target
= control target key end

     0   :  { %7 = vsyncpa [#allocation3], 0  ;;  %s5708_s0 = inlined_call_operand.vmem [shape: f32[112,8], index: 0, kind: input, shape index: {}]   ;;  %s5709_s1 = inlined_call_operand.hbm [shape: f32[248,128], index: 1, kind: input, shape index: {}]   ;;  %s5710_s2 = inlined_call_operand.hbm [shape: f32[16,128], index: 2, kind: output, shape index: {}]  }
   0x1   :  { %8 = vsyncpa [#allocation4], 0 }
   0x2   :  { %10 = vsyncpa [#allocation4 + $0x1], 0  ;;  %s4388_s9 = smov 0   ;;  %s4390_s10 = smov 0  }
   0x3   :  { %s4392_s11 = smov 0   ;;  %s4394_s12 = smov 0  }
   0x4 LB: > { %s4409_s13 = sadd.s32 4294967295, %s4362_s12   ;;  %s3371_s14 = sadd.s32 4294967294, %s4362_s12   ;;  %s4362_s12 = sphi %s4394_s12, %s5720_s12   ;;  %s4358_s11 = sphi %s4392_s11, %s5719_s11   ;;  %s4354_s10 = sphi %s4390_s10, %s5718_s10   ;;  %s4350_s9 = sphi %s4388_s9, %s5717_s9  }
   0x5   : > { %s4413_s15 = sadd.s32 1, %s4362_s12   ;;  %s70_s16 = sadd.s32 1, %s4358_s11 }
   0x6   : > { %s67_s17 = ssub.s32 %s4362_s12, %s4413_s15  ;;  %p80_p0 = scmp.ne.s32.totalorder %s4358_s11, %s4354_s10 }
   0x7   : > { %p68_p1 = scmp.eq.s32.totalorder %s67_s17, 0  ;;  %p81_p2 = scmp.eq.s32.totalorder %s4409_s13, 1 }
   0x8   : > { %p86_p3 = scmp.ne.s32.totalorder %s4354_s10, %s4350_s9  ;;  %p87_p4 = scmp.eq.s32.totalorder %s3371_s14, 1 }
   0x9   : > { %s4424_s18 = scalar_select %p68_p1, %s4358_s11, %s70_s16  }
   0xa   : > { %p4426_p5 = por %p81_p2, %p80_p0  ;;  %p4430_p6 = por %p87_p4, %p86_p3 }
   0xb   : > { %p3372_p7 = scmp.ge.s32.totalorder %s4362_s12, 1  ;;  %p94_p8 = scmp.lt.s32.totalorder %s4362_s12, 3 }
   0xc   : > { %s5712_s20 = scalar_select %p4430_p6, 1, 0 }
   0xd   : > { %p4001_p9 = scmp.eq.s32.totalorder %s4409_s13, 0  ;;  %p4437_p10 = pnand %p3372_p7, %p94_p8 }
   0xe   : > { %s4364_s22 = smov [#allocation2]  }
   0xf   : > { %s106_s23 = sshll.u32 %s4364_s22, 4  ;;  %p3993_p11 = pneg %p4437_p10  ;;  %s107_s23 = int_to_ptr.vmem [resolvable:$true] %s106_s23 }
  0x10   : > { %s4283_s24 = scalar_lea.vmem %s107_s23, 3968  ;;  %p4291_p3 = scmp.lt.s32.totalorder %s107_s23, %s107_s23 }
  0x11   : > { %p3994_p12 = pnand %p4001_p9, %p3993_p11  ;;  %p4284_p0 = scmp.ne.s32.totalorder %s107_s23, %s4283_s24 }
  0x12   : > { %p4292_p4 = scmp.lt.s32.totalorder %s4283_s24, %s4283_s24 }
  0x13   : > { %p4274_p13 = pneg %p3994_p12 }
  0x14   : > { %p4293_p6 = por %p4292_p4, %p4291_p3 }
  0x15   : > { %p4286_p1 = pnand %p4284_p0, %p4274_p13 }
  0x17   : > { %p4287_p2 = pneg %p4286_p1 }
  0x19   : > { %p4294_p7 = pnand %p4293_p6, %p4287_p2 }
  0x1b   : > { %4297 = shalt.err (!%p4294_p7)
}
  0x1c   : > { %s4365_s25 = smov 128   ;;  %s4366_s26 = smov 8  }
  0x1d   : > { %3996 = dma.hbm_to_vmem [thread:$0]  (!%p3994_p12), %s5709_s1, 3968, %s107_s23, [#allocation3], %s4365_s25, %s4365_s25, %s4366_s26  }
  0x1e   : > { %131 = sbr.rel (%p4437_p10) target bundleno = 5221 (0x1465), region = 28 }
  0x23   : > { %4341 = dma.done.wait (%p4001_p9), [#allocation3], 3968  }
  0x24   : > { %4343 = vsyncadd (%p4001_p9), [#allocation3], 4294963328  ;;  %s153_s29 = smul.u32 7, %s4409_s13  ;;  %v4367_v0 = vmov 0.0   ;;  %vm4368_vm0 = vmmov 0   ;;  %vm190_vm1 = vcmask 64512  }
  0x25   : > { %3667 = vmatprep.subr.mxu0 %v4367_v0  ;;  %3669 = vmatprep.mubr.msk.f32.mxu0 %vm4368_vm0, %v4367_v0  ;;  %v159_v1 = vld [vmem:[#allocation2 + $0x38] sm:$0xff]  ;;  %v3379_v9 = vld [vmem:[#allocation2 + $0x40] ss:$0 sm:$0xff]  ;;  %v162_v15 = vld [vmem:[#allocation2 + $0x8] sm:$0xff]  ;;  %s4369_s6 = smov 120   ;;  %s4370_s7 = smov 112  }
  0x26   : > { %p154_p6 = scmp.lt.s32.totalorder %s153_s29, 13  ;;  %3690 = vmatprep.subr.mxu1 %v4367_v0  ;;  %3692 = vmatprep.mubr.msk.f32.mxu1 %vm4368_vm0, %v4367_v0  ;;  %v161_v10 = vld [vmem:[#allocation2] sm:$0xff]  ;;  %v163_v21 = vld [vmem:[#allocation2 + $0x10] sm:$0xff]  ;;  %v164_v27 = vld [vmem:[#allocation2 + $0x18] sm:$0xff]  ;;  %vm817_vm7 = vcmask 457728   ;;  %vm1618_vm10 = vcmask 261120  }
  0x27   : > { %3668 = vmatpush3.msra.mxu0 %v159_v1  ;;  %v165_v33 = vld [vmem:[#allocation2 + $0x20] sm:$0xff]  ;;  %v166_v39 = vld [vmem:[#allocation2 + $0x28] sm:$0xff]  ;;  %v167_v45 = vld [vmem:[#allocation2 + $0x30] sm:$0xff]  ;;  %s150_s8 = sand.u32 1, %s4354_s10   ;;  %s3516_s16 = sshll.u32 %s4409_s13, 7 }
  0x28   : > { %s5722_s29 = smov (!%p154_p6, %s153_s29), 13  ;;  %s3377_s14 = sshll.u32 %s150_s8, 3 }
  0x29   : > { %s3378_s30 = sshll.u32 %s5722_s29, 3  ;;  %s152_s17 = scalar_lea.vmem [#allocation5], %s3377_s14 }
  0x2a   : > { %s157_s5 = scalar_lea.vmem %s5708_s0, %s3378_s30  ;;  %s3300_s21 = sshll.u32 %s152_s17, 4  ;;  %s3301_s21 = int_to_ptr.vmem [resolvable:$true] %s3300_s21 }
  0x2b   : > { %v179_v2 = vld [vmem:[%s157_s5] sm:$0xff]  ;;  %v180_v3 = vld [vmem:[%s157_s5 + $0x8] sm:$0xff]  ;;  %v181_v4 = vld [vmem:[%s157_s5 + $0x10] sm:$0xff]  ;;  %s3298_s24 = scalar_lea.hbm %s5710_s2, %s3516_s16  ;;  %s3287_s25 = scalar_lea.sflag [#allocation4], %s150_s8 }
  0x2c   : > { %3670 = vmatmul.mubr.msk.f32.vlgmr.msra.gmra.mxu0 %vm190_vm1, %v179_v2  ;;  %v182_v5 = vld [vmem:[%s157_s5 + $0x18] sm:$0xff]  ;;  %v183_v6 = vld [vmem:[%s157_s5 + $0x20] sm:$0xff]  ;;  %v184_v7 = vld [vmem:[%s157_s5 + $0x28] sm:$0xff]  ;;  %s4298_s26 = scalar_lea.vmem %s3301_s21, 128  ;;  %s4372_s27 = smov [#allocation5]  }
  0x2d   : > { %3672 = vmatprep.mubr.msk.f32.mxu0 %vm4368_vm0, %v4367_v0  ;;  %v185_v8 = vld [vmem:[%s157_s5 + $0x30] sm:$0xff]  ;;  %p4299_p8 = scmp.ne.s32.totalorder %s3301_s21, %s4298_s26  ;;  %s4302_s28 = sshll.u32 %s4372_s27, 4  ;;  %s4303_s28 = int_to_ptr.vmem [resolvable:$false] %s4302_s28 }
  0x2e   : > { %s4304_s13 = scalar_lea.vmem %s4303_s28, 256  ;;  %p4305_p11 = scmp.lt.s32.totalorder %s3301_s21, %s4303_s28 }
  0x2f   : > { %p4300_p9 = pnand %p4299_p8, %p4426_p5  ;;  %p4306_p12 = scmp.lt.s32.totalorder %s4304_s13, %s4298_s26 }
  0x30   : > { %3673 = vmatmul.mubr.msk.f32.gmra.mxu0 %vm190_vm1, %v180_v3 }
  0x31   : > { %3675 = vmatprep.mubr.msk.f32.mxu0 %vm4368_vm0, %v4367_v0  ;;  %p4301_p10 = pneg %p4300_p9  ;;  %p4307_p13 = por %p4306_p12, %p4305_p11 }
  0x33   : > { %p4308_p0 = pnand %p4307_p13, %p4301_p10 }
  0x34   : > { %3676 = vmatmul.mubr.msk.f32.gmra.mxu0 %vm190_vm1, %v181_v4 }
  0x35   : > { %3678 = vmatprep.mubr.msk.f32.mxu0 %vm4368_vm0, %v4367_v0 }
  0x38   : > { %3679 = vmatmul.mubr.msk.f32.gmra.mxu0 %vm190_vm1, %v182_v5 }
  0x39   : > { %3681 = vmatprep.mubr.msk.f32.mxu0 %vm4368_vm0, %v4367_v0 }
  0x3c   : > { %3682 = vmatmul.mubr.msk.f32.gmra.mxu0 %vm190_vm1, %v183_v6 }
  0x3d   : > { %3684 = vmatprep.mubr.msk.f32.mxu0 %vm4368_vm0, %v4367_v0 }
  0x40   : > { %3685 = vmatmul.mubr.msk.f32.gmra.mxu0 %vm190_vm1, %v184_v7 }
  0x41   : > { %3687 = vmatprep.mubr.msk.f32.mxu0 %vm4368_vm0, %v4367_v0 }
  0x44   : > { %3688 = vmatmul.mubr.msk.f32.gmra.mxu0 %vm190_vm1, %v185_v8 }
  0xec   : > { %v278_v11 = vpop.f32.mrf.mxu0 }
  0xed   : > { %v279_v12 = vadd.f32 %v3379_v9, %v278_v11 }
  0xee   : > { %v3671_v13 = vpop.f32.mrf.mxu0 }
  0xef   : > { %v4483_v14 = vadd.f32 %v279_v12, %v161_v10 }
  0xf0   : > { %v283_v16 = vpop.f32.mrf.mxu0 }
  0xf1   : > { %v284_v17 = vadd.f32 %v3379_v9, %v283_v16  ;;  %v332_v18 = vsel %vm190_vm1, %v4483_v14, 0.0 }
  0xf2   : > { %333 = vadd.xlane.f32.xlu0 %v332_v18  ;;  %v3674_v19 = vpop.f32.mrf.mxu0 }
  0xf3   : > { %v4487_v20 = vadd.f32 %v284_v17, %v162_v15 }
  0xf4   : > { %v288_v22 = vpop.f32.mrf.mxu0 }
  0xf5   : > { %v289_v23 = vadd.f32 %v3379_v9, %v288_v22  ;;  %v335_v24 = vsel %vm190_vm1, %v4487_v20, 0.0 }
  0xf6   : > { %336 = vadd.xlane.f32.xlu0 %v335_v24  ;;  %v3677_v25 = vpop.f32.mrf.mxu0 }
  0xf7   : > { %v4491_v26 = vadd.f32 %v289_v23, %v163_v21 }
  0xf8   : > { %v293_v28 = vpop.f32.mrf.mxu0 }
  0xf9   : > { %v294_v29 = vadd.f32 %v3379_v9, %v293_v28  ;;  %v338_v30 = vsel %vm190_vm1, %v4491_v26, 0.0 }
  0xfa   : > { %339 = vadd.xlane.f32.xlu1 %v338_v30  ;;  %v3680_v31 = vpop.f32.mrf.mxu0 }
  0xfb   : > { %v4495_v32 = vadd.f32 %v294_v29, %v164_v27  ;;  %v323_v27 = vld [vmem:[#allocation2 + $0x60] sm:$0xff] }
  0xfc   : > { %v298_v34 = vpop.f32.mrf.mxu0  ;;  %3691 = vmatpush3.msra.mxu1 %v323_v27 }
  0xfd   : > { %v299_v35 = vadd.f32 %v3379_v9, %v298_v34  ;;  %v341_v36 = vsel %vm190_vm1, %v4495_v32, 0.0 }
  0xfe   : > { %342 = vadd.xlane.f32.xlu1 %v341_v36  ;;  %v3683_v37 = vpop.f32.mrf.mxu0 }
  0xff   : > { %v4499_v38 = vadd.f32 %v299_v35, %v165_v33 }
 0x100   : > { %v303_v40 = vpop.f32.mrf.mxu0 }
 0x101   : > { %v304_v41 = vadd.f32 %v3379_v9, %v303_v40  ;;  %v344_v42 = vsel %vm190_vm1, %v4499_v38, 0.0 }
 0x102   : > { %345 = vadd.xlane.f32.xlu0 %v344_v42  ;;  %v3686_v43 = vpop.f32.mrf.mxu0 }
 0x103   : > { %v4503_v44 = vadd.f32 %v304_v41, %v166_v39 }
 0x104   : > { %v308_v46 = vpop.f32.mrf.mxu0 }
 0x105   : > { %v309_v47 = vadd.f32 %v3379_v9, %v308_v46  ;;  %v347_v48 = vsel %vm190_vm1, %v4503_v44, 0.0  ;;  %v3387_v46 = vld [vmem:[#allocation2 + $0x58] ss:$0 sm:$0xff] }
 0x106   : > { %348 = vadd.xlane.f32.xlu1 %v347_v48  ;;  %v3689_v49 = vpop.f32.mrf.mxu0 }
 0x107   : > { %v4507_v50 = vadd.f32 %v309_v47, %v167_v45 }
 0x109   : > { %v350_v51 = vsel %vm190_vm1, %v4507_v50, 0.0 }
 0x10a   : > { %351 = vadd.xlane.f32.xlu0 %v350_v51  ;;  %v3388_v51 = vld [vmem:[#allocation2 + $0x59] ss:$0 sm:$0xff] }
 0x17b   : > { %v334_v52 = vpop.xlane.xlu0 %333 }
 0x17c   : > { %v354_v53 = vmul.f32 0.125, %v334_v52 }
 0x17e   : > { %v4512_v54 = vsub.f32 %v4483_v14, %v354_v53 }
 0x17f   : > { %v337_v55 = vpop.xlane.xlu0 %336 }
 0x180   : > { %v355_v56 = vmul.f32 0.125, %v337_v55  ;;  %v368_v57 = vmul.f32 %v4512_v54, %v4512_v54 }
 0x182   : > { %v4517_v58 = vsub.f32 %v4487_v20, %v355_v56  ;;  %v375_v59 = vsel %vm190_vm1, %v368_v57, 0.0 }
 0x183   : > { %v340_v60 = vpop.xlane.xlu1 %339  ;;  %376 = vadd.xlane.f32.xlu1 %v375_v59 }
 0x184   : > { %v356_v61 = vmul.f32 0.125, %v340_v60  ;;  %v369_v62 = vmul.f32 %v4517_v58, %v4517_v58 }
 0x186   : > { %v4523_v63 = vsub.f32 %v4491_v26, %v356_v61  ;;  %v378_v1 = vsel %vm190_vm1, %v369_v62, 0.0 }
 0x187   : > { %v343_v2 = vpop.xlane.xlu1 %342  ;;  %379 = vadd.xlane.f32.xlu0 %v378_v1 }
 0x188   : > { %v357_v3 = vmul.f32 0.125, %v343_v2  ;;  %v370_v4 = vmul.f32 %v4523_v63, %v4523_v63 }
 0x18a   : > { %v4529_v5 = vsub.f32 %v4495_v32, %v357_v3  ;;  %v381_v6 = vsel %vm190_vm1, %v370_v4, 0.0 }
 0x18b   : > { %v346_v7 = vpop.xlane.xlu0 %345  ;;  %382 = vadd.xlane.f32.xlu1 %v381_v6 }
 0x18c   : > { %v358_v8 = vmul.f32 0.125, %v346_v7  ;;  %v371_v9 = vmul.f32 %v4529_v5, %v4529_v5 }
 0x18e   : > { %v4535_v10 = vsub.f32 %v4499_v38, %v358_v8  ;;  %v384_v11 = vsel %vm190_vm1, %v371_v9, 0.0 }
 0x18f   : > { %v349_v12 = vpop.xlane.xlu1 %348  ;;  %385 = vadd.xlane.f32.xlu0 %v384_v11 }
 0x190   : > { %v359_v13 = vmul.f32 0.125, %v349_v12  ;;  %v372_v15 = vmul.f32 %v4535_v10, %v4535_v10 }
 0x192   : > { %v4541_v16 = vsub.f32 %v4503_v44, %v359_v13  ;;  %v387_v17 = vsel %vm190_vm1, %v372_v15, 0.0 }
 0x193   : > { %388 = vadd.xlane.f32.xlu1 %v387_v17  ;;  %v352_v18 = vpop.xlane.xlu0 %351 }
 0x194   : > { %v360_v19 = vmul.f32 0.125, %v352_v18  ;;  %v373_v21 = vmul.f32 %v4541_v16, %v4541_v16 }
 0x196   : > { %v4547_v22 = vsub.f32 %v4507_v50, %v360_v19  ;;  %v390_v23 = vsel %vm190_vm1, %v373_v21, 0.0 }
 0x197   : > { %391 = vadd.xlane.f32.xlu0 %v390_v23 }
 0x198   : > { %v374_v24 = vmul.f32 %v4547_v22, %v4547_v22 }
 0x19a   : > { %v393_v25 = vsel %vm190_vm1, %v374_v24, 0.0 }
 0x19b   : > { %394 = vadd.xlane.f32.xlu1 %v393_v25  ;;  %v3389_v25 = vld [vmem:[#allocation2 + $0x68] ss:$0 sm:$0xff] }
 0x20c   : > { %v377_v28 = vpop.xlane.xlu1 %376 }
 0x20d   : > { %v396_v29 = vmul.f32 0.125, %v377_v28 }
 0x20f   : > { %v403_v30 = vadd.f32 1e-05, %v396_v29 }
 0x210   : > { %v380_v31 = vpop.xlane.xlu0 %379 }
 0x211   : > { %4044 = vrsqrt.f32 %v403_v30  ;;  %v397_v33 = vmul.f32 0.125, %v380_v31 }
 0x213   : > { %v404_v34 = vadd.f32 1e-05, %v397_v33 }
 0x214   : > { %v383_v35 = vpop.xlane.xlu1 %382 }
 0x215   : > { %4046 = vrsqrt.f32 %v404_v34  ;;  %v398_v36 = vmul.f32 0.125, %v383_v35 }
 0x217   : > { %v405_v37 = vadd.f32 1e-05, %v398_v36 }
 0x218   : > { %v386_v39 = vpop.xlane.xlu0 %385 }
 0x219   : > { %4048 = vrsqrt.f32 %v405_v37  ;;  %v399_v40 = vmul.f32 0.125, %v386_v39 }
 0x21b   : > { %v406_v41 = vadd.f32 1e-05, %v399_v40 }
 0x21c   : > { %v389_v42 = vpop.xlane.xlu1 %388 }
 0x21d   : > { %4050 = vrsqrt.f32 %v406_v41  ;;  %v400_v43 = vmul.f32 0.125, %v389_v42 }
 0x21e   : > { %v4045_v45 = vpop.eup %4044 }
 0x21f   : > { %v407_v47 = vadd.f32 1e-05, %v400_v43  ;;  %v417_v48 = vmul.f32 %v4045_v45, %v4512_v54 }
 0x220   : > { %v392_v49 = vpop.xlane.xlu0 %391 }
 0x221   : > { %4052 = vrsqrt.f32 %v407_v47  ;;  %v401_v52 = vmul.f32 0.125, %v392_v49  ;;  %v428_v53 = vmul.f32 %v3387_v46, %v417_v48 }
 0x222   : > { %v4047_v55 = vpop.eup %4046 }
 0x223   : > { %v408_v56 = vadd.f32 1e-05, %v401_v52  ;;  %v439_v57 = vadd.f32 %v3388_v51, %v428_v53  ;;  %v418_v59 = vmul.f32 %v4047_v55, %v4517_v58 }
 0x224   : > { %v395_v60 = vpop.xlane.xlu1 %394 }
 0x225   : > { %4054 = vrsqrt.f32 %v408_v56  ;;  %v402_v61 = vmul.f32 0.125, %v395_v60  ;;  %3693 = vmatmul.mubr.msk.f32.vlgmr.msra.gmra.mxu1 %vm190_vm1, %v439_v57  ;;  %v429_v62 = vmul.f32 %v3387_v46, %v418_v59 }
 0x226   : > { %v4049_v1 = vpop.eup %4048  ;;  %3695 = vmatprep.mubr.msk.f32.mxu1 %vm4368_vm0, %v4367_v0 }
 0x227   : > { %v409_v54 = vadd.f32 1e-05, %v402_v61  ;;  %v440_v2 = vadd.f32 %v3388_v51, %v429_v62  ;;  %v419_v3 = vmul.f32 %v4049_v1, %v4523_v63 }
 0x229   : > { %4056 = vrsqrt.f32 %v409_v54  ;;  %3696 = vmatmul.mubr.msk.f32.gmra.mxu1 %vm190_vm1, %v440_v2  ;;  %v430_v4 = vmul.f32 %v3387_v46, %v419_v3 }
 0x22a   : > { %v4051_v6 = vpop.eup %4050  ;;  %3698 = vmatprep.mubr.msk.f32.mxu1 %vm4368_vm0, %v4367_v0 }
 0x22b   : > { %v441_v58 = vadd.f32 %v3388_v51, %v430_v4  ;;  %v420_v7 = vmul.f32 %v4051_v6, %v4529_v5 }
 0x22d   : > { %3699 = vmatmul.mubr.msk.f32.gmra.mxu1 %vm190_vm1, %v441_v58  ;;  %v431_v8 = vmul.f32 %v3387_v46, %v420_v7 }
 0x22e   : > { %v4053_v9 = vpop.eup %4052  ;;  %3701 = vmatprep.mubr.msk.f32.mxu1 %vm4368_vm0, %v4367_v0 }
 0x22f   : > { %v442_v11 = vadd.f32 %v3388_v51, %v431_v8  ;;  %v421_v63 = vmul.f32 %v4053_v9, %v4535_v10 }
 0x231   : > { %3702 = vmatmul.mubr.msk.f32.gmra.mxu1 %vm190_vm1, %v442_v11  ;;  %v432_v12 = vmul.f32 %v3387_v46, %v421_v63 }
 0x232   : > { %v4055_v13 = vpop.eup %4054  ;;  %3704 = vmatprep.mubr.msk.f32.mxu1 %vm4368_vm0, %v4367_v0 }
 0x233   : > { %v443_v15 = vadd.f32 %v3388_v51, %v432_v12  ;;  %v422_v5 = vmul.f32 %v4055_v13, %v4541_v16  ;;  %v170_v16 = vlaneseq }
 0x235   : > { %3705 = vmatmul.mubr.msk.f32.gmra.mxu1 %vm190_vm1, %v443_v15  ;;  %v433_v17 = vmul.f32 %v3387_v46, %v422_v5  ;;  %v4579_v24 = vand.u32 127, %v170_v16 }
 0x236   : > { %v4057_v18 = vpop.eup %4056  ;;  %3707 = vmatprep.mubr.msk.f32.mxu1 %vm4368_vm0, %v4367_v0 }
 0x237   : > { %v444_v19 = vadd.f32 %v3388_v51, %v433_v17  ;;  %v423_v10 = vmul.f32 %v4057_v18, %v4547_v22  ;;  %vm173_vm2 = vcmp.lt.s32.totalorder %v4579_v24, 4  ;;  %vm175_vm3 = vcmp.ge.s32.totalorder %v4579_v24, 4 }
 0x238   : > { %vm176_vm4 = vcmp.lt.s32.totalorder %v4579_v24, 8  ;;  %vm178_vm6 = vcmp.lt.s32.totalorder %v4579_v24, 50 }
 0x239   : > { %3708 = vmatmul.mubr.msk.f32.gmra.mxu1 %vm190_vm1, %v444_v19  ;;  %v434_v21 = vmul.f32 %v3387_v46, %v423_v10  ;;  %vm4656_vm5 = vmand %vm175_vm3, %vm176_vm4  ;;  %vm3185_vm3 = vcmask 1040384   ;;  %vm3187_vm4 = vcmask 1041408  }
 0x23a   : > { %3710 = vmatprep.mubr.msk.f32.mxu1 %vm4368_vm0, %v4367_v0 }
 0x23b   : > { %v445_v23 = vadd.f32 %v3388_v51, %v434_v21 }
 0x23d   : > { %3711 = vmatmul.mubr.msk.f32.gmra.mxu1 %vm190_vm1, %v445_v23 }
 0x2e5   : > { %v537_v27 = vpop.f32.mrf.mxu1 }
 0x2e6   : > { %v4582_v28 = vadd.f32 %v3389_v25, %v537_v27 }
 0x2e7   : > { %v3694_v29 = vpop.f32.mrf.mxu1 }
 0x2e8   : > { %v573_v22 = vsel %vm173_vm2, %v4582_v28, 0.0  ;;  %v582_v58 = vsel %vm4656_vm5, %v4582_v28, 0.0 }
 0x2e9   : > { %v542_v30 = vpop.f32.mrf.mxu1  ;;  %3727 = vmatprep.mubr.msk.f32.mxu0 %vm190_vm1, %v573_v22 }
 0x2ea   : > { %v4608_v51 = vadd.f32 %v3389_v25, %v542_v30 }
 0x2eb   : > { %v3697_v31 = vpop.f32.mrf.mxu1 }
 0x2ec   : > { %v574_v62 = vsel %vm173_vm2, %v4608_v51, 0.0  ;;  %v583_v7 = vsel %vm4656_vm5, %v4608_v51, 0.0 }
 0x2ed   : > { %v547_v33 = vpop.f32.mrf.mxu1 }
 0x2ee   : > { %v4600_v48 = vadd.f32 %v3389_v25, %v547_v33 }
 0x2ef   : > { %v3700_v34 = vpop.f32.mrf.mxu1 }
 0x2f0   : > { %v575_v1 = vsel %vm173_vm2, %v4600_v48, 0.0  ;;  %v584_v8 = vsel %vm4656_vm5, %v4600_v48, 0.0 }
 0x2f1   : > { %v552_v35 = vpop.f32.mrf.mxu1 }
 0x2f2   : > { %v4602_v49 = vadd.f32 %v3389_v25, %v552_v35 }
 0x2f3   : > { %v3703_v36 = vpop.f32.mrf.mxu1 }
 0x2f4   : > { %v576_v54 = vsel %vm173_vm2, %v4602_v49, 0.0  ;;  %v585_v9 = vsel %vm4656_vm5, %v4602_v49, 0.0 }
 0x2f5   : > { %v557_v37 = vpop.f32.mrf.mxu1 }
 0x2f6   : > { %v4592_v45 = vadd.f32 %v3389_v25, %v557_v37 }
 0x2f7   : > { %v3706_v39 = vpop.f32.mrf.mxu1 }
 0x2f8   : > { %v577_v2 = vsel %vm173_vm2, %v4592_v45, 0.0  ;;  %v586_v11 = vsel %vm4656_vm5, %v4592_v45, 0.0 }
 0x2f9   : > { %v562_v40 = vpop.f32.mrf.mxu1 }
 0x2fa   : > { %v4588_v41 = vadd.f32 %v3389_v25, %v562_v40 }
 0x2fb   : > { %v3709_v42 = vpop.f32.mrf.mxu1 }
 0x2fc   : > { %606 = vrot.lane.b32.xlu1 %v4588_v41, %s4369_s6  ;;  %v578_v3 = vsel %vm173_vm2, %v4588_v41, 0.0  ;;  %v587_v63 = vsel %vm4656_vm5, %v4588_v41, 0.0 }
 0x2fd   : > { %v567_v43 = vpop.f32.mrf.mxu1 }
 0x2fe   : > { %v4594_v46 = vadd.f32 %v3389_v25, %v567_v43 }
 0x2ff   : > { %v3712_v47 = vpop.f32.mrf.mxu1 }
 0x300   : > { %604 = vrot.lane.b32.xlu1 %v4592_v45, %s4369_s6  ;;  %608 = vrot.lane.b32.xlu0 %v4594_v46, %s4369_s6  ;;  %v579_v4 = vsel %vm173_vm2, %v4594_v46, 0.0  ;;  %v588_v12 = vsel %vm4656_vm5, %v4594_v46, 0.0 }
 0x304   : > { %602 = vrot.lane.b32.xlu1 %v4602_v49, %s4369_s6  ;;  %600 = vrot.lane.b32.xlu0 %v4600_v48, %s4369_s6 }
 0x308   : > { %598 = vrot.lane.b32.xlu1 %v4608_v51, %s4369_s6  ;;  %596 = vrot.lane.b32.xlu0 %v4582_v28, %s4369_s6 }
 0x30c   : > { %984 = vrot.lane.b32.xlu1 %v4594_v46, %s4370_s7 }
 0x36e   : > { %v607_v52 = vpop.permute.xlu1 %606 }
 0x372   : > { %v605_v53 = vpop.permute.xlu1 %604  ;;  %v609_v55 = vpop.permute.xlu0 %608 }
 0x373   : > { %3713 = vmatprep.subr.msk.mxu0 %vm190_vm1, %v609_v55 }
 0x374   : > { %3714 = vmatpush3.xpose.msk.msra.mxu0 %vm190_vm1, %v609_v55 }
 0x375   : > { %3715 = vmatprep.subr.msk.mxu0 %vm190_vm1, %v607_v52 }
 0x376   : > { %v603_v56 = vpop.permute.xlu1 %602  ;;  %v601_v60 = vpop.permute.xlu0 %600 }
 0x378   : > { %3716 = vmatpush3.xpose.msk.msra.mxu0 %vm190_vm1, %v607_v52 }
 0x379   : > { %3717 = vmatprep.subr.msk.mxu0 %vm190_vm1, %v605_v53 }
 0x37a   : > { %v599_v57 = vpop.permute.xlu1 %598  ;;  %v597_v61 = vpop.permute.xlu0 %596 }
 0x37c   : > { %3718 = vmatpush3.xpose.msk.msra.mxu0 %vm190_vm1, %v605_v53 }
 0x37d   : > { %3719 = vmatprep.subr.msk.mxu0 %vm190_vm1, %v603_v56 }
 0x37e   : > { %v985_v59 = vpop.permute.xlu1 %984 }
 0x37f   : > { %3748 = vmatprep.subr.mxu1 %v985_v59 }
 0x380   : > { %3720 = vmatpush3.xpose.msk.msra.mxu0 %vm190_vm1, %v603_v56  ;;  %3749 = vmatpush3.msra.mxu1 %v985_v59 }
 0x381   : > { %3721 = vmatprep.subr.msk.mxu0 %vm190_vm1, %v601_v60 }
 0x384   : > { %3722 = vmatpush3.xpose.msk.msra.mxu0 %vm190_vm1, %v601_v60 }
 0x385   : > { %3723 = vmatprep.subr.msk.mxu0 %vm190_vm1, %v599_v57 }
 0x388   : > { %3724 = vmatpush3.xpose.msk.msra.mxu0 %vm190_vm1, %v599_v57 }
 0x389   : > { %3725 = vmatprep.subr.msk.mxu0 %vm190_vm1, %v597_v61 }
 0x38c   : > { %3726 = vmatpush3.xpose.msk.msra.mxu0 %vm190_vm1, %v597_v61 }
 0x38d   : > { %3783 = vmatprep.subr.mxu0 %v4367_v0 }
 0x38f   : > { %3728 = vmatmul.mubr.msk.f32.vlgmr.msra.gmra.mxu0 %vm190_vm1, %v574_v62 }
 0x390   : > { %3730 = vmatprep.mubr.msk.f32.mxu0 %vm190_vm1, %v575_v1 }
 0x393   : > { %3731 = vmatmul.mubr.msk.f32.gmra.mxu0 %vm190_vm1, %v576_v54 }
 0x394   : > { %3733 = vmatprep.mubr.msk.f32.mxu0 %vm190_vm1, %v577_v2 }
 0x397   : > { %3734 = vmatmul.mubr.msk.f32.gmra.mxu0 %vm190_vm1, %v578_v3 }
 0x398   : > { %3736 = vmatprep.mubr.msk.f32.mxu0 %vm190_vm1, %v579_v4 }
 0x39b   : > { %3737 = vmatmul.mubr.msk.f32.gmra.mxu0 %vm190_vm1, %v582_v58 }
 0x39c   : > { %3739 = vmatprep.mubr.msk.f32.mxu0 %vm190_vm1, %v583_v7 }
 0x39f   : > { %3740 = vmatmul.mubr.msk.f32.gmra.mxu0 %vm190_vm1, %v584_v8 }
 0x3a0   : > { %3742 = vmatprep.mubr.msk.f32.mxu0 %vm190_vm1, %v585_v9 }
 0x3a3   : > { %3743 = vmatmul.mubr.msk.f32.gmra.mxu0 %vm190_vm1, %v586_v11 }
 0x3a4   : > { %3745 = vmatprep.mubr.msk.f32.mxu0 %vm190_vm1, %v587_v63 }
 0x3a7   : > { %3746 = vmatmul.mubr.msk.f32.gmra.mxu0 %vm190_vm1, %v588_v12 }
 0x3a8   : > { %3785 = vmatprep.mubr.msk.f32.mxu0 %vm4368_vm0, %v4367_v0 }
 0x44f   : > { %v3729_v13 = vpop.f32.mrf.mxu0 }
 0x450   : > { %v804_v15 = vsel %vm178_vm6, %v3729_v13, -1e+30 }
 0x451   : > { %v732_v5 = vpop.f32.mrf.mxu0  ;;  %v821_v17 = vsel %vm817_vm7, %v804_v15, -inf }
 0x452   : > { %v4697_v18 = vsel %vm178_vm6, %v732_v5, -1e+30  ;;  %822 = vmax.xlane.f32.xlu0 %v821_v17 }
 0x453   : > { %v3732_v19 = vpop.f32.mrf.mxu0  ;;  %v818_v10 = vsel %vm817_vm7, %v4697_v18, -inf }
 0x454   : > { %v806_v21 = vsel %vm178_vm6, %v3732_v19, -1e+30  ;;  %819 = vmax.xlane.f32.xlu1 %v818_v10 }
 0x455   : > { %v742_v23 = vpop.f32.mrf.mxu0  ;;  %v827_v16 = vsel %vm817_vm7, %v806_v21, -inf }
 0x456   : > { %v4706_v25 = vsel %vm178_vm6, %v742_v23, -1e+30  ;;  %828 = vmax.xlane.f32.xlu0 %v827_v16 }
 0x457   : > { %v3735_v27 = vpop.f32.mrf.mxu0  ;;  %v824_v22 = vsel %vm817_vm7, %v4706_v25, -inf }
 0x458   : > { %v4712_v30 = vsel %vm178_vm6, %v3735_v27, -1e+30 }
 0x459   : > { %v752_v29 = vpop.f32.mrf.mxu0  ;;  %v833_v36 = vsel %vm817_vm7, %v4712_v30, -inf }
 0x45a   : > { %v807_v31 = vsel %vm178_vm6, %v752_v29, -1e+30  ;;  %825 = vmax.xlane.f32.xlu0 %v824_v22 }
 0x45b   : > { %v3738_v33 = vpop.f32.mrf.mxu0  ;;  %v830_v34 = vsel %vm817_vm7, %v807_v31, -inf }
 0x45c   : > { %831 = vmax.xlane.f32.xlu1 %v830_v34  ;;  %v4721_v37 = vsel %vm178_vm6, %v3738_v33, -1e+30 }
 0x45d   : > { %v762_v35 = vpop.f32.mrf.mxu0  ;;  %v839_v46 = vsel %vm817_vm7, %v4721_v37, -inf }
 0x45e   : > { %v809_v39 = vsel %vm178_vm6, %v762_v35, -1e+30  ;;  %834 = vmax.xlane.f32.xlu0 %v833_v36 }
 0x45f   : > { %v3741_v40 = vpop.f32.mrf.mxu0  ;;  %v836_v42 = vsel %vm817_vm7, %v809_v39, -inf }
 0x460   : > { %837 = vmax.xlane.f32.xlu1 %v836_v42  ;;  %v4730_v47 = vsel %vm178_vm6, %v3741_v40, -1e+30 }
 0x461   : > { %v772_v43 = vpop.f32.mrf.mxu0  ;;  %v845_v57 = vsel %vm817_vm7, %v4730_v47, -inf }
 0x462   : > { %v4734_v52 = vsel %vm178_vm6, %v772_v43, -1e+30  ;;  %840 = vmax.xlane.f32.xlu0 %v839_v46 }
 0x463   : > { %v3744_v53 = vpop.f32.mrf.mxu0  ;;  %v842_v55 = vsel %vm817_vm7, %v4734_v52, -inf }
 0x464   : > { %843 = vmax.xlane.f32.xlu1 %v842_v55  ;;  %v4742_v59 = vsel %vm178_vm6, %v3744_v53, -1e+30 }
 0x465   : > { %v782_v56 = vpop.f32.mrf.mxu0  ;;  %v851_v1 = vsel %vm817_vm7, %v4742_v59, -inf }
 0x466   : > { %v4746_v60 = vsel %vm178_vm6, %v782_v56, -1e+30  ;;  %846 = vmax.xlane.f32.xlu0 %v845_v57 }
 0x467   : > { %v3747_v61 = vpop.f32.mrf.mxu0  ;;  %v848_v62 = vsel %vm817_vm7, %v4746_v60, -inf }
 0x468   : > { %849 = vmax.xlane.f32.xlu1 %v848_v62  ;;  %v4754_v54 = vsel %vm178_vm6, %v3747_v61, -1e+30 }
 0x469   : > { %v857_v2 = vsel %vm817_vm7, %v4754_v54, -inf  ;;  %v792_v3 = vpop.f32.mrf.mxu0 }
 0x46a   : > { %852 = vmax.xlane.f32.xlu0 %v851_v1  ;;  %v4766_v4 = vsel %vm178_vm6, %v792_v3, -1e+30 }
 0x46b   : > { %v854_v58 = vsel %vm817_vm7, %v4766_v4, -inf }
 0x46e   : > { %858 = vmax.xlane.f32.xlu0 %v857_v2 }
 0x479   : > { %980 = vrot.lane.b32.xlu1 %v4592_v45, %s4370_s7 }
 0x47d   : > { %978 = vrot.lane.b32.xlu1 %v4602_v49, %s4370_s7 }
 0x484   : > { %982 = vrot.lane.b32.xlu0 %v4588_v41, %s4370_s7 }
 0x4a1   : > { %855 = vmax.xlane.f32.xlu1 %v854_v58 }
 0x4b2   : > { %976 = vrot.lane.b32.xlu1 %v4600_v48, %s4370_s7 }
 0x4db   : > { %v823_v7 = vpop.xlane.xlu0 %822 }
 0x4dc   : > { %v861_v45 = vsub.f32 %v804_v15, %v823_v7 }
 0x4dd   : > { %v820_v8 = vpop.xlane.xlu1 %819 }
 0x4de   : > { %v876_v9 = vmul.f32 1.442695, %v861_v45  ;;  %v860_v49 = vsub.f32 %v4697_v18, %v820_v8 }
 0x4df   : > { %v829_v11 = vpop.xlane.xlu0 %828 }
 0x4e0   : > { %4058 = vpow2.f32 %v876_v9  ;;  %v874_v41 = vmul.f32 1.442695, %v860_v49  ;;  %v863_v63 = vsub.f32 %v806_v21, %v829_v11 }
 0x4e2   : > { %4060 = vpow2.f32 %v874_v41  ;;  %v880_v12 = vmul.f32 1.442695, %v863_v63 }
 0x4e3   : > { %v826_v13 = vpop.xlane.xlu0 %825 }
 0x4e4   : > { %4062 = vpow2.f32 %v880_v12  ;;  %v862_v5 = vsub.f32 %v4706_v25, %v826_v13 }
 0x4e5   : > { %v832_v17 = vpop.xlane.xlu1 %831 }
 0x4e6   : > { %v878_v19 = vmul.f32 1.442695, %v862_v5  ;;  %v864_v10 = vsub.f32 %v807_v31, %v832_v17 }
 0x4e7   : > { %v835_v48 = vpop.xlane.xlu0 %834 }
 0x4e8   : > { %4064 = vpow2.f32 %v878_v19  ;;  %v882_v15 = vmul.f32 1.442695, %v864_v10  ;;  %v865_v23 = vsub.f32 %v4712_v30, %v835_v48 }
 0x4e9   : > { %v838_v16 = vpop.xlane.xlu1 %837 }
 0x4ea   : > { %4066 = vpow2.f32 %v882_v15  ;;  %v884_v18 = vmul.f32 1.442695, %v865_v23  ;;  %v866_v27 = vsub.f32 %v809_v39, %v838_v16 }
 0x4eb   : > { %v841_v29 = vpop.xlane.xlu0 %840 }
 0x4ec   : > { %4068 = vpow2.f32 %v884_v18  ;;  %v886_v21 = vmul.f32 1.442695, %v866_v27  ;;  %v867_v22 = vsub.f32 %v4721_v37, %v841_v29 }
 0x4ed   : > { %v4776_v33 = vpop.eup %4058  ;;  %v844_v25 = vpop.xlane.xlu1 %843 }
 0x4ee   : > { %v888_v34 = vmul.f32 1.442695, %v867_v22  ;;  %v868_v31 = vsub.f32 %v4734_v52, %v844_v25  ;;  %v905_v35 = vsel %vm817_vm7, %v4776_v33, 0.0  ;;  %4070 = vpow2.f32 %v886_v21 }
 0x4ef   : > { %v4781_v36 = vpop.eup %4060  ;;  %v847_v30 = vpop.xlane.xlu0 %846  ;;  %906 = vadd.xlane.f32.xlu0 %v905_v35 }
 0x4f0   : > { %4072 = vpow2.f32 %v888_v34  ;;  %v869_v39 = vsub.f32 %v4730_v47, %v847_v30  ;;  %v902_v37 = vsel %vm817_vm7, %v4781_v36, 0.0  ;;  %v890_v42 = vmul.f32 1.442695, %v868_v31 }
 0x4f1   : > { %v4786_v40 = vpop.eup %4062  ;;  %v850_v43 = vpop.xlane.xlu1 %849  ;;  %903 = vadd.xlane.f32.xlu1 %v902_v37 }
 0x4f2   : > { %v892_v46 = vmul.f32 1.442695, %v869_v39  ;;  %v870_v52 = vsub.f32 %v4746_v60, %v850_v43  ;;  %v911_v53 = vsel %vm817_vm7, %v4786_v40, 0.0 }
 0x4f3   : > { %v853_v55 = vpop.xlane.xlu0 %852  ;;  %912 = vadd.xlane.f32.xlu0 %v911_v53 }
 0x4f4   : > { %4074 = vpow2.f32 %v892_v46  ;;  %v894_v56 = vmul.f32 1.442695, %v870_v52  ;;  %v871_v47 = vsub.f32 %v4742_v59, %v853_v55 }
 0x4f5   : > { %v4792_v57 = vpop.eup %4064  ;;  %4076 = vpow2.f32 %v890_v42  ;;  %v981_v3 = vpop.permute.xlu1 %980 }
 0x4f6   : > { %4078 = vpow2.f32 %v894_v56  ;;  %v896_v61 = vmul.f32 1.442695, %v871_v47  ;;  %v908_v62 = vsel %vm817_vm7, %v4792_v57, 0.0 }
 0x4f7   : > { %v4796_v1 = vpop.eup %4066  ;;  %v859_v60 = vpop.xlane.xlu0 %858  ;;  %909 = vadd.xlane.f32.xlu1 %v908_v62 }
 0x4f8   : > { %4080 = vpow2.f32 %v896_v61  ;;  %v914_v59 = vsel %vm817_vm7, %v4796_v1, 0.0  ;;  %v873_v48 = vsub.f32 %v4754_v54, %v859_v60 }
 0x4f9   : > { %v4798_v2 = vpop.eup %4068  ;;  %v979_v49 = vpop.permute.xlu1 %978 }
 0x4fa   : > { %v917_v58 = vsel %vm817_vm7, %v4798_v2, 0.0  ;;  %v900_v15 = vmul.f32 1.442695, %v873_v48 }
 0x4fb   : > { %918 = vadd.xlane.f32.xlu0 %v917_v58  ;;  %v983_v7 = vpop.permute.xlu0 %982  ;;  %915 = vadd.xlane.f32.xlu1 %v914_v59  ;;  %v4804_v45 = vpop.eup %4070 }
 0x4fc   : > { %3750 = vmatprep.subr.mxu1 %v983_v7  ;;  %v920_v11 = vsel %vm817_vm7, %v4804_v45, 0.0  ;;  %4082 = vpow2.f32 %v900_v15 }
 0x4fd   : > { %v4806_v8 = vpop.eup %4072  ;;  %3751 = vmatpush3.msra.mxu1 %v983_v7 }
 0x4fe   : > { %3752 = vmatprep.subr.mxu1 %v981_v3  ;;  %v923_v9 = vsel %vm817_vm7, %v4806_v8, 0.0 }
 0x4ff   : > { %924 = vadd.xlane.f32.xlu0 %v923_v9  ;;  %3753 = vmatpush3.msra.mxu1 %v981_v3 }
 0x500   : > { %921 = vadd.xlane.f32.xlu1 %v920_v11  ;;  %3754 = vmatprep.subr.mxu1 %v979_v49 }
 0x501   : > { %v4812_v41 = vpop.eup %4074  ;;  %3755 = vmatpush3.msra.mxu1 %v979_v49 }
 0x502   : > { %v4814_v63 = vpop.eup %4076  ;;  %v929_v12 = vsel %vm817_vm7, %v4812_v41, 0.0 }
 0x503   : > { %v4818_v13 = vpop.eup %4078  ;;  %930 = vadd.xlane.f32.xlu0 %v929_v12  ;;  %v926_v17 = vsel %vm817_vm7, %v4814_v63, 0.0 }
 0x504   : > { %v932_v5 = vsel %vm817_vm7, %v4818_v13, 0.0 }
 0x505   : > { %933 = vadd.xlane.f32.xlu1 %v932_v5  ;;  %v4824_v19 = vpop.eup %4080 }
 0x506   : > { %v935_v10 = vsel %vm817_vm7, %v4824_v19, 0.0 }
 0x507   : > { %927 = vadd.xlane.f32.xlu0 %v926_v17 }
 0x509   : > { %v4834_v29 = vpop.eup %4082 }
 0x50b   : > { %936 = vadd.xlane.f32.xlu0 %v935_v10 }
 0x516   : > { %972 = vrot.lane.b32.xlu1 %v4582_v28, %s4370_s7 }
 0x521   : > { %974 = vrot.lane.b32.xlu0 %v4608_v51, %s4370_s7  ;;  %v941_v51 = vsel %vm817_vm7, %v4834_v29, 0.0 }
 0x52a   : > { %v856_v23 = vpop.xlane.xlu1 %855 }
 0x52b   : > { %v872_v16 = vsub.f32 %v4766_v4, %v856_v23 }
 0x52d   : > { %v898_v18 = vmul.f32 1.442695, %v872_v16 }
 0x52e   : > { %v977_v27 = vpop.permute.xlu1 %976 }
 0x52f   : > { %4084 = vpow2.f32 %v898_v18  ;;  %3756 = vmatprep.subr.mxu1 %v977_v27 }
 0x530   : > { %3757 = vmatpush3.msra.mxu1 %v977_v27 }
 0x53c   : > { %v4836_v21 = vpop.eup %4084 }
 0x53d   : > { %v938_v28 = vsel %vm817_vm7, %v4836_v21, 0.0 }
 0x53e   : > { %939 = vadd.xlane.f32.xlu1 %v938_v28 }
 0x540   : > { %942 = vadd.xlane.f32.xlu0 %v941_v51 }
 0x578   : > { %v907_v54 = vpop.xlane.xlu0 %906 }
 0x57a   : > { %v904_v4 = vpop.xlane.xlu1 %903 }
 0x57b   : > { %4086 = vrcp.f32 %v904_v4 }
 0x57c   : > { %v913_v22 = vpop.xlane.xlu0 %912  ;;  %4088 = vrcp.f32 %v907_v54 }
 0x580   : > { %v910_v25 = vpop.xlane.xlu1 %909 }
 0x581   : > { %4090 = vrcp.f32 %v910_v25 }
 0x582   : > { %4092 = vrcp.f32 %v913_v22 }
 0x584   : > { %v919_v34 = vpop.xlane.xlu0 %918  ;;  %v916_v39 = vpop.xlane.xlu1 %915 }
 0x585   : > { %4094 = vrcp.f32 %v916_v39 }
 0x586   : > { %4096 = vrcp.f32 %v919_v34 }
 0x588   : > { %v4087_v31 = vpop.eup %4086  ;;  %v925_v35 = vpop.xlane.xlu0 %924 }
 0x589   : > { %v958_v30 = vmul.f32 %v4087_v31, %v4781_v36  ;;  %v922_v42 = vpop.xlane.xlu1 %921  ;;  %v4089_v53 = vpop.eup %4088 }
 0x58a   : > { %4098 = vrcp.f32 %v922_v42  ;;  %v959_v47 = vmul.f32 %v4089_v53, %v4776_v33 }
 0x58b   : > { %3762 = vmatprep.mubr.msk.f32.mxu1 %vm817_vm7, %v958_v30  ;;  %4100 = vrcp.f32 %v925_v35 }
 0x58c   : > { %v931_v37 = vpop.xlane.xlu0 %930 }
 0x58e   : > { %v934_v46 = vpop.xlane.xlu1 %933  ;;  %v4091_v56 = vpop.eup %4090 }
 0x58f   : > { %v4093_v61 = vpop.eup %4092  ;;  %v960_v62 = vmul.f32 %v4091_v56, %v4792_v57 }
 0x590   : > { %v928_v43 = vpop.xlane.xlu0 %927  ;;  %v961_v3 = vmul.f32 %v4093_v61, %v4786_v40 }
 0x591   : > { %4102 = vrcp.f32 %v928_v43 }
 0x592   : > { %v973_v36 = vpop.permute.xlu1 %972  ;;  %4104 = vrcp.f32 %v931_v37  ;;  %v4095_v60 = vpop.eup %4094 }
 0x593   : > { %4106 = vrcp.f32 %v934_v46  ;;  %v4097_v58 = vpop.eup %4096  ;;  %v962_v33 = vmul.f32 %v4095_v60, %v4796_v1 }
 0x594   : > { %v937_v52 = vpop.xlane.xlu0 %936  ;;  %v963_v57 = vmul.f32 %v4097_v58, %v4798_v2 }
 0x595   : > { %4108 = vrcp.f32 %v937_v52 }
 0x597   : > { %v4099_v59 = vpop.eup %4098 }
 0x598   : > { %v975_v55 = vpop.permute.xlu0 %974  ;;  %v4101_v7 = vpop.eup %4100  ;;  %v964_v9 = vmul.f32 %v4099_v59, %v4804_v45 }
 0x599   : > { %3758 = vmatprep.subr.mxu1 %v975_v55  ;;  %v965_v40 = vmul.f32 %v4101_v7, %v4806_v8 }
 0x59a   : > { %3759 = vmatpush3.msra.mxu1 %v975_v55 }
 0x59b   : > { %3760 = vmatprep.subr.mxu1 %v973_v36 }
 0x59c   : > { %3761 = vmatpush3.msra.mxu1 %v973_v36 }
 0x59d   : > { %3763 = vmatmul.mubr.msk.f32.vlgmr.msra.gmra.mxu1 %vm817_vm7, %v959_v47  ;;  %3985 = vmatprep.subr.mxu1 %v4367_v0 }
 0x59e   : > { %3765 = vmatprep.mubr.msk.f32.mxu1 %vm817_vm7, %v960_v62  ;;  %v4103_v49 = vpop.eup %4102 }
 0x59f   : > { %v4105_v11 = vpop.eup %4104  ;;  %v966_v1 = vmul.f32 %v4103_v49, %v4814_v63 }
 0x5a0   : > { %v4107_v12 = vpop.eup %4106  ;;  %v967_v2 = vmul.f32 %v4105_v11, %v4812_v41 }
 0x5a1   : > { %3766 = vmatmul.mubr.msk.f32.gmra.mxu1 %vm817_vm7, %v961_v3  ;;  %v968_v45 = vmul.f32 %v4107_v12, %v4818_v13 }
 0x5a2   : > { %3768 = vmatprep.mubr.msk.f32.mxu1 %vm817_vm7, %v962_v33  ;;  %v4109_v5 = vpop.eup %4108 }
 0x5a3   : > { %v969_v17 = vmul.f32 %v4109_v5, %v4824_v19 }
 0x5a5   : > { %3769 = vmatmul.mubr.msk.f32.gmra.mxu1 %vm817_vm7, %v963_v57 }
 0x5a6   : > { %3771 = vmatprep.mubr.msk.f32.mxu1 %vm817_vm7, %v964_v9 }
 0x5a9   : > { %3772 = vmatmul.mubr.msk.f32.gmra.mxu1 %vm817_vm7, %v965_v40 }
 0x5aa   : > { %3774 = vmatprep.mubr.msk.f32.mxu1 %vm817_vm7, %v966_v1 }
 0x5ad   : > { %3775 = vmatmul.mubr.msk.f32.gmra.mxu1 %vm817_vm7, %v967_v2 }
 0x5ae   : > { %3777 = vmatprep.mubr.msk.f32.mxu1 %vm817_vm7, %v968_v45 }
 0x5b1   : > { %3778 = vmatmul.mubr.msk.f32.gmra.mxu1 %vm817_vm7, %v969_v17 }
 0x5c7   : > { %v940_v8 = vpop.xlane.xlu1 %939 }
 0x5c8   : > { %4110 = vrcp.f32 %v940_v8 }
 0x5c9   : > { %v943_v63 = vpop.xlane.xlu0 %942 }
 0x5ca   : > { %4112 = vrcp.f32 %v943_v63 }
 0x5d5   : > { %v4111_v10 = vpop.eup %4110 }
 0x5d6   : > { %v970_v48 = vmul.f32 %v4111_v10, %v4836_v21 }
 0x5d7   : > { %v4113_v15 = vpop.eup %4112 }
 0x5d8   : > { %3780 = vmatprep.mubr.msk.f32.mxu1 %vm817_vm7, %v970_v48  ;;  %v971_v41 = vmul.f32 %v4113_v15, %v4834_v29 }
 0x5da   : > { %3781 = vmatmul.mubr.msk.f32.gmra.mxu1 %vm817_vm7, %v971_v41 }
 0x5db   : > { %3797 = vmatprep.mubr.msk.f32.mxu1 %vm4368_vm0, %v4367_v0 }
 0x65d   : > { %v3764_v13 = vpop.f32.mrf.mxu1 }
 0x65e   : > { %v1171_v39 = vsel %vm173_vm2, %v3764_v13, 0.0 }
 0x65f   : > { %v1101_v19 = vpop.f32.mrf.mxu1 }
 0x660   : > { %v1170_v21 = vsel %vm173_vm2, %v1101_v19, 0.0 }
 0x661   : > { %v3767_v23 = vpop.f32.mrf.mxu1 }
 0x663   : > { %v1111_v16 = vpop.f32.mrf.mxu1 }
 0x664   : > { %v1172_v25 = vsel %vm173_vm2, %v1111_v16, 0.0 }
 0x665   : > { %v3770_v18 = vpop.f32.mrf.mxu1 }
 0x667   : > { %v1121_v27 = vpop.f32.mrf.mxu1 }
 0x668   : > { %v1174_v46 = vsel %vm173_vm2, %v1121_v27, 0.0 }
 0x669   : > { %v3773_v28 = vpop.f32.mrf.mxu1 }
 0x66a   : > { %v1177_v51 = vsel %vm4656_vm5, %v3773_v28, 0.0 }
 0x66b   : > { %v1184_v54 = vadd.f32 %v1177_v51, %v1170_v21  ;;  %v1131_v29 = vpop.f32.mrf.mxu1 }
 0x66d   : > { %v4878_v4 = vadd.f32 %v1184_v54, %v4483_v14  ;;  %v3776_v22 = vpop.f32.mrf.mxu1 }
 0x66e   : > { %v1179_v34 = vsel %vm4656_vm5, %v3776_v22, 0.0 }
 0x66f   : > { %v1186_v31 = vadd.f32 %v1179_v34, %v1172_v25  ;;  %v1141_v35 = vpop.f32.mrf.mxu1  ;;  %v1198_v30 = vsel %vm190_vm1, %v4878_v4, 0.0  ;;  %v325_v34 = vld [vmem:[#allocation2 + $0x70] sm:$0xff] }
 0x670   : > { %v1178_v37 = vsel %vm4656_vm5, %v1141_v35, 0.0  ;;  %1199 = vadd.xlane.f32.xlu0 %v1198_v30  ;;  %3784 = vmatpush3.msra.mxu0 %v325_v34 }
 0x671   : > { %v4891_v14 = vadd.f32 %v1186_v31, %v4491_v26  ;;  %v1185_v42 = vadd.f32 %v1178_v37, %v1171_v39  ;;  %v3779_v43 = vpop.f32.mrf.mxu1  ;;  %v1173_v26 = vsel %vm173_vm2, %v3767_v23, 0.0  ;;  %3986 = vmatpush3.msra.mxu1 %v325_v34  ;;  %3835 = vmatprep.subr.mxu0 %v4367_v0 }
 0x672   : > { %v1181_v52 = vsel %vm4656_vm5, %v3779_v43, 0.0  ;;  %3806 = vmatprep.subr.mxu1 %v4367_v0 }
 0x673   : > { %v4898_v53 = vadd.f32 %v1185_v42, %v4487_v20  ;;  %v1188_v55 = vadd.f32 %v1181_v52, %v1174_v46  ;;  %v1151_v56 = vpop.f32.mrf.mxu1  ;;  %v1204_v36 = vsel %vm190_vm1, %v4891_v14, 0.0 }
 0x674   : > { %v1180_v47 = vsel %vm4656_vm5, %v1151_v56, 0.0  ;;  %1205 = vadd.xlane.f32.xlu0 %v1204_v36 }
 0x675   : > { %v4907_v61 = vadd.f32 %v1188_v55, %v4499_v38  ;;  %v1187_v62 = vadd.f32 %v1180_v47, %v1173_v26  ;;  %v1201_v20 = vsel %vm190_vm1, %v4898_v53, 0.0  ;;  %v1176_v38 = vsel %vm173_vm2, %v1131_v29, 0.0 }
 0x676   : > { %1202 = vadd.xlane.f32.xlu1 %v1201_v20 }
 0x677   : > { %v4912_v60 = vadd.f32 %v1187_v62, %v4495_v32  ;;  %v1210_v3 = vsel %vm190_vm1, %v4907_v61, 0.0  ;;  %v1175_v32 = vsel %vm173_vm2, %v3770_v18, 0.0 }
 0x678   : > { %1211 = vadd.xlane.f32.xlu0 %v1210_v3 }
 0x679   : > { %v1207_v58 = vsel %vm190_vm1, %v4912_v60, 0.0 }
 0x67a   : > { %1208 = vadd.xlane.f32.xlu1 %v1207_v58 }
 0x69a   : > { %v3782_v33 = vpop.f32.mrf.mxu1 }
 0x69b   : > { %v1183_v59 = vsel %vm4656_vm5, %v3782_v33, 0.0 }
 0x69c   : > { %v1190_v57 = vadd.f32 %v1183_v59, %v1176_v38  ;;  %v1161_v7 = vpop.f32.mrf.mxu1 }
 0x69d   : > { %v1182_v9 = vsel %vm4656_vm5, %v1161_v7, 0.0 }
 0x69e   : > { %v4927_v49 = vadd.f32 %v1190_v57, %v4507_v50  ;;  %v1189_v40 = vadd.f32 %v1182_v9, %v1175_v32 }
 0x6a0   : > { %v4930_v11 = vadd.f32 %v1189_v40, %v4503_v44  ;;  %v1216_v1 = vsel %vm190_vm1, %v4927_v49, 0.0 }
 0x6a1   : > { %1217 = vadd.xlane.f32.xlu0 %v1216_v1  ;;  %v3432_v1 = vld [vmem:[#allocation2 + $0x5a] ss:$0 sm:$0xff] }
 0x6a2   : > { %v1213_v12 = vsel %vm190_vm1, %v4930_v11, 0.0 }
 0x6a3   : > { %1214 = vadd.xlane.f32.xlu1 %v1213_v12 }
 0x6f9   : > { %v1200_v2 = vpop.xlane.xlu0 %1199 }
 0x6fa   : > { %v1219_v5 = vmul.f32 0.125, %v1200_v2  ;;  %v3433_v2 = vld [vmem:[#allocation2 + $0x5b] ss:$0 sm:$0xff] }
 0x6fc   : > { %v4937_v45 = vsub.f32 %v4878_v4, %v1219_v5 }
 0x6fd   : > { %v1206_v17 = vpop.xlane.xlu0 %1205 }
 0x6fe   : > { %v1221_v50 = vmul.f32 0.125, %v1206_v17  ;;  %v1233_v8 = vmul.f32 %v4937_v45, %v4937_v45 }
 0x6ff   : > { %v1203_v44 = vpop.xlane.xlu1 %1202 }
 0x700   : > { %v4942_v63 = vsub.f32 %v4891_v14, %v1221_v50  ;;  %v1220_v10 = vmul.f32 0.125, %v1203_v44  ;;  %v1240_v48 = vsel %vm190_vm1, %v1233_v8, 0.0 }
 0x701   : > { %v1212_v15 = vpop.xlane.xlu0 %1211  ;;  %1241 = vadd.xlane.f32.xlu1 %v1240_v48 }
 0x702   : > { %v4946_v41 = vsub.f32 %v4898_v53, %v1220_v10  ;;  %v1223_v13 = vmul.f32 0.125, %v1212_v15  ;;  %v1235_v19 = vmul.f32 %v4942_v63, %v4942_v63 }
 0x703   : > { %v1209_v23 = vpop.xlane.xlu1 %1208 }
 0x704   : > { %v4951_v16 = vsub.f32 %v4907_v61, %v1223_v13  ;;  %v1222_v18 = vmul.f32 0.125, %v1209_v23  ;;  %v1246_v27 = vsel %vm190_vm1, %v1235_v19, 0.0  ;;  %v1234_v28 = vmul.f32 %v4946_v41, %v4946_v41 }
 0x705   : > { %1247 = vadd.xlane.f32.xlu1 %v1246_v27 }
 0x706   : > { %v4957_v21 = vsub.f32 %v4912_v60, %v1222_v18  ;;  %v1243_v51 = vsel %vm190_vm1, %v1234_v28, 0.0  ;;  %v1237_v54 = vmul.f32 %v4951_v16, %v4951_v16 }
 0x707   : > { %1244 = vadd.xlane.f32.xlu0 %v1243_v51 }
 0x708   : > { %v1252_v29 = vsel %vm190_vm1, %v1237_v54, 0.0  ;;  %v1236_v22 = vmul.f32 %v4957_v21, %v4957_v21 }
 0x709   : > { %1253 = vadd.xlane.f32.xlu1 %v1252_v29 }
 0x70a   : > { %v1249_v25 = vsel %vm190_vm1, %v1236_v22, 0.0 }
 0x70b   : > { %1250 = vadd.xlane.f32.xlu0 %v1249_v25 }
 0x72a   : > { %v1218_v31 = vpop.xlane.xlu0 %1217 }
 0x72b   : > { %v1225_v35 = vmul.f32 0.125, %v1218_v31 }
 0x72c   : > { %v1215_v30 = vpop.xlane.xlu1 %1214 }
 0x72d   : > { %v4969_v39 = vsub.f32 %v4927_v49, %v1225_v35  ;;  %v1224_v37 = vmul.f32 0.125, %v1215_v30 }
 0x72f   : > { %v4972_v42 = vsub.f32 %v4930_v11, %v1224_v37  ;;  %v1239_v43 = vmul.f32 %v4969_v39, %v4969_v39 }
 0x731   : > { %v1258_v46 = vsel %vm190_vm1, %v1239_v43, 0.0  ;;  %v1238_v52 = vmul.f32 %v4972_v42, %v4972_v42 }
 0x732   : > { %1259 = vadd.xlane.f32.xlu1 %v1258_v46 }
 0x733   : > { %v1255_v55 = vsel %vm190_vm1, %v1238_v52, 0.0 }
 0x734   : > { %1256 = vadd.xlane.f32.xlu0 %v1255_v55  ;;  %v330_v55 = vld [vmem:[#allocation2 + $0x98] sm:$0xff] }
 0x78a   : > { %v1242_v56 = vpop.xlane.xlu1 %1241 }
 0x78b   : > { %v1261_v36 = vmul.f32 0.125, %v1242_v56  ;;  %v327_v56 = vld [vmem:[#allocation2 + $0x80] sm:$0xff] }
 0x78d   : > { %v1268_v26 = vadd.f32 1e-05, %v1261_v36  ;;  %v5011_v36 = vld [vmem:[#allocation2 + $0x78] ss:$0 sm:$0xff] }
 0x78e   : > { %v1248_v47 = vpop.xlane.xlu1 %1247 }
 0x78f   : > { %4114 = vrsqrt.f32 %v1268_v26  ;;  %v1263_v62 = vmul.f32 0.125, %v1248_v47 }
 0x790   : > { %v1245_v20 = vpop.xlane.xlu0 %1244 }
 0x791   : > { %v1270_v3 = vadd.f32 1e-05, %v1263_v62  ;;  %v1262_v58 = vmul.f32 0.125, %v1245_v20 }
 0x792   : > { %v1254_v33 = vpop.xlane.xlu1 %1253 }
 0x793   : > { %4116 = vrsqrt.f32 %v1270_v3  ;;  %v1269_v38 = vadd.f32 1e-05, %v1262_v58  ;;  %v1265_v59 = vmul.f32 0.125, %v1254_v33 }
 0x794   : > { %v1251_v57 = vpop.xlane.xlu0 %1250 }
 0x795   : > { %4118 = vrsqrt.f32 %v1269_v38  ;;  %v1272_v7 = vadd.f32 1e-05, %v1265_v59  ;;  %v1264_v32 = vmul.f32 0.125, %v1251_v57 }
 0x797   : > { %4120 = vrsqrt.f32 %v1272_v7  ;;  %v1271_v9 = vadd.f32 1e-05, %v1264_v32 }
 0x799   : > { %4122 = vrsqrt.f32 %v1271_v9 }
 0x79c   : > { %v4115_v40 = vpop.eup %4114 }
 0x79d   : > { %v1282_v12 = vmul.f32 %v4115_v40, %v4937_v45 }
 0x79f   : > { %v1293_v5 = vmul.f32 %v3432_v1, %v1282_v12 }
 0x7a0   : > { %v4117_v17 = vpop.eup %4116 }
 0x7a1   : > { %v1304_v50 = vadd.f32 %v3433_v2, %v1293_v5  ;;  %v1284_v10 = vmul.f32 %v4117_v17, %v4942_v63 }
 0x7a2   : > { %v4119_v8 = vpop.eup %4118 }
 0x7a3   : > { %3786 = vmatmul.mubr.msk.f32.vlgmr.msra.gmra.mxu0 %vm190_vm1, %v1304_v50  ;;  %v1283_v44 = vmul.f32 %v4119_v8, %v4946_v41  ;;  %v1295_v18 = vmul.f32 %v3432_v1, %v1284_v10 }
 0x7a4   : > { %v4121_v48 = vpop.eup %4120  ;;  %3788 = vmatprep.mubr.msk.f32.mxu0 %vm4368_vm0, %v4367_v0 }
 0x7a5   : > { %v1286_v15 = vmul.f32 %v4121_v48, %v4951_v16  ;;  %v1294_v13 = vmul.f32 %v3432_v1, %v1283_v44  ;;  %v1306_v63 = vadd.f32 %v3433_v2, %v1295_v18 }
 0x7a6   : > { %v4123_v19 = vpop.eup %4122 }
 0x7a7   : > { %v1297_v45 = vmul.f32 %v3432_v1, %v1286_v15  ;;  %v1305_v23 = vadd.f32 %v3433_v2, %v1294_v13  ;;  %v1285_v27 = vmul.f32 %v4123_v19, %v4957_v21 }
 0x7a9   : > { %3789 = vmatmul.mubr.msk.f32.gmra.mxu0 %vm190_vm1, %v1305_v23  ;;  %v1308_v28 = vadd.f32 %v3433_v2, %v1297_v45  ;;  %v1296_v41 = vmul.f32 %v3432_v1, %v1285_v27 }
 0x7aa   : > { %3791 = vmatprep.mubr.msk.f32.mxu0 %vm4368_vm0, %v4367_v0 }
 0x7ab   : > { %3798 = vmatmul.mubr.msk.f32.vlgmr.msra.gmra.mxu1 %vm190_vm1, %v1308_v28  ;;  %v1307_v16 = vadd.f32 %v3433_v2, %v1296_v41 }
 0x7ac   : > { %3800 = vmatprep.mubr.msk.f32.mxu1 %vm4368_vm0, %v4367_v0  ;;  %3807 = vmatpush3.msra.mxu1 %v330_v55 }
 0x7ad   : > { %3792 = vmatmul.mubr.msk.f32.gmra.mxu0 %vm190_vm1, %v1306_v63  ;;  %3808 = vmatprep.subr.mxu1 %v4367_v0 }
 0x7ae   : > { %3794 = vmatprep.mubr.msk.f32.mxu0 %vm4368_vm0, %v4367_v0 }
 0x7b1   : > { %3795 = vmatmul.mubr.msk.f32.gmra.mxu0 %vm190_vm1, %v1307_v16 }
 0x7b2   : > { %3837 = vmatprep.mubr.msk.f32.mxu0 %vm4368_vm0, %v4367_v0 }
 0x7bb   : > { %v1260_v21 = vpop.xlane.xlu1 %1259 }
 0x7bc   : > { %v1267_v51 = vmul.f32 0.125, %v1260_v21 }
 0x7bd   : > { %v1257_v54 = vpop.xlane.xlu0 %1256 }
 0x7be   : > { %v1274_v29 = vadd.f32 1e-05, %v1267_v51  ;;  %v1266_v22 = vmul.f32 0.125, %v1257_v54 }
 0x7c0   : > { %4124 = vrsqrt.f32 %v1274_v29  ;;  %v1273_v25 = vadd.f32 1e-05, %v1266_v22 }
 0x7c2   : > { %4126 = vrsqrt.f32 %v1273_v25 }
 0x7cd   : > { %v4125_v34 = vpop.eup %4124 }
 0x7ce   : > { %v1288_v30 = vmul.f32 %v4125_v34, %v4969_v39  ;;  %v328_v39 = vld [vmem:[#allocation2 + $0x88] sm:$0xff] }
 0x7cf   : > { %v4127_v31 = vpop.eup %4126 }
 0x7d0   : > { %v1287_v35 = vmul.f32 %v4127_v31, %v4972_v42  ;;  %v1299_v46 = vmul.f32 %v3432_v1, %v1288_v30  ;;  %v329_v42 = vld [vmem:[#allocation2 + $0x90] sm:$0xff] }
 0x7d1   : > { %3809 = vmatpush3.msra.mxu1 %v329_v42 }
 0x7d2   : > { %v1298_v37 = vmul.f32 %v3432_v1, %v1287_v35  ;;  %v1310_v52 = vadd.f32 %v3433_v2, %v1299_v46  ;;  %3810 = vmatprep.subr.mxu1 %v4367_v0 }
 0x7d3   : > { %3811 = vmatpush3.msra.mxu1 %v328_v39 }
 0x7d4   : > { %v1309_v43 = vadd.f32 %v3433_v2, %v1298_v37  ;;  %3812 = vmatprep.subr.mxu1 %v4367_v0 }
 0x7d5   : > { %3813 = vmatpush3.msra.mxu1 %v327_v56 }
 0x7d6   : > { %3801 = vmatmul.mubr.msk.f32.gmra.mxu1 %vm190_vm1, %v1309_v43 }
 0x7d7   : > { %3803 = vmatprep.mubr.msk.f32.mxu1 %vm4368_vm0, %v4367_v0 }
 0x7da   : > { %3804 = vmatmul.mubr.msk.f32.gmra.mxu1 %vm190_vm1, %v1310_v52 }
 0x7db   : > { %3814 = vmatprep.mubr.msk.f32.mxu1 %vm4368_vm0, %v4367_v0 }
 0x863   : > { %v1402_v26 = vpop.f32.mrf.mxu0 }
 0x864   : > { %v5014_v47 = vadd.f32 %v5011_v36, %v1402_v26 }
 0x865   : > { %v3787_v62 = vpop.f32.mrf.mxu0 }
 0x866   : > { %v5017_v20 = vmul.f32 0.70710677, %v5014_v47 }
 0x868   : > { %v1464_v3 = vand.u32 2147483647, %v5017_v20  ;;  %vm1450_vm8 = vcmp.ge.f32.partialorder %v5017_v20, 0.0 }
 0x869   : > { %v1407_v58 = vpop.f32.mrf.mxu0 }
 0x86a   : > { %v1471_v33 = vmul.f32 0.3275911, %v1464_v3  ;;  %v5021_v38 = vadd.f32 %v5011_v36, %v1407_v58  ;;  %v1555_v23 = vsub.f32 0.0, %v1464_v3 }
 0x86b   : > { %v3790_v59 = vpop.f32.mrf.mxu0  ;;  %v1422_v57 = vpop.f32.mrf.mxu1 }
 0x86c   : > { %v1478_v7 = vadd.f32 1.0, %v1471_v33  ;;  %v5024_v32 = vmul.f32 0.70710677, %v5021_v38  ;;  %v5027_v9 = vadd.f32 %v5011_v36, %v1422_v57  ;;  %v1562_v41 = vmul.f32 %v1555_v23, %v1464_v3 }
 0x86d   : > { %v1412_v40 = vpop.f32.mrf.mxu0  ;;  %v3799_v1 = vpop.f32.mrf.mxu1 }
 0x86e   : > { %4128 = vrcp.f32 %v1478_v7  ;;  %v1465_v12 = vand.u32 2147483647, %v5024_v32  ;;  %v5031_v2 = vmul.f32 0.70710677, %v5027_v9  ;;  %v5034_v5 = vadd.f32 %v5011_v36, %v1412_v40 }
 0x86f   : > { %v3793_v17 = vpop.f32.mrf.mxu0  ;;  %v1569_v22 = vmul.f32 1.442695, %v1562_v41  ;;  %vm1451_vm9 = vcmp.ge.f32.partialorder %v5024_v32, 0.0 }
 0x870   : > { %v1472_v50 = vmul.f32 0.3275911, %v1465_v12  ;;  %v1468_v8 = vand.u32 2147483647, %v5031_v2  ;;  %v5038_v44 = vmul.f32 0.70710677, %v5034_v5 }
 0x871   : > { %v1417_v10 = vpop.f32.mrf.mxu0  ;;  %v1556_v21 = vsub.f32 0.0, %v1465_v12  ;;  %vm1454_vm12 = vcmp.ge.f32.partialorder %v5031_v2, 0.0  ;;  %v1438_v2 = vmul.f32 0.5, %v5034_v5 }
 0x872   : > { %v1479_v48 = vadd.f32 1.0, %v1472_v50  ;;  %v5041_v15 = vadd.f32 %v5011_v36, %v1417_v10  ;;  %v1475_v13 = vmul.f32 0.3275911, %v1468_v8  ;;  %v1466_v19 = vand.u32 2147483647, %v5038_v44 }
 0x873   : > { %v3796_v45 = vpop.f32.mrf.mxu0  ;;  %v1563_v31 = vmul.f32 %v1556_v21, %v1465_v12  ;;  %v1559_v35 = vsub.f32 0.0, %v1468_v8  ;;  %vm1452_vm11 = vcmp.ge.f32.partialorder %v5038_v44, 0.0 }
 0x874   : > { %4130 = vrcp.f32 %v1479_v48  ;;  %v1482_v18 = vadd.f32 1.0, %v1475_v13  ;;  %v1473_v27 = vmul.f32 0.3275911, %v1466_v19  ;;  %v5045_v28 = vmul.f32 0.70710677, %v5041_v15 }
 0x875   : > { %v1557_v30 = vsub.f32 0.0, %v1466_v19  ;;  %v1571_v55 = vmul.f32 1.442695, %v1563_v31  ;;  %v1566_v42 = vmul.f32 %v1559_v35, %v1468_v8 }
 0x876   : > { %4132 = vrcp.f32 %v1482_v18  ;;  %v1480_v63 = vadd.f32 1.0, %v1473_v27  ;;  %v1467_v16 = vand.u32 2147483647, %v5045_v28  ;;  %vm1453_vm13 = vcmp.ge.f32.partialorder %v5045_v28, 0.0 }
 0x877   : > { %v1564_v39 = vmul.f32 %v1557_v30, %v1466_v19  ;;  %v1577_v57 = vmul.f32 1.442695, %v1566_v42 }
 0x878   : > { %4134 = vrcp.f32 %v1480_v63  ;;  %v1474_v51 = vmul.f32 0.3275911, %v1467_v16  ;;  %v1558_v56 = vsub.f32 0.0, %v1467_v16 }
 0x879   : > { %v1573_v1 = vmul.f32 1.442695, %v1564_v39 }
 0x87a   : > { %v1481_v25 = vadd.f32 1.0, %v1474_v51  ;;  %v1565_v12 = vmul.f32 %v1558_v56, %v1467_v16 }
 0x87b   : > { %v4129_v54 = vpop.eup %4128 }
 0x87c   : > { %v1492_v29 = vmul.f32 1.0614054, %v4129_v54  ;;  %4136 = vrcp.f32 %v1481_v25  ;;  %v1575_v18 = vmul.f32 1.442695, %v1565_v12 }
 0x87d   : > { %4138 = vpow2.f32 %v1569_v22 }
 0x87e   : > { %v1499_v34 = vadd.f32 -1.4531521, %v1492_v29  ;;  %4140 = vpow2.f32 %v1571_v55 }
 0x87f   : > { %4142 = vpow2.f32 %v1577_v57 }
 0x880   : > { %v1506_v37 = vmul.f32 %v4129_v54, %v1499_v34  ;;  %4144 = vpow2.f32 %v1573_v1 }
 0x881   : > { %v4131_v43 = vpop.eup %4130  ;;  %4146 = vpow2.f32 %v1575_v18 }
 0x882   : > { %v1513_v46 = vadd.f32 1.4214138, %v1506_v37  ;;  %v1493_v52 = vmul.f32 1.0614054, %v4131_v43 }
 0x883   : > { %v4133_v26 = vpop.eup %4132 }
 0x884   : > { %v1520_v62 = vmul.f32 %v4129_v54, %v1513_v46  ;;  %v1500_v3 = vadd.f32 -1.4531521, %v1493_v52  ;;  %v1496_v58 = vmul.f32 1.0614054, %v4133_v26 }
 0x885   : > { %v4135_v7 = vpop.eup %4134 }
 0x886   : > { %v1527_v33 = vadd.f32 -0.28449672, %v1520_v62  ;;  %v1507_v59 = vmul.f32 %v4131_v43, %v1500_v3  ;;  %v1503_v40 = vadd.f32 -1.4531521, %v1496_v58  ;;  %v1494_v10 = vmul.f32 1.0614054, %v4135_v7 }
 0x887   : > { %v1436_v3 = vmul.f32 0.5, %v5014_v47 }
 0x888   : > { %v1534_v17 = vmul.f32 %v4129_v54, %v1527_v33  ;;  %v1514_v50 = vadd.f32 1.4214138, %v1507_v59  ;;  %v1510_v48 = vmul.f32 %v4133_v26, %v1503_v40  ;;  %v1501_v19 = vadd.f32 -1.4531521, %v1494_v10 }
 0x889   : > { %v5048_v45 = vpop.eup %4136 }
 0x88a   : > { %v1541_v13 = vadd.f32 0.2548296, %v1534_v17  ;;  %v1521_v8 = vmul.f32 %v4131_v43, %v1514_v50  ;;  %v1517_v23 = vadd.f32 1.4214138, %v1510_v48  ;;  %v1508_v41 = vmul.f32 %v4135_v7, %v1501_v19  ;;  %v4139_v51 = vpop.eup %4138 }
 0x88b   : > { %v1495_v21 = vmul.f32 1.0614054, %v5048_v45  ;;  %v4141_v62 = vpop.eup %4140 }
 0x88c   : > { %v1548_v27 = vmul.f32 %v4129_v54, %v1541_v13  ;;  %v1528_v63 = vadd.f32 -0.28449672, %v1521_v8  ;;  %v1524_v16 = vmul.f32 %v4133_v26, %v1517_v23  ;;  %v1515_v25 = vadd.f32 1.4214138, %v1508_v41  ;;  %v4143_v48 = vpop.eup %4142 }
 0x88d   : > { %v1502_v34 = vadd.f32 -1.4531521, %v1495_v21  ;;  %v4371_v54 = vmov -1.0   ;;  %v4145_v32 = vpop.eup %4144 }
 0x88e   : > { %v1583_v29 = vmul.f32 %v4139_v51, %v1548_v27  ;;  %v1535_v22 = vmul.f32 %v4131_v43, %v1528_v63  ;;  %v1531_v31 = vadd.f32 -0.28449672, %v1524_v16  ;;  %v1522_v37 = vmul.f32 %v4135_v7, %v1515_v25 }
 0x88f   : > { %v1509_v46 = vmul.f32 %v5048_v45, %v1502_v34  ;;  %v1457_v52 = vsel %vm1450_vm8, 1.0, %v4371_v54  ;;  %v1458_v13 = vsel %vm1451_vm9, 1.0, %v4371_v54  ;;  %v1461_v28 = vsel %vm1454_vm12, 1.0, %v4371_v54 }
 0x890   : > { %v1590_v35 = vsub.f32 1.0, %v1583_v29  ;;  %v1542_v30 = vadd.f32 0.2548296, %v1535_v22  ;;  %v1538_v55 = vmul.f32 %v4133_v26, %v1531_v31  ;;  %v1529_v56 = vadd.f32 -0.28449672, %v1522_v37  ;;  %v4147_v22 = vpop.eup %4146 }
 0x891   : > { %v1516_v20 = vadd.f32 1.4214138, %v1509_v46  ;;  %vm3195_vm8 = vcmask 1045504   ;;  %vm3197_vm9 = vcmask 1046528  }
 0x892   : > { %v1597_v42 = vmul.f32 %v1590_v35, %v1457_v52  ;;  %v1549_v39 = vmul.f32 %v4131_v43, %v1542_v30  ;;  %v1545_v58 = vadd.f32 0.2548296, %v1538_v55  ;;  %v1536_v57 = vmul.f32 %v4135_v7, %v1529_v56 }
 0x893   : > { %v1523_v40 = vmul.f32 %v5048_v45, %v1516_v20  ;;  %v1459_v35 = vsel %vm1452_vm11, 1.0, %v4371_v54 }
 0x894   : > { %v1604_v33 = vadd.f32 1.0, %v1597_v42  ;;  %v1584_v59 = vmul.f32 %v4141_v62, %v1549_v39  ;;  %v1552_v1 = vmul.f32 %v4133_v26, %v1545_v58  ;;  %v1543_v50 = vadd.f32 0.2548296, %v1536_v57 }
 0x895   : > { %v1530_v10 = vadd.f32 -0.28449672, %v1523_v40  ;;  %v1437_v26 = vmul.f32 0.5, %v5021_v38  ;;  %v1460_v39 = vsel %vm1453_vm13, 1.0, %v4371_v54  ;;  %v1439_v58 = vmul.f32 0.5, %v5041_v15 }
 0x896   : > { %v1611_v12 = vmul.f32 %v1604_v33, %v1436_v3  ;;  %v1591_v17 = vsub.f32 1.0, %v1584_v59  ;;  %v1427_v43 = vpop.f32.mrf.mxu1  ;;  %v1550_v19 = vmul.f32 %v4135_v7, %v1543_v50  ;;  %v1587_v41 = vmul.f32 %v4143_v48, %v1552_v1 }
 0x897   : > { %v5059_v47 = vadd.f32 %v5011_v36, %v1427_v43  ;;  %v1537_v23 = vmul.f32 %v5048_v45, %v1530_v10  ;;  %v1440_v1 = vmul.f32 0.5, %v5027_v9 }
 0x898   : > { %v1598_v8 = vmul.f32 %v1591_v17, %v1458_v13  ;;  %v3802_v18 = vpop.f32.mrf.mxu1  ;;  %3815 = vmatmul.mubr.msk.f32.vlgmr.msra.gmra.mxu1 %vm1618_vm10, %v1611_v12  ;;  %v1585_v21 = vmul.f32 %v4145_v32, %v1550_v19  ;;  %v1594_v37 = vsub.f32 1.0, %v1587_v41 }
 0x899   : > { %v5066_v27 = vmul.f32 0.70710677, %v5059_v47  ;;  %3817 = vmatprep.mubr.msk.f32.mxu1 %vm4368_vm0, %v4367_v0  ;;  %v1544_v51 = vadd.f32 0.2548296, %v1537_v23 }
 0x89a   : > { %v1605_v63 = vadd.f32 1.0, %v1598_v8  ;;  %v1432_v7 = vpop.f32.mrf.mxu1  ;;  %v1592_v25 = vsub.f32 1.0, %v1585_v21  ;;  %v1601_v56 = vmul.f32 %v1594_v37, %v1461_v28 }
 0x89b   : > { %v1469_v16 = vand.u32 2147483647, %v5066_v27  ;;  %v5072_v29 = vadd.f32 %v5011_v36, %v1432_v7  ;;  %v1551_v34 = vmul.f32 %v5048_v45, %v1544_v51  ;;  %vm1455_vm14 = vcmp.ge.f32.partialorder %v5066_v27, 0.0 }
 0x89c   : > { %v1612_v38 = vmul.f32 %v1605_v63, %v1437_v26  ;;  %v3805_v31 = vpop.f32.mrf.mxu1  ;;  %v1599_v46 = vmul.f32 %v1592_v25, %v1459_v35  ;;  %v1608_v5 = vadd.f32 1.0, %v1601_v56  ;;  %v1462_v37 = vsel %vm1455_vm14, 1.0, %v4371_v54 }
 0x89d   : > { %v1476_v30 = vmul.f32 0.3275911, %v1469_v16  ;;  %v1586_v52 = vmul.f32 %v4147_v22, %v1551_v34  ;;  %v5081_v36 = vmul.f32 0.70710677, %v5072_v29  ;;  %v1560_v40 = vsub.f32 0.0, %v1469_v16 }
 0x89e   : > { %3818 = vmatmul.mubr.msk.f32.gmra.mxu1 %vm1618_vm10, %v1612_v38  ;;  %v1606_v45 = vadd.f32 1.0, %v1599_v46  ;;  %v1615_v12 = vmul.f32 %v1608_v5, %v1440_v1  ;;  %v1442_v27 = vmul.f32 0.5, %v5072_v29 }
 0x89f   : > { %v1483_v55 = vadd.f32 1.0, %v1476_v30  ;;  %3820 = vmatprep.mubr.msk.f32.mxu1 %vm4368_vm0, %v4367_v0  ;;  %v1593_v44 = vsub.f32 1.0, %v1586_v52  ;;  %v1470_v42 = vand.u32 2147483647, %v5081_v36  ;;  %v1567_v15 = vmul.f32 %v1560_v40, %v1469_v16 }
 0x8a0   : > { %v1613_v20 = vmul.f32 %v1606_v45, %v1438_v2  ;;  %vm1456_vm15 = vcmp.ge.f32.partialorder %v5081_v36, 0.0  ;;  %v1441_v45 = vmul.f32 0.5, %v5059_v47  ;;  %v3449_v36 = vld [vmem:[#allocation2 + $0xa0] ss:$0 sm:$0xff] }
 0x8a1   : > { %4148 = vrcp.f32 %v1483_v55  ;;  %v1600_v62 = vmul.f32 %v1593_v44, %v1460_v39  ;;  %v1477_v3 = vmul.f32 0.3275911, %v1470_v42  ;;  %v1561_v17 = vsub.f32 0.0, %v1470_v42 }
 0x8a2   : > { %3821 = vmatmul.mubr.msk.f32.gmra.mxu1 %vm1618_vm10, %v1613_v20  ;;  %v1579_v43 = vmul.f32 1.442695, %v1567_v15  ;;  %v1463_v39 = vsel %vm1456_vm15, 1.0, %v4371_v54 }
 0x8a3   : > { %v1607_v33 = vadd.f32 1.0, %v1600_v62  ;;  %v1484_v59 = vadd.f32 1.0, %v1477_v3  ;;  %3823 = vmatprep.mubr.msk.f32.mxu1 %vm4368_vm0, %v4367_v0  ;;  %v1568_v48 = vmul.f32 %v1561_v17, %v1470_v42 }
 0x8a5   : > { %v1614_v57 = vmul.f32 %v1607_v33, %v1439_v58  ;;  %4150 = vrcp.f32 %v1484_v59  ;;  %v1581_v19 = vmul.f32 1.442695, %v1568_v48 }
 0x8a6   : > { %4152 = vpow2.f32 %v1579_v43 }
 0x8a7   : > { %3824 = vmatmul.mubr.msk.f32.gmra.mxu1 %vm1618_vm10, %v1614_v57  ;;  %4154 = vpow2.f32 %v1581_v19 }
 0x8a8   : > { %3826 = vmatprep.mubr.msk.f32.mxu1 %vm4368_vm0, %v4367_v0 }
 0x8ab   : > { %3827 = vmatmul.mubr.msk.f32.gmra.mxu1 %vm1618_vm10, %v1615_v12 }
 0x8ac   : > { %3829 = vmatprep.mubr.msk.f32.mxu1 %vm4368_vm0, %v4367_v0 }
 0x8ae   : > { %v4149_v50 = vpop.eup %4148 }
 0x8af   : > { %v1497_v10 = vmul.f32 1.0614054, %v4149_v50 }
 0x8b1   : > { %v1504_v13 = vadd.f32 -1.4531521, %v1497_v10 }
 0x8b2   : > { %v4151_v32 = vpop.eup %4150 }
 0x8b3   : > { %v1511_v9 = vmul.f32 %v4149_v50, %v1504_v13  ;;  %v1498_v8 = vmul.f32 1.0614054, %v4151_v32  ;;  %v4153_v25 = vpop.eup %4152 }
 0x8b4   : > { %v4155_v52 = vpop.eup %4154 }
 0x8b5   : > { %v1518_v23 = vadd.f32 1.4214138, %v1511_v9  ;;  %v1505_v18 = vadd.f32 -1.4531521, %v1498_v8 }
 0x8b7   : > { %v1525_v26 = vmul.f32 %v4149_v50, %v1518_v23  ;;  %v1512_v63 = vmul.f32 %v4151_v32, %v1505_v18 }
 0x8b9   : > { %v1532_v41 = vadd.f32 -0.28449672, %v1525_v26  ;;  %v1519_v21 = vadd.f32 1.4214138, %v1512_v63 }
 0x8bb   : > { %v1539_v51 = vmul.f32 %v4149_v50, %v1532_v41  ;;  %v1526_v7 = vmul.f32 %v4151_v32, %v1519_v21 }
 0x8bd   : > { %v1546_v16 = vadd.f32 0.2548296, %v1539_v51  ;;  %v1533_v22 = vadd.f32 -0.28449672, %v1526_v7 }
 0x8bf   : > { %v1553_v38 = vmul.f32 %v4149_v50, %v1546_v16  ;;  %v1540_v34 = vmul.f32 %v4151_v32, %v1533_v22 }
 0x8c1   : > { %v1588_v31 = vmul.f32 %v4153_v25, %v1553_v38  ;;  %v1547_v35 = vadd.f32 0.2548296, %v1540_v34 }
 0x8c3   : > { %v1595_v30 = vsub.f32 1.0, %v1588_v31  ;;  %v1554_v46 = vmul.f32 %v4151_v32, %v1547_v35 }
 0x8c5   : > { %v1602_v55 = vmul.f32 %v1595_v30, %v1462_v37  ;;  %v1589_v2 = vmul.f32 %v4155_v52, %v1554_v46 }
 0x8c7   : > { %v1609_v44 = vadd.f32 1.0, %v1602_v55  ;;  %v1596_v42 = vsub.f32 1.0, %v1589_v2 }
 0x8c9   : > { %v1616_v28 = vmul.f32 %v1609_v44, %v1441_v45  ;;  %v1603_v56 = vmul.f32 %v1596_v42, %v1463_v39 }
 0x8cb   : > { %3830 = vmatmul.mubr.msk.f32.gmra.mxu1 %vm1618_vm10, %v1616_v28  ;;  %v1610_v20 = vadd.f32 1.0, %v1603_v56 }
 0x8cc   : > { %3832 = vmatprep.mubr.msk.f32.mxu1 %vm4368_vm0, %v4367_v0 }
 0x8cd   : > { %v1617_v62 = vmul.f32 %v1610_v20, %v1442_v27 }
 0x8cf   : > { %3833 = vmatmul.mubr.msk.f32.gmra.mxu1 %vm1618_vm10, %v1617_v62 }
 0x958   : > { %v1706_v3 = vpop.f32.mrf.mxu1 }
 0x959   : > { %v1740_v47 = vadd.f32 %v1706_v3, %v4878_v4  ;;  %v1762_v3 = vld [vmem:[#allocation2 + $0xb0] sm:$0xff] }
 0x95a   : > { %v3816_v58 = vpop.f32.mrf.mxu1  ;;  %3836 = vmatpush3.msra.mxu0 %v1762_v3 }
 0x95b   : > { %v5112_v33 = vadd.f32 %v3449_v36, %v1740_v47 }
 0x95d   : > { %v1771_v59 = vsel %vm190_vm1, %v5112_v33, 0.0 }
 0x95e   : > { %1772 = vadd.xlane.f32.xlu0 %v1771_v59  ;;  %v1711_v5 = vpop.f32.mrf.mxu1 }
 0x95f   : > { %v1741_v29 = vadd.f32 %v1711_v5, %v4898_v53 }
 0x960   : > { %v3819_v57 = vpop.f32.mrf.mxu1 }
 0x961   : > { %v5117_v40 = vadd.f32 %v3449_v36, %v1741_v29 }
 0x962   : > { %v1716_v12 = vpop.f32.mrf.mxu1 }
 0x963   : > { %v1774_v1 = vsel %vm190_vm1, %v5117_v40, 0.0  ;;  %v1742_v4 = vadd.f32 %v1716_v12, %v4891_v14 }
 0x964   : > { %1775 = vadd.xlane.f32.xlu1 %v1774_v1  ;;  %v3822_v15 = vpop.f32.mrf.mxu1 }
 0x965   : > { %v5122_v17 = vadd.f32 %v3449_v36, %v1742_v4 }
 0x967   : > { %v1721_v50 = vpop.f32.mrf.mxu1  ;;  %v1777_v43 = vsel %vm190_vm1, %v5122_v17, 0.0 }
 0x968   : > { %v1743_v10 = vadd.f32 %v1721_v50, %v4912_v60  ;;  %1778 = vadd.xlane.f32.xlu0 %v1777_v43 }
 0x969   : > { %v3825_v53 = vpop.f32.mrf.mxu1 }
 0x96a   : > { %v5127_v48 = vadd.f32 %v3449_v36, %v1743_v10 }
 0x96b   : > { %v1726_v13 = vpop.f32.mrf.mxu1 }
 0x96c   : > { %v1744_v32 = vadd.f32 %v1726_v13, %v4907_v61  ;;  %v1780_v9 = vsel %vm190_vm1, %v5127_v48, 0.0 }
 0x96d   : > { %1781 = vadd.xlane.f32.xlu1 %v1780_v9  ;;  %v3828_v14 = vpop.f32.mrf.mxu1 }
 0x96e   : > { %v5132_v8 = vadd.f32 %v3449_v36, %v1744_v32 }
 0x970   : > { %v1783_v60 = vsel %vm190_vm1, %v5132_v8, 0.0 }
 0x971   : > { %1784 = vadd.xlane.f32.xlu0 %v1783_v60 }
 0x98b   : > { %v1731_v19 = vpop.f32.mrf.mxu1 }
 0x98c   : > { %v1745_v23 = vadd.f32 %v1731_v19, %v4930_v11 }
 0x98d   : > { %v3831_v18 = vpop.f32.mrf.mxu1 }
 0x98e   : > { %v5137_v26 = vadd.f32 %v3449_v36, %v1745_v23 }
 0x98f   : > { %v1736_v63 = vpop.f32.mrf.mxu1 }
 0x990   : > { %v1786_v61 = vsel %vm190_vm1, %v5137_v26, 0.0  ;;  %v1746_v41 = vadd.f32 %v1736_v63, %v4927_v49  ;;  %v3450_v63 = vld [vmem:[#allocation2 + $0xa8] ss:$0 sm:$0xff] }
 0x991   : > { %1787 = vadd.xlane.f32.xlu1 %v1786_v61  ;;  %v3834_v21 = vpop.f32.mrf.mxu1 }
 0x992   : > { %v5142_v51 = vadd.f32 %v3449_v36, %v1746_v41 }
 0x994   : > { %v1789_v7 = vsel %vm190_vm1, %v5142_v51, 0.0 }
 0x995   : > { %1790 = vadd.xlane.f32.xlu0 %v1789_v7  ;;  %v3451_v7 = vld [vmem:[#allocation2 + $0xa9] ss:$0 sm:$0xff] }
 0x9e7   : > { %v1773_v16 = vpop.xlane.xlu0 %1772 }
 0x9e8   : > { %v1792_v22 = vmul.f32 0.125, %v1773_v16 }
 0x9ea   : > { %v1799_v11 = vsub.f32 %v5112_v33, %v1792_v22 }
 0x9ec   : > { %v1806_v38 = vmul.f32 %v1799_v11, %v1799_v11 }
 0x9ed   : > { %v1776_v25 = vpop.xlane.xlu1 %1775 }
 0x9ee   : > { %v1793_v34 = vmul.f32 0.125, %v1776_v25  ;;  %v1813_v31 = vsel %vm190_vm1, %v1806_v38, 0.0 }
 0x9ef   : > { %1814 = vadd.xlane.f32.xlu1 %v1813_v31 }
 0x9f0   : > { %v5149_v49 = vsub.f32 %v5117_v40, %v1793_v34 }
 0x9f1   : > { %v1779_v30 = vpop.xlane.xlu0 %1778 }
 0x9f2   : > { %v1807_v35 = vmul.f32 %v5149_v49, %v5149_v49  ;;  %v1794_v37 = vmul.f32 0.125, %v1779_v30 }
 0x9f4   : > { %v1816_v46 = vsel %vm190_vm1, %v1807_v35, 0.0  ;;  %v5155_v52 = vsub.f32 %v5122_v17, %v1794_v37 }
 0x9f5   : > { %1817 = vadd.xlane.f32.xlu0 %v1816_v46 }
 0x9f6   : > { %v1782_v55 = vpop.xlane.xlu1 %1781  ;;  %v1808_v45 = vmul.f32 %v5155_v52, %v5155_v52 }
 0x9f7   : > { %v1795_v2 = vmul.f32 0.125, %v1782_v55 }
 0x9f8   : > { %v1819_v42 = vsel %vm190_vm1, %v1808_v45, 0.0 }
 0x9f9   : > { %v5160_v44 = vsub.f32 %v5127_v48, %v1795_v2  ;;  %1820 = vadd.xlane.f32.xlu1 %v1819_v42 }
 0x9fa   : > { %v1785_v28 = vpop.xlane.xlu0 %1784 }
 0x9fb   : > { %v1796_v39 = vmul.f32 0.125, %v1785_v28  ;;  %v1809_v56 = vmul.f32 %v5160_v44, %v5160_v44 }
 0x9fd   : > { %v5166_v27 = vsub.f32 %v5132_v8, %v1796_v39  ;;  %v1822_v20 = vsel %vm190_vm1, %v1809_v56, 0.0 }
 0x9fe   : > { %1823 = vadd.xlane.f32.xlu0 %v1822_v20 }
 0x9ff   : > { %v1810_v62 = vmul.f32 %v5166_v27, %v5166_v27 }
 0xa01   : > { %v1825_v36 = vsel %vm190_vm1, %v1810_v62, 0.0 }
 0xa02   : > { %1826 = vadd.xlane.f32.xlu1 %v1825_v36 }
 0xa1a   : > { %v1788_v47 = vpop.xlane.xlu1 %1787 }
 0xa1b   : > { %v1797_v58 = vmul.f32 0.125, %v1788_v47 }
 0xa1d   : > { %v5173_v59 = vsub.f32 %v5137_v26, %v1797_v58 }
 0xa1e   : > { %v1791_v5 = vpop.xlane.xlu0 %1790 }
 0xa1f   : > { %v1811_v29 = vmul.f32 %v5173_v59, %v5173_v59  ;;  %v1798_v57 = vmul.f32 0.125, %v1791_v5 }
 0xa21   : > { %v1828_v1 = vsel %vm190_vm1, %v1811_v29, 0.0  ;;  %v5179_v12 = vsub.f32 %v5142_v51, %v1798_v57 }
 0xa22   : > { %1829 = vadd.xlane.f32.xlu0 %v1828_v1 }
 0xa23   : > { %v1812_v4 = vmul.f32 %v5179_v12, %v5179_v12 }
 0xa25   : > { %v1831_v15 = vsel %vm190_vm1, %v1812_v4, 0.0 }
 0xa26   : > { %1832 = vadd.xlane.f32.xlu1 %v1831_v15 }
 0xa78   : > { %v1815_v50 = vpop.xlane.xlu1 %1814 }
 0xa79   : > { %v1834_v10 = vmul.f32 0.125, %v1815_v50  ;;  %v3452_v50 = vld [vmem:[#allocation2 + $0xb8] ss:$0 sm:$0xff] }
 0xa7b   : > { %v1841_v43 = vadd.f32 1e-05, %v1834_v10 }
 0xa7d   : > { %4156 = vrsqrt.f32 %v1841_v43 }
 0xa7e   : > { %v1818_v53 = vpop.xlane.xlu0 %1817 }
 0xa7f   : > { %v1835_v13 = vmul.f32 0.125, %v1818_v53 }
 0xa81   : > { %v1842_v32 = vadd.f32 1e-05, %v1835_v13 }
 0xa82   : > { %v1821_v9 = vpop.xlane.xlu1 %1820 }
 0xa83   : > { %4158 = vrsqrt.f32 %v1842_v32  ;;  %v1836_v14 = vmul.f32 0.125, %v1821_v9 }
 0xa85   : > { %v1843_v60 = vadd.f32 1e-05, %v1836_v14 }
 0xa87   : > { %v1824_v19 = vpop.xlane.xlu0 %1823  ;;  %4160 = vrsqrt.f32 %v1843_v60 }
 0xa88   : > { %v1837_v23 = vmul.f32 0.125, %v1824_v19 }
 0xa8a   : > { %v4157_v18 = vpop.eup %4156  ;;  %v1844_v41 = vadd.f32 1e-05, %v1837_v23 }
 0xa8b   : > { %v1855_v61 = vmul.f32 %v4157_v18, %v1799_v11  ;;  %v1827_v21 = vpop.xlane.xlu1 %1826 }
 0xa8c   : > { %4162 = vrsqrt.f32 %v1844_v41  ;;  %v1838_v22 = vmul.f32 0.125, %v1827_v21 }
 0xa8d   : > { %v1866_v16 = vmul.f32 %v3450_v63, %v1855_v61 }
 0xa8e   : > { %v1845_v38 = vadd.f32 1e-05, %v1838_v22 }
 0xa8f   : > { %v1877_v25 = vadd.f32 %v3451_v7, %v1866_v16 }
 0xa90   : > { %v4159_v34 = vpop.eup %4158  ;;  %4164 = vrsqrt.f32 %v1845_v38 }
 0xa91   : > { %3838 = vmatmul.mubr.msk.f32.vlgmr.msra.gmra.mxu0 %vm190_vm1, %v1877_v25  ;;  %v1856_v31 = vmul.f32 %v4159_v34, %v5149_v49 }
 0xa92   : > { %3840 = vmatprep.mubr.msk.f32.mxu0 %vm4368_vm0, %v4367_v0 }
 0xa93   : > { %v1867_v35 = vmul.f32 %v3450_v63, %v1856_v31 }
 0xa94   : > { %v4161_v11 = vpop.eup %4160 }
 0xa95   : > { %v1878_v30 = vadd.f32 %v3451_v7, %v1867_v35  ;;  %v1857_v37 = vmul.f32 %v4161_v11, %v5155_v52 }
 0xa97   : > { %3841 = vmatmul.mubr.msk.f32.gmra.mxu0 %vm190_vm1, %v1878_v30  ;;  %v1868_v46 = vmul.f32 %v3450_v63, %v1857_v37 }
 0xa98   : > { %3843 = vmatprep.mubr.msk.f32.mxu0 %vm4368_vm0, %v4367_v0 }
 0xa99   : > { %v4163_v55 = vpop.eup %4162  ;;  %v1879_v2 = vadd.f32 %v3451_v7, %v1868_v46 }
 0xa9a   : > { %v1858_v45 = vmul.f32 %v4163_v55, %v5160_v44 }
 0xa9b   : > { %3844 = vmatmul.mubr.msk.f32.gmra.mxu0 %vm190_vm1, %v1879_v2 }
 0xa9c   : > { %v1869_v49 = vmul.f32 %v3450_v63, %v1858_v45  ;;  %3846 = vmatprep.mubr.msk.f32.mxu0 %vm4368_vm0, %v4367_v0 }
 0xa9d   : > { %v4165_v42 = vpop.eup %4164 }
 0xa9e   : > { %v1880_v28 = vadd.f32 %v3451_v7, %v1869_v49  ;;  %v1859_v39 = vmul.f32 %v4165_v42, %v5166_v27 }
 0xaa0   : > { %3847 = vmatmul.mubr.msk.f32.gmra.mxu0 %vm190_vm1, %v1880_v28  ;;  %v1870_v52 = vmul.f32 %v3450_v63, %v1859_v39 }
 0xaa1   : > { %3849 = vmatprep.mubr.msk.f32.mxu0 %vm4368_vm0, %v4367_v0 }
 0xaa2   : > { %v1881_v56 = vadd.f32 %v3451_v7, %v1870_v52 }
 0xaa4   : > { %3850 = vmatmul.mubr.msk.f32.gmra.mxu0 %vm190_vm1, %v1881_v56 }
 0xaa5   : > { %3852 = vmatprep.mubr.msk.f32.mxu0 %vm4368_vm0, %v4367_v0 }
 0xaab   : > { %v1830_v44 = vpop.xlane.xlu0 %1829 }
 0xaac   : > { %v1839_v20 = vmul.f32 0.125, %v1830_v44 }
 0xaae   : > { %v1846_v62 = vadd.f32 1e-05, %v1839_v20 }
 0xaaf   : > { %v1833_v36 = vpop.xlane.xlu1 %1832 }
 0xab0   : > { %4166 = vrsqrt.f32 %v1846_v62  ;;  %v1840_v3 = vmul.f32 0.125, %v1833_v36 }
 0xab2   : > { %v1847_v47 = vadd.f32 1e-05, %v1840_v3 }
 0xab4   : > { %4168 = vrsqrt.f32 %v1847_v47 }
 0xabd   : > { %v4167_v27 = vpop.eup %4166 }
 0xabe   : > { %v1860_v58 = vmul.f32 %v4167_v27, %v5173_v59 }
 0xac0   : > { %v1871_v5 = vmul.f32 %v3450_v63, %v1860_v58 }
 0xac1   : > { %v4169_v29 = vpop.eup %4168 }
 0xac2   : > { %v1882_v57 = vadd.f32 %v3451_v7, %v1871_v5  ;;  %v1861_v1 = vmul.f32 %v4169_v29, %v5179_v12 }
 0xac4   : > { %3853 = vmatmul.mubr.msk.f32.gmra.mxu0 %vm190_vm1, %v1882_v57  ;;  %v1872_v4 = vmul.f32 %v3450_v63, %v1861_v1 }
 0xac5   : > { %3855 = vmatprep.mubr.msk.f32.mxu0 %vm4368_vm0, %v4367_v0 }
 0xac6   : > { %v1883_v15 = vadd.f32 %v3451_v7, %v1872_v4 }
 0xac8   : > { %3856 = vmatmul.mubr.msk.f32.gmra.mxu0 %vm190_vm1, %v1883_v15 }
 0xb51   : > { %v1975_v10 = vpop.f32.mrf.mxu0 }
 0xb52   : > { %v5209_v43 = vadd.f32 %v3452_v50, %v1975_v10 }
 0xb53   : > { %v3839_v53 = vpop.f32.mrf.mxu0 }
 0xb54   : > { %v2009_v59 = vsel %vm173_vm2, %v5209_v43, 0.0  ;;  %v2016_v39 = vsel %vm4656_vm5, %v5209_v43, 0.0 }
 0xb55   : > { %3872 = vmatprep.mubr.msk.f32.mxu1 %vm190_vm1, %v2009_v59 }
 0xb57   : > { %v1980_v12 = vpop.f32.mrf.mxu0 }
 0xb58   : > { %v5235_v25 = vadd.f32 %v3452_v50, %v1980_v12 }
 0xb59   : > { %v3842_v13 = vpop.f32.mrf.mxu0 }
 0xb5a   : > { %v2010_v55 = vsel %vm173_vm2, %v5235_v25, 0.0  ;;  %v2017_v52 = vsel %vm4656_vm5, %v5235_v25, 0.0 }
 0xb5b   : > { %v1985_v32 = vpop.f32.mrf.mxu0 }
 0xb5c   : > { %v5229_v38 = vadd.f32 %v3452_v50, %v1985_v32 }
 0xb5d   : > { %v3845_v9 = vpop.f32.mrf.mxu0 }
 0xb5e   : > { %v2011_v2 = vsel %vm173_vm2, %v5229_v38, 0.0  ;;  %v2018_v56 = vsel %vm4656_vm5, %v5229_v38, 0.0 }
 0xb60   : > { %v1990_v14 = vpop.f32.mrf.mxu0 }
 0xb61   : > { %v5227_v22 = vadd.f32 %v3452_v50, %v1990_v14 }
 0xb62   : > { %v3848_v60 = vpop.f32.mrf.mxu0 }
 0xb63   : > { %v2012_v45 = vsel %vm173_vm2, %v5227_v22, 0.0  ;;  %v2019_v44 = vsel %vm4656_vm5, %v5227_v22, 0.0 }
 0xb64   : > { %v1995_v19 = vpop.f32.mrf.mxu0 }
 0xb65   : > { %v5219_v41 = vadd.f32 %v3452_v50, %v1995_v19 }
 0xb66   : > { %v3851_v23 = vpop.f32.mrf.mxu0 }
 0xb67   : > { %v2013_v49 = vsel %vm173_vm2, %v5219_v41, 0.0  ;;  %v2020_v20 = vsel %vm4656_vm5, %v5219_v41, 0.0 }
 0xb84   : > { %v2000_v18 = vpop.f32.mrf.mxu0 }
 0xb85   : > { %v5215_v63 = vadd.f32 %v3452_v50, %v2000_v18 }
 0xb86   : > { %v3854_v61 = vpop.f32.mrf.mxu0 }
 0xb87   : > { %2040 = vrot.lane.b32.xlu1 %v5215_v63, %s4369_s6  ;;  %v2014_v42 = vsel %vm173_vm2, %v5215_v63, 0.0  ;;  %v2021_v62 = vsel %vm4656_vm5, %v5215_v63, 0.0 }
 0xb88   : > { %v2005_v21 = vpop.f32.mrf.mxu0 }
 0xb89   : > { %v5221_v7 = vadd.f32 %v3452_v50, %v2005_v21 }
 0xb8a   : > { %v3857_v16 = vpop.f32.mrf.mxu0 }
 0xb8b   : > { %2038 = vrot.lane.b32.xlu1 %v5219_v41, %s4369_s6  ;;  %2042 = vrot.lane.b32.xlu0 %v5221_v7, %s4369_s6  ;;  %v2015_v28 = vsel %vm173_vm2, %v5221_v7, 0.0  ;;  %v2022_v36 = vsel %vm4656_vm5, %v5221_v7, 0.0 }
 0xb8f   : > { %2036 = vrot.lane.b32.xlu1 %v5227_v22, %s4369_s6  ;;  %2034 = vrot.lane.b32.xlu0 %v5229_v38, %s4369_s6 }
 0xb93   : > { %2032 = vrot.lane.b32.xlu1 %v5235_v25, %s4369_s6  ;;  %2030 = vrot.lane.b32.xlu0 %v5209_v43, %s4369_s6 }
 0xbf9   : > { %v2041_v34 = vpop.permute.xlu1 %2040 }
 0xbfd   : > { %v2043_v31 = vpop.permute.xlu0 %2042  ;;  %v2039_v35 = vpop.permute.xlu1 %2038 }
 0xbfe   : > { %3858 = vmatprep.subr.msk.mxu1 %vm190_vm1, %v2043_v31 }
 0xbff   : > { %3859 = vmatpush3.xpose.msk.msra.mxu1 %vm190_vm1, %v2043_v31 }
 0xc00   : > { %3860 = vmatprep.subr.msk.mxu1 %vm190_vm1, %v2041_v34 }
 0xc01   : > { %v2037_v30 = vpop.permute.xlu1 %2036  ;;  %v2035_v11 = vpop.permute.xlu0 %2034 }
 0xc03   : > { %3861 = vmatpush3.xpose.msk.msra.mxu1 %vm190_vm1, %v2041_v34 }
 0xc04   : > { %3862 = vmatprep.subr.msk.mxu1 %vm190_vm1, %v2039_v35 }
 0xc05   : > { %v2033_v37 = vpop.permute.xlu1 %2032  ;;  %v2031_v46 = vpop.permute.xlu0 %2030 }
 0xc07   : > { %3863 = vmatpush3.xpose.msk.msra.mxu1 %vm190_vm1, %v2039_v35 }
 0xc08   : > { %3864 = vmatprep.subr.msk.mxu1 %vm190_vm1, %v2037_v30 }
 0xc0b   : > { %3865 = vmatpush3.xpose.msk.msra.mxu1 %vm190_vm1, %v2037_v30 }
 0xc0c   : > { %3866 = vmatprep.subr.msk.mxu1 %vm190_vm1, %v2035_v11 }
 0xc0f   : > { %3867 = vmatpush3.xpose.msk.msra.mxu1 %vm190_vm1, %v2035_v11 }
 0xc10   : > { %3868 = vmatprep.subr.msk.mxu1 %vm190_vm1, %v2033_v37 }
 0xc13   : > { %3869 = vmatpush3.xpose.msk.msra.mxu1 %vm190_vm1, %v2033_v37 }
 0xc14   : > { %3870 = vmatprep.subr.msk.mxu1 %vm190_vm1, %v2031_v46 }
 0xc17   : > { %3871 = vmatpush3.xpose.msk.msra.mxu1 %vm190_vm1, %v2031_v46 }
 0xc18   : > { %3928 = vmatprep.subr.mxu1 %v4367_v0 }
 0xc1a   : > { %3873 = vmatmul.mubr.msk.f32.vlgmr.msra.gmra.mxu1 %vm190_vm1, %v2010_v55 }
 0xc1b   : > { %3875 = vmatprep.mubr.msk.f32.mxu1 %vm190_vm1, %v2011_v2 }
 0xc1e   : > { %3876 = vmatmul.mubr.msk.f32.gmra.mxu1 %vm190_vm1, %v2012_v45 }
 0xc1f   : > { %3878 = vmatprep.mubr.msk.f32.mxu1 %vm190_vm1, %v2013_v49 }
 0xc22   : > { %3879 = vmatmul.mubr.msk.f32.gmra.mxu1 %vm190_vm1, %v2014_v42 }
 0xc23   : > { %3881 = vmatprep.mubr.msk.f32.mxu1 %vm190_vm1, %v2015_v28 }
 0xc26   : > { %3882 = vmatmul.mubr.msk.f32.gmra.mxu1 %vm190_vm1, %v2016_v39 }
 0xc27   : > { %3884 = vmatprep.mubr.msk.f32.mxu1 %vm190_vm1, %v2017_v52 }
 0xc2a   : > { %3885 = vmatmul.mubr.msk.f32.gmra.mxu1 %vm190_vm1, %v2018_v56 }
 0xc2b   : > { %3887 = vmatprep.mubr.msk.f32.mxu1 %vm190_vm1, %v2019_v44 }
 0xc2e   : > { %3888 = vmatmul.mubr.msk.f32.gmra.mxu1 %vm190_vm1, %v2020_v20 }
 0xc2f   : > { %3890 = vmatprep.mubr.msk.f32.mxu1 %vm190_vm1, %v2021_v62 }
 0xc32   : > { %3891 = vmatmul.mubr.msk.f32.gmra.mxu1 %vm190_vm1, %v2022_v36 }
 0xc33   : > { %3930 = vmatprep.mubr.msk.f32.mxu1 %vm4368_vm0, %v4367_v0 }
 0xcda   : > { %v3874_v3 = vpop.f32.mrf.mxu1 }
 0xcdb   : > { %v2236_v47 = vsel %vm178_vm6, %v3874_v3, -1e+30 }
 0xcdc   : > { %v2166_v27 = vpop.f32.mrf.mxu1  ;;  %v2252_v58 = vsel %vm817_vm7, %v2236_v47, -inf }
 0xcdd   : > { %v2235_v5 = vsel %vm178_vm6, %v2166_v27, -1e+30  ;;  %2253 = vmax.xlane.f32.xlu0 %v2252_v58 }
 0xcde   : > { %v3877_v29 = vpop.f32.mrf.mxu1  ;;  %v2249_v57 = vsel %vm817_vm7, %v2235_v5, -inf }
 0xcdf   : > { %2250 = vmax.xlane.f32.xlu1 %v2249_v57  ;;  %v2238_v10 = vsel %vm178_vm6, %v3877_v29, -1e+30 }
 0xce0   : > { %v2176_v1 = vpop.f32.mrf.mxu1  ;;  %v2258_v12 = vsel %vm817_vm7, %v2238_v10, -inf }
 0xce1   : > { %v2237_v4 = vsel %vm178_vm6, %v2176_v1, -1e+30 }
 0xce2   : > { %v3880_v15 = vpop.f32.mrf.mxu1  ;;  %v2255_v50 = vsel %vm817_vm7, %v2237_v4, -inf }
 0xce3   : > { %2256 = vmax.xlane.f32.xlu0 %v2255_v50  ;;  %v2240_v32 = vsel %vm178_vm6, %v3880_v15, -1e+30 }
 0xce4   : > { %v2186_v53 = vpop.f32.mrf.mxu1  ;;  %v2264_v14 = vsel %vm817_vm7, %v2240_v32, -inf }
 0xce5   : > { %v2239_v59 = vsel %vm178_vm6, %v2186_v53, -1e+30 }
 0xce6   : > { %v2261_v13 = vsel %vm817_vm7, %v2239_v59, -inf  ;;  %v3883_v9 = vpop.f32.mrf.mxu1 }
 0xce7   : > { %2259 = vmax.xlane.f32.xlu0 %v2258_v12  ;;  %2262 = vmax.xlane.f32.xlu1 %v2261_v13  ;;  %v2242_v60 = vsel %vm178_vm6, %v3883_v9, -1e+30 }
 0xce8   : > { %v2270_v19 = vsel %vm817_vm7, %v2242_v60, -inf  ;;  %v2196_v23 = vpop.f32.mrf.mxu1 }
 0xce9   : > { %v5339_v18 = vsel %vm178_vm6, %v2196_v23, -1e+30 }
 0xcea   : > { %v2267_v61 = vsel %vm817_vm7, %v5339_v18, -inf }
 0xceb   : > { %2265 = vmax.xlane.f32.xlu0 %v2264_v14 }
 0xcef   : > { %2271 = vmax.xlane.f32.xlu0 %v2270_v19 }
 0xcf8   : > { %2415 = vrot.lane.b32.xlu1 %v5221_v7, %s4370_s7 }
 0xcfc   : > { %2411 = vrot.lane.b32.xlu1 %v5219_v41, %s4370_s7 }
 0xd05   : > { %2413 = vrot.lane.b32.xlu0 %v5215_v63, %s4370_s7 }
 0xd20   : > { %2268 = vmax.xlane.f32.xlu1 %v2267_v61 }
 0xd31   : > { %2409 = vrot.lane.b32.xlu1 %v5227_v22, %s4370_s7 }
 0xd35   : > { %2407 = vrot.lane.b32.xlu1 %v5229_v38, %s4370_s7 }
 0xd66   : > { %v2254_v21 = vpop.xlane.xlu0 %2253 }
 0xd67   : > { %v2292_v41 = vsub.f32 %v2236_v47, %v2254_v21 }
 0xd68   : > { %v2251_v7 = vpop.xlane.xlu1 %2250 }
 0xd69   : > { %v2307_v16 = vmul.f32 1.442695, %v2292_v41  ;;  %v2291_v63 = vsub.f32 %v2235_v5, %v2251_v7 }
 0xd6b   : > { %4170 = vpow2.f32 %v2307_v16  ;;  %v2305_v34 = vmul.f32 1.442695, %v2291_v63 }
 0xd6c   : > { %v2257_v31 = vpop.xlane.xlu0 %2256 }
 0xd6d   : > { %4172 = vpow2.f32 %v2305_v34  ;;  %v2293_v35 = vsub.f32 %v2237_v4, %v2257_v31 }
 0xd6f   : > { %v2309_v30 = vmul.f32 1.442695, %v2293_v35 }
 0xd70   : > { %v2260_v11 = vpop.xlane.xlu0 %2259  ;;  %v2263_v37 = vpop.xlane.xlu1 %2262 }
 0xd71   : > { %4174 = vpow2.f32 %v2309_v30  ;;  %v2294_v46 = vsub.f32 %v2238_v10, %v2260_v11  ;;  %v2295_v55 = vsub.f32 %v2239_v59, %v2263_v37 }
 0xd73   : > { %v2311_v22 = vmul.f32 1.442695, %v2294_v46  ;;  %v2313_v2 = vmul.f32 1.442695, %v2295_v55 }
 0xd74   : > { %v2266_v45 = vpop.xlane.xlu0 %2265  ;;  %v2416_v38 = vpop.permute.xlu1 %2415 }
 0xd75   : > { %4176 = vpow2.f32 %v2311_v22  ;;  %v2296_v49 = vsub.f32 %v2240_v32, %v2266_v45  ;;  %3893 = vmatprep.subr.mxu0 %v2416_v38  ;;  %v3886_v32 = vpop.f32.mrf.mxu1 }
 0xd76   : > { %4178 = vpow2.f32 %v2313_v2  ;;  %3894 = vmatpush3.msra.mxu0 %v2416_v38  ;;  %v5403_v63 = vsel %vm178_vm6, %v3886_v32, -1e+30 }
 0xd77   : > { %v2315_v42 = vmul.f32 1.442695, %v2296_v49  ;;  %v2206_v9 = vpop.f32.mrf.mxu1  ;;  %v2276_v31 = vsel %vm817_vm7, %v5403_v63, -inf }
 0xd78   : > { %v5347_v28 = vpop.eup %4170  ;;  %v2272_v39 = vpop.xlane.xlu0 %2271 }
 0xd79   : > { %4180 = vpow2.f32 %v2315_v42  ;;  %v2298_v52 = vsub.f32 %v2242_v60, %v2272_v39  ;;  %v2336_v56 = vsel %vm817_vm7, %v5347_v28, 0.0  ;;  %v2412_v47 = vpop.permute.xlu1 %2411  ;;  %v3889_v14 = vpop.f32.mrf.mxu1 }
 0xd7a   : > { %v5351_v44 = vpop.eup %4172  ;;  %2337 = vadd.xlane.f32.xlu0 %v2336_v56  ;;  %v5393_v41 = vsel %vm178_vm6, %v3889_v14, -1e+30 }
 0xd7b   : > { %v2319_v20 = vmul.f32 1.442695, %v2298_v52  ;;  %v2333_v62 = vsel %vm817_vm7, %v5351_v44, 0.0  ;;  %v2216_v23 = vpop.f32.mrf.mxu1  ;;  %v2282_v7 = vsel %vm817_vm7, %v5393_v41, -inf }
 0xd7c   : > { %v2414_v36 = vpop.permute.xlu0 %2413  ;;  %2334 = vadd.xlane.f32.xlu1 %v2333_v62  ;;  %v5387_v61 = vsel %vm178_vm6, %v2216_v23, -1e+30 }
 0xd7d   : > { %4182 = vpow2.f32 %v2319_v20  ;;  %3895 = vmatprep.subr.mxu0 %v2414_v36  ;;  %v2279_v21 = vsel %vm817_vm7, %v5387_v61, -inf  ;;  %v5399_v16 = vpop.f32.mrf.mxu1 }
 0xd7e   : > { %v5355_v3 = vpop.eup %4174  ;;  %3896 = vmatpush3.msra.mxu0 %v2414_v36 }
 0xd7f   : > { %3897 = vmatprep.subr.mxu0 %v2412_v47  ;;  %v2339_v27 = vsel %vm817_vm7, %v5355_v3, 0.0  ;;  %v2226_v34 = vpop.f32.mrf.mxu1 }
 0xd80   : > { %3898 = vmatpush3.msra.mxu0 %v2412_v47  ;;  %2340 = vadd.xlane.f32.xlu1 %v2339_v27  ;;  %v5409_v35 = vsel %vm178_vm6, %v2226_v34, -1e+30 }
 0xd81   : > { %v2285_v30 = vsel %vm817_vm7, %v5409_v35, -inf }
 0xd82   : > { %v5359_v58 = vpop.eup %4176 }
 0xd83   : > { %v5361_v5 = vpop.eup %4178  ;;  %v2342_v29 = vsel %vm817_vm7, %v5359_v58, 0.0 }
 0xd84   : > { %2343 = vadd.xlane.f32.xlu0 %v2342_v29  ;;  %v2345_v57 = vsel %vm817_vm7, %v5361_v5, 0.0 }
 0xd85   : > { %2346 = vadd.xlane.f32.xlu1 %v2345_v57 }
 0xd86   : > { %v5367_v1 = vpop.eup %4180 }
 0xd87   : > { %v2348_v4 = vsel %vm817_vm7, %v5367_v1, 0.0 }
 0xd88   : > { %2349 = vadd.xlane.f32.xlu0 %v2348_v4 }
 0xd8a   : > { %v5371_v15 = vpop.eup %4182 }
 0xd8b   : > { %v2354_v50 = vsel %vm817_vm7, %v5371_v15, 0.0 }
 0xd8c   : > { %2355 = vadd.xlane.f32.xlu0 %v2354_v50 }
 0xda2   : > { %2405 = vrot.lane.b32.xlu0 %v5235_v25, %s4370_s7  ;;  %v2243_v25 = vsel %vm178_vm6, %v2206_v9, -1e+30 }
 0xda9   : > { %v2269_v10 = vpop.xlane.xlu1 %2268 }
 0xdaa   : > { %v2297_v53 = vsub.f32 %v5339_v18, %v2269_v10  ;;  %v2273_v18 = vsel %vm817_vm7, %v2243_v25, -inf }
 0xdac   : > { %v2317_v59 = vmul.f32 1.442695, %v2297_v53 }
 0xdad   : > { %v2410_v12 = vpop.permute.xlu1 %2409 }
 0xdae   : > { %4184 = vpow2.f32 %v2317_v59  ;;  %3899 = vmatprep.subr.mxu0 %v2410_v12 }
 0xdaf   : > { %3900 = vmatpush3.msra.mxu0 %v2410_v12 }
 0xdb1   : > { %v2408_v13 = vpop.permute.xlu1 %2407 }
 0xdb2   : > { %3901 = vmatprep.subr.mxu0 %v2408_v13 }
 0xdb3   : > { %3902 = vmatpush3.msra.mxu0 %v2408_v13 }
 0xdbb   : > { %v5378_v60 = vpop.eup %4184 }
 0xdbc   : > { %v2351_v19 = vsel %vm817_vm7, %v5378_v60, 0.0 }
 0xdbd   : > { %2352 = vadd.xlane.f32.xlu1 %v2351_v19 }
 0xdc1   : > { %2274 = vmax.xlane.f32.xlu0 %v2273_v18 }
 0xdc5   : > { %2280 = vmax.xlane.f32.xlu0 %v2279_v21 }
 0xdc9   : > { %2283 = vmax.xlane.f32.xlu0 %v2282_v7 }
 0xdce   : > { %2403 = vrot.lane.b32.xlu1 %v5209_v43, %s4370_s7 }
 0xdf2   : > { %2277 = vmax.xlane.f32.xlu1 %v2276_v31 }
 0xdf6   : > { %2286 = vmax.xlane.f32.xlu1 %v2285_v30 }
 0xe03   : > { %v2338_v11 = vpop.xlane.xlu0 %2337 }
 0xe05   : > { %v2335_v43 = vpop.xlane.xlu1 %2334 }
 0xe06   : > { %4186 = vrcp.f32 %v2335_v43 }
 0xe07   : > { %4188 = vrcp.f32 %v2338_v11 }
 0xe09   : > { %v2341_v38 = vpop.xlane.xlu1 %2340 }
 0xe0a   : > { %4190 = vrcp.f32 %v2341_v38 }
 0xe0d   : > { %v2344_v37 = vpop.xlane.xlu0 %2343 }
 0xe0e   : > { %v2347_v49 = vpop.xlane.xlu1 %2346  ;;  %4192 = vrcp.f32 %v2344_v37 }
 0xe0f   : > { %4194 = vrcp.f32 %v2347_v49 }
 0xe11   : > { %v2350_v46 = vpop.xlane.xlu0 %2349 }
 0xe12   : > { %4196 = vrcp.f32 %v2350_v46 }
 0xe13   : > { %v4187_v55 = vpop.eup %4186 }
 0xe14   : > { %v2389_v22 = vmul.f32 %v4187_v55, %v5351_v44  ;;  %v4189_v39 = vpop.eup %4188 }
 0xe15   : > { %v2356_v2 = vpop.xlane.xlu0 %2355  ;;  %v2390_v20 = vmul.f32 %v4189_v39, %v5347_v28 }
 0xe16   : > { %3907 = vmatprep.mubr.msk.f32.mxu0 %vm817_vm7, %v2389_v22  ;;  %4198 = vrcp.f32 %v2356_v2 }
 0xe17   : > { %v4191_v52 = vpop.eup %4190 }
 0xe18   : > { %v2391_v47 = vmul.f32 %v4191_v52, %v5355_v3 }
 0xe19   : > { %v2406_v45 = vpop.permute.xlu0 %2405 }
 0xe1a   : > { %3903 = vmatprep.subr.mxu0 %v2406_v45 }
 0xe1b   : > { %3904 = vmatpush3.msra.mxu0 %v2406_v45  ;;  %v4193_v36 = vpop.eup %4192 }
 0xe1c   : > { %v4195_v27 = vpop.eup %4194  ;;  %v2392_v57 = vmul.f32 %v4193_v36, %v5359_v58 }
 0xe1d   : > { %v2393_v28 = vmul.f32 %v4195_v27, %v5361_v5 }
 0xe1f   : > { %v4197_v4 = vpop.eup %4196 }
 0xe20   : > { %v2394_v3 = vmul.f32 %v4197_v4, %v5367_v1 }
 0xe23   : > { %v4199_v50 = vpop.eup %4198 }
 0xe24   : > { %v2396_v59 = vmul.f32 %v4199_v50, %v5371_v15 }
 0xe46   : > { %v2353_v42 = vpop.xlane.xlu1 %2352 }
 0xe47   : > { %4200 = vrcp.f32 %v2353_v42 }
 0xe4a   : > { %v2404_v56 = vpop.permute.xlu1 %2403  ;;  %v2275_v44 = vpop.xlane.xlu0 %2274 }
 0xe4b   : > { %v2299_v62 = vsub.f32 %v2243_v25, %v2275_v44  ;;  %3905 = vmatprep.subr.mxu0 %v2404_v56 }
 0xe4c   : > { %3906 = vmatpush3.msra.mxu0 %v2404_v56 }
 0xe4d   : > { %v2321_v29 = vmul.f32 1.442695, %v2299_v62  ;;  %3908 = vmatmul.mubr.msk.f32.vlgmr.msra.gmra.mxu0 %vm817_vm7, %v2390_v20  ;;  %3951 = vmatprep.subr.mxu0 %v4367_v0 }
 0xe4e   : > { %3910 = vmatprep.mubr.msk.f32.mxu0 %vm817_vm7, %v2391_v47  ;;  %v2281_v15 = vpop.xlane.xlu0 %2280 }
 0xe4f   : > { %4202 = vpow2.f32 %v2321_v29  ;;  %v2301_v23 = vsub.f32 %v5387_v61, %v2281_v15 }
 0xe51   : > { %3911 = vmatmul.mubr.msk.f32.gmra.mxu0 %vm817_vm7, %v2392_v57  ;;  %v2325_v34 = vmul.f32 1.442695, %v2301_v23  ;;  %v5469_v23 = vld [vmem:[#allocation2 + $0xaa] ss:$0 sm:$0xff] }
 0xe52   : > { %3913 = vmatprep.mubr.msk.f32.mxu0 %vm817_vm7, %v2393_v28  ;;  %v2284_v39 = vpop.xlane.xlu0 %2283 }
 0xe53   : > { %v2302_v52 = vsub.f32 %v5393_v41, %v2284_v39 }
 0xe54   : > { %v4201_v10 = vpop.eup %4200 }
 0xe55   : > { %3914 = vmatmul.mubr.msk.f32.gmra.mxu0 %vm817_vm7, %v2394_v3  ;;  %v2395_v53 = vmul.f32 %v4201_v10, %v5378_v60 }
 0xe57   : > { %3916 = vmatprep.mubr.msk.f32.mxu0 %vm817_vm7, %v2395_v53 }
 0xe59   : > { %3917 = vmatmul.mubr.msk.f32.gmra.mxu0 %vm817_vm7, %v2396_v59 }
 0xe5c   : > { %v4203_v58 = vpop.eup %4202 }
 0xe5d   : > { %v2357_v5 = vsel %vm817_vm7, %v4203_v58, 0.0 }
 0xe5e   : > { %2358 = vadd.xlane.f32.xlu1 %v2357_v5  ;;  %v1764_v5 = vld [vmem:[#allocation2 + $0xc0] sm:$0xff] }
 0xe5f   : > { %3929 = vmatpush3.msra.mxu1 %v1764_v5 }
 0xe60   : > { %3980 = vmatprep.subr.mxu1 %v4367_v0 }
 0xe7b   : > { %v2278_v12 = vpop.xlane.xlu1 %2277 }
 0xe7c   : > { %v2300_v60 = vsub.f32 %v5403_v63, %v2278_v12 }
 0xe7e   : > { %v2323_v18 = vmul.f32 1.442695, %v2300_v60 }
 0xe7f   : > { %v2287_v13 = vpop.xlane.xlu1 %2286 }
 0xe80   : > { %v2303_v31 = vsub.f32 %v5409_v35, %v2287_v13  ;;  %v2248_v35 = vsel %vm178_vm6, %v5399_v16, -1e+30  ;;  %v2327_v16 = vmul.f32 1.442695, %v2302_v52  ;;  %vm3191_vm6 = vcmask 1043456  }
 0xe81   : > { %v2288_v22 = vsel %vm817_vm7, %v2248_v35, -inf }
 0xe82   : > { %v2329_v61 = vmul.f32 1.442695, %v2303_v31 }
 0xee7   : > { %v2359_v32 = vpop.xlane.xlu1 %2358 }
 0xee8   : > { %4204 = vrcp.f32 %v2359_v32 }
 0xee9   : > { %4206 = vpow2.f32 %v2323_v18 }
 0xeea   : > { %4208 = vpow2.f32 %v2325_v34 }
 0xeeb   : > { %4210 = vpow2.f32 %v2329_v61 }
 0xeec   : > { %4212 = vpow2.f32 %v2327_v16 }
 0xef5   : > { %v4205_v1 = vpop.eup %4204 }
 0xef6   : > { %v2397_v9 = vmul.f32 %v4205_v1, %v4203_v58  ;;  %v4207_v2 = vpop.eup %4206 }
 0xef7   : > { %v2360_v45 = vsel %vm817_vm7, %v4207_v2, 0.0  ;;  %v4209_v38 = vpop.eup %4208 }
 0xef8   : > { %3919 = vmatprep.mubr.msk.f32.mxu0 %vm817_vm7, %v2397_v9  ;;  %v4211_v49 = vpop.eup %4210 }
 0xef9   : > { %v2369_v42 = vsel %vm817_vm7, %v4211_v49, 0.0  ;;  %v4213_v57 = vpop.eup %4212 }
 0xefa   : > { %v2366_v28 = vsel %vm817_vm7, %v4213_v57, 0.0 }
 0xf0d   : > { %v5432_v14 = vpop.f32.mrf.mxu0 }
 0xf0f   : > { %v2532_v19 = vpop.f32.mrf.mxu0 }
 0xf10   : > { %v2601_v63 = vsel %vm173_vm2, %v2532_v19, 0.0 }
 0xf11   : > { %v5435_v25 = vpop.f32.mrf.mxu0 }
 0xf13   : > { %v5438_v21 = vpop.f32.mrf.mxu0 }
 0xf15   : > { %v5440_v7 = vpop.f32.mrf.mxu0 }
 0xf17   : > { %v5443_v30 = vpop.f32.mrf.mxu0 }
 0xf19   : > { %v3918_v43 = vpop.f32.mrf.mxu0 }
 0xf1a   : > { %v2608_v11 = vsel %vm4656_vm5, %v3918_v43, 0.0  ;;  %v5471_v43 = vld [vmem:[#allocation2 + $0xab] ss:$0 sm:$0xff] }
 0xf1b   : > { %v2615_v37 = vadd.f32 %v2608_v11, %v2601_v63 }
 0xf1d   : > { %v5450_v46 = vadd.f32 %v2615_v37, %v5112_v33  ;;  %v2363_v33 = vsel %vm817_vm7, %v4209_v38, 0.0 }
 0xf1f   : > { %v2629_v55 = vsel %vm190_vm1, %v5450_v46, 0.0 }
 0xf20   : > { %2630 = vadd.xlane.f32.xlu0 %v2629_v55 }
 0xf24   : > { %2289 = vmax.xlane.f32.xlu0 %v2288_v22 }
 0xf28   : > { %2361 = vadd.xlane.f32.xlu0 %v2360_v45 }
 0xf2c   : > { %2364 = vadd.xlane.f32.xlu0 %v2363_v33 }
 0xf30   : > { %2370 = vadd.xlane.f32.xlu0 %v2369_v42 }
 0xfa9   : > { %v2631_v56 = vpop.xlane.xlu0 %2630 }
 0xfaa   : > { %v2650_v44 = vmul.f32 0.125, %v2631_v56 }
 0xfac   : > { %v2657_v20 = vsub.f32 %v5450_v46, %v2650_v44  ;;  %v1769_v44 = vld [vmem:[#allocation2 + $0xe8] sm:$0xff] }
 0xfad   : > { %v2290_v62 = vpop.xlane.xlu0 %2289  ;;  %3952 = vmatpush3.msra.mxu0 %v1769_v44 }
 0xfae   : > { %v2304_v36 = vsub.f32 %v2248_v35, %v2290_v62  ;;  %v2664_v47 = vmul.f32 %v2657_v20, %v2657_v20  ;;  %v2562_v35 = vpop.f32.mrf.mxu0  ;;  %3953 = vmatprep.subr.mxu0 %v4367_v0  ;;  %v1766_v62 = vld [vmem:[#allocation2 + $0xd0] sm:$0xff] }
 0xfb0   : > { %v2331_v27 = vmul.f32 1.442695, %v2304_v36  ;;  %v2671_v29 = vsel %vm190_vm1, %v2664_v47, 0.0  ;;  %v5505_v47 = vld [vmem:[#allocation2 + $0xc8] ss:$0 sm:$0xff] }
 0xfb1   : > { %v2362_v4 = vpop.xlane.xlu0 %2361  ;;  %2672 = vadd.xlane.f32.xlu1 %v2671_v29 }
 0xfb2   : > { %4214 = vpow2.f32 %v2331_v27 }
 0xfb3   : > { %4216 = vrcp.f32 %v2362_v4 }
 0xfb5   : > { %v2365_v41 = vpop.xlane.xlu0 %2364  ;;  %2367 = vadd.xlane.f32.xlu1 %v2366_v28 }
 0xfb6   : > { %4218 = vrcp.f32 %v2365_v41 }
 0xfb9   : > { %v2371_v13 = vpop.xlane.xlu0 %2370 }
 0xfba   : > { %4220 = vrcp.f32 %v2371_v13 }
 0xfbf   : > { %v4215_v50 = vpop.eup %4214 }
 0xfc0   : > { %v4217_v3 = vpop.eup %4216  ;;  %v2372_v10 = vsel %vm817_vm7, %v4215_v50, 0.0 }
 0xfc1   : > { %2373 = vadd.xlane.f32.xlu1 %v2372_v10  ;;  %v2398_v53 = vmul.f32 %v4217_v3, %v4207_v2  ;;  %v2603_v2 = vsel %vm173_vm2, %v5438_v21, 0.0 }
 0xfc3   : > { %v4219_v59 = vpop.eup %4218  ;;  %3920 = vmatmul.mubr.msk.f32.gmra.mxu0 %vm817_vm7, %v2398_v53 }
 0xfc4   : > { %v2399_v58 = vmul.f32 %v4219_v59, %v4209_v38 }
 0xfc6   : > { %3922 = vmatprep.mubr.msk.f32.mxu0 %vm817_vm7, %v2399_v58 }
 0xfc7   : > { %v4221_v19 = vpop.eup %4220 }
 0xfc8   : > { %v2401_v11 = vmul.f32 %v4221_v19, %v4211_v49  ;;  %v2602_v49 = vsel %vm173_vm2, %v5432_v14, 0.0  ;;  %v1767_v14 = vld [vmem:[#allocation2 + $0xd8] sm:$0xff] }
0x103a   : > { %v2673_v12 = vpop.xlane.xlu1 %2672 }
0x103b   : > { %v2692_v32 = vmul.f32 0.125, %v2673_v12 }
0x103d   : > { %v2699_v1 = vadd.f32 1e-05, %v2692_v32 }
0x103e   : > { %v2368_v9 = vpop.xlane.xlu1 %2367 }
0x103f   : > { %4222 = vrsqrt.f32 %v2699_v1 }
0x1040   : > { %4224 = vrcp.f32 %v2368_v9 }
0x104a   : > { %v2374_v60 = vpop.xlane.xlu1 %2373 }
0x104b   : > { %4226 = vrcp.f32 %v2374_v60 }
0x104c   : > { %v4223_v15 = vpop.eup %4222 }
0x104d   : > { %v4225_v18 = vpop.eup %4224  ;;  %v2713_v34 = vmul.f32 %v4223_v15, %v2657_v20  ;;  %v1768_v20 = vld [vmem:[#allocation2 + $0xe0] sm:$0xff] }
0x104e   : > { %v2400_v31 = vmul.f32 %v4225_v18, %v4213_v57  ;;  %3954 = vmatpush3.msra.mxu0 %v1768_v20  ;;  %v2604_v57 = vsel %vm173_vm2, %v5435_v25, 0.0 }
0x104f   : > { %v2724_v63 = vmul.f32 %v5469_v23, %v2713_v34  ;;  %3955 = vmatprep.subr.mxu0 %v4367_v0  ;;  %v2606_v34 = vsel %vm173_vm2, %v5440_v7, 0.0 }
0x1050   : > { %3923 = vmatmul.mubr.msk.f32.gmra.mxu0 %vm817_vm7, %v2400_v31 }
0x1051   : > { %3925 = vmatprep.mubr.msk.f32.mxu0 %vm817_vm7, %v2401_v11  ;;  %v2735_v61 = vadd.f32 %v5471_v43, %v2724_v63  ;;  %3956 = vmatpush3.msra.mxu0 %v1767_v14 }
0x1052   : > { %3957 = vmatprep.subr.mxu0 %v4367_v0 }
0x1053   : > { %3931 = vmatmul.mubr.msk.f32.vlgmr.msra.gmra.mxu1 %vm190_vm1, %v2735_v61  ;;  %3958 = vmatpush3.msra.mxu0 %v1766_v62 }
0x1054   : > { %3933 = vmatprep.mubr.msk.f32.mxu1 %vm4368_vm0, %v4367_v0 }
0x1058   : > { %v4227_v37 = vpop.eup %4226 }
0x1059   : > { %v2402_v55 = vmul.f32 %v4227_v37, %v4215_v50 }
0x105b   : > { %3926 = vmatmul.mubr.msk.f32.gmra.mxu0 %vm817_vm7, %v2402_v55  ;;  %vm3193_vm7 = vcmask 1044480  }
0x105c   : > { %3959 = vmatprep.mubr.msk.f32.mxu0 %vm4368_vm0, %v4367_v0 }
0x1083   : > { %v3921_v22 = vpop.f32.mrf.mxu0 }
0x1084   : > { %v2610_v45 = vsel %vm4656_vm5, %v3921_v22, 0.0 }
0x1085   : > { %v2617_v38 = vadd.f32 %v2610_v45, %v2603_v2  ;;  %v2572_v33 = vpop.f32.mrf.mxu0 }
0x1086   : > { %v2609_v42 = vsel %vm4656_vm5, %v2572_v33, 0.0 }
0x1087   : > { %v2624_v39 = vadd.f32 %v2617_v38, %v5122_v17  ;;  %v2616_v52 = vadd.f32 %v2609_v42, %v2602_v49  ;;  %v2605_v17 = vsel %vm173_vm2, %v5443_v30, 0.0 }
0x1089   : > { %v2623_v16 = vadd.f32 %v2616_v52, %v5117_v40  ;;  %v2635_v56 = vsel %vm190_vm1, %v2624_v39, 0.0 }
0x108a   : > { %2636 = vadd.xlane.f32.xlu1 %v2635_v56 }
0x108b   : > { %v2632_v21 = vsel %vm190_vm1, %v2623_v16, 0.0 }
0x108c   : > { %2633 = vadd.xlane.f32.xlu0 %v2632_v21 }
0x1110   : > { %v3924_v40 = vpop.f32.mrf.mxu0 }
0x1111   : > { %v2612_v36 = vsel %vm4656_vm5, %v3924_v40, 0.0 }
0x1112   : > { %v2619_v27 = vadd.f32 %v2612_v36, %v2605_v17  ;;  %v2582_v29 = vpop.f32.mrf.mxu0 }
0x1113   : > { %v2611_v4 = vsel %vm4656_vm5, %v2582_v29, 0.0  ;;  %v2833_v28 = vpop.f32.mrf.mxu1  ;;  %v2637_v53 = vpop.xlane.xlu1 %2636 }
0x1114   : > { %v5513_v41 = vadd.f32 %v2619_v27, %v5132_v8  ;;  %v2618_v50 = vadd.f32 %v2611_v4, %v2604_v57  ;;  %v2834_v30 = vadd.f32 %v5505_v47, %v2833_v28  ;;  %v2652_v8 = vmul.f32 0.125, %v2637_v53 }
0x1115   : > { %v3932_v3 = vpop.f32.mrf.mxu1  ;;  %v2634_v5 = vpop.xlane.xlu0 %2633 }
0x1116   : > { %v5517_v10 = vadd.f32 %v2618_v50, %v5127_v48  ;;  %v2874_v59 = vmul.f32 0.70710677, %v2834_v30  ;;  %v2641_v58 = vsel %vm190_vm1, %v5513_v41, 0.0  ;;  %v2651_v32 = vmul.f32 0.125, %v2634_v5 }
0x1117   : > { %2642 = vadd.xlane.f32.xlu1 %v2641_v58  ;;  %v2607_v48 = vsel %vm173_vm2, %v2562_v35, 0.0  ;;  %v5527_v19 = vsub.f32 %v2624_v39, %v2652_v8  ;;  %v2867_v17 = vmul.f32 0.5, %v2834_v30 }
0x1118   : > { %v2895_v25 = vand.u32 2147483647, %v2874_v59  ;;  %v2638_v12 = vsel %vm190_vm1, %v5517_v10, 0.0  ;;  %v5534_v63 = vsub.f32 %v2623_v16, %v2651_v32  ;;  %vm2881_vm2 = vcmp.ge.f32.partialorder %v2874_v59, 0.0 }
0x1119   : > { %2639 = vadd.xlane.f32.xlu0 %v2638_v12  ;;  %v2666_v35 = vmul.f32 %v5527_v19, %v5527_v19  ;;  %v2888_v62 = vsel %vm2881_vm2, 1.0, %v4371_v54 }
0x111a   : > { %v2902_v13 = vmul.f32 0.3275911, %v2895_v25  ;;  %v2665_v7 = vmul.f32 %v5534_v63, %v5534_v63  ;;  %v2986_v6 = vsub.f32 0.0, %v2895_v25 }
0x111b   : > { %v3927_v1 = vpop.f32.mrf.mxu0  ;;  %v2677_v22 = vsel %vm190_vm1, %v2666_v35, 0.0 }
0x111c   : > { %v2909_v9 = vadd.f32 1.0, %v2902_v13  ;;  %v2614_v60 = vsel %vm4656_vm5, %v3927_v1, 0.0  ;;  %v2993_v2 = vmul.f32 %v2986_v6, %v2895_v25 }
0x111d   : > { %v2621_v15 = vadd.f32 %v2614_v60, %v2607_v48  ;;  %v2592_v18 = vpop.f32.mrf.mxu0 }
0x111e   : > { %4228 = vrcp.f32 %v2909_v9  ;;  %v2613_v31 = vsel %vm4656_vm5, %v2592_v18, 0.0  ;;  %v3000_v38 = vmul.f32 1.442695, %v2993_v2  ;;  %vm3189_vm5 = vcmask 1042432  }
0x111f   : > { %v2628_v11 = vadd.f32 %v2621_v15, %v5142_v51  ;;  %v2620_v61 = vadd.f32 %v2613_v31, %v2606_v34  ;;  %v2674_v51 = vsel %vm190_vm1, %v2665_v7, 0.0 }
0x1120   : > { %4230 = vpow2.f32 %v3000_v38 }
0x1121   : > { %v2627_v37 = vadd.f32 %v2620_v61, %v5137_v26  ;;  %v2647_v55 = vsel %vm190_vm1, %v2628_v11, 0.0 }
0x1122   : > { %2648 = vadd.xlane.f32.xlu1 %v2647_v55 }
0x1123   : > { %v2644_v24 = vsel %vm190_vm1, %v2627_v37, 0.0 }
0x1124   : > { %2645 = vadd.xlane.f32.xlu0 %v2644_v24 }
0x1126   : > { %2678 = vadd.xlane.f32.xlu1 %v2677_v22 }
0x1128   : > { %2675 = vadd.xlane.f32.xlu0 %v2674_v51 }
0x112b   : > { %v4229_v26 = vpop.eup %4228 }
0x112c   : > { %v2923_v45 = vmul.f32 1.0614054, %v4229_v26 }
0x112d   : > { %v4231_v44 = vpop.eup %4230 }
0x112e   : > { %v2930_v33 = vadd.f32 -1.4531521, %v2923_v45 }
0x1130   : > { %v2937_v49 = vmul.f32 %v4229_v26, %v2930_v33 }
0x1132   : > { %v2944_v42 = vadd.f32 1.4214138, %v2937_v49 }
0x1134   : > { %v2951_v39 = vmul.f32 %v4229_v26, %v2944_v42 }
0x1136   : > { %v2958_v52 = vadd.f32 -0.28449672, %v2951_v39 }
0x1138   : > { %v2965_v16 = vmul.f32 %v4229_v26, %v2958_v52 }
0x113a   : > { %v2972_v56 = vadd.f32 0.2548296, %v2965_v16 }
0x113c   : > { %v2979_v21 = vmul.f32 %v4229_v26, %v2972_v56 }
0x113e   : > { %v3014_v20 = vmul.f32 %v4231_v44, %v2979_v21  ;;  %v3512_v21 = vld [vmem:[#allocation2 + $0xf0] ss:$0 sm:$0xff] }
0x1140   : > { %v3021_v14 = vsub.f32 1.0, %v3014_v20 }
0x1142   : > { %v3028_v40 = vmul.f32 %v3021_v14, %v2888_v62 }
0x1144   : > { %v3035_v36 = vadd.f32 1.0, %v3028_v40 }
0x1146   : > { %v3042_v27 = vmul.f32 %v3035_v36, %v2867_v17 }
0x1148   : > { %3960 = vmatmul.mubr.msk.f32.vlgmr.msra.gmra.mxu0 %vm1618_vm10, %v3042_v27 }
0x1149   : > { %3962 = vmatprep.mubr.msk.f32.mxu0 %vm4368_vm0, %v4367_v0 }
0x11a0   : > { %v2643_v29 = vpop.xlane.xlu1 %2642 }
0x11a1   : > { %v2654_v57 = vmul.f32 0.125, %v2643_v29 }
0x11a2   : > { %v2640_v4 = vpop.xlane.xlu0 %2639 }
0x11a3   : > { %v2653_v28 = vmul.f32 0.125, %v2640_v4  ;;  %v5551_v50 = vsub.f32 %v5513_v41, %v2654_v57 }
0x11a5   : > { %v5554_v3 = vsub.f32 %v5517_v10, %v2653_v28  ;;  %v2668_v30 = vmul.f32 %v5551_v50, %v5551_v50 }
0x11a7   : > { %v2667_v53 = vmul.f32 %v5554_v3, %v5554_v3  ;;  %v2683_v59 = vsel %vm190_vm1, %v2668_v30, 0.0 }
0x11a8   : > { %2684 = vadd.xlane.f32.xlu1 %v2683_v59 }
0x11a9   : > { %v2680_v58 = vsel %vm190_vm1, %v2667_v53, 0.0 }
0x11aa   : > { %2681 = vadd.xlane.f32.xlu0 %v2680_v58 }
0x11ab   : > { %v2649_v25 = vpop.xlane.xlu1 %2648 }
0x11ac   : > { %v2656_v5 = vmul.f32 0.125, %v2649_v25 }
0x11ad   : > { %v2646_v12 = vpop.xlane.xlu0 %2645 }
0x11ae   : > { %v5562_v41 = vsub.f32 %v2628_v11, %v2656_v5  ;;  %v2655_v8 = vmul.f32 0.125, %v2646_v12 }
0x11af   : > { %v2679_v10 = vpop.xlane.xlu1 %2678 }
0x11b0   : > { %v5564_v13 = vsub.f32 %v2627_v37, %v2655_v8  ;;  %v2694_v32 = vmul.f32 0.125, %v2679_v10  ;;  %v2670_v1 = vmul.f32 %v5562_v41, %v5562_v41  ;;  %v168_v37 = vld [vmem:[#allocation2 + $0x48] sm:$0xff] }
0x11b1   : > { %v2676_v48 = vpop.xlane.xlu0 %2675  ;;  %3981 = vmatpush3.msra.mxu1 %v168_v37 }
0x11b2   : > { %v2701_v9 = vadd.f32 1e-05, %v2694_v32  ;;  %v2693_v60 = vmul.f32 0.125, %v2676_v48  ;;  %v2689_v15 = vsel %vm190_vm1, %v2670_v1, 0.0  ;;  %v2669_v18 = vmul.f32 %v5564_v13, %v5564_v13 }
0x11b3   : > { %2690 = vadd.xlane.f32.xlu1 %v2689_v15 }
0x11b4   : > { %4232 = vrsqrt.f32 %v2701_v9  ;;  %v2700_v34 = vadd.f32 1e-05, %v2693_v60  ;;  %v2686_v31 = vsel %vm190_vm1, %v2669_v18, 0.0 }
0x11b5   : > { %2687 = vadd.xlane.f32.xlu0 %v2686_v31 }
0x11b6   : > { %4234 = vrsqrt.f32 %v2700_v34 }
0x11c1   : > { %v4233_v11 = vpop.eup %4232 }
0x11c2   : > { %v2715_v35 = vmul.f32 %v4233_v11, %v5527_v19 }
0x11c3   : > { %v4235_v61 = vpop.eup %4234 }
0x11c4   : > { %v2714_v55 = vmul.f32 %v4235_v61, %v5534_v63  ;;  %v2726_v6 = vmul.f32 %v5469_v23, %v2715_v35 }
0x11c6   : > { %v2725_v24 = vmul.f32 %v5469_v23, %v2714_v55  ;;  %v2737_v22 = vadd.f32 %v5471_v43, %v2726_v6 }
0x11c8   : > { %v2736_v7 = vadd.f32 %v5471_v43, %v2725_v24 }
0x11ca   : > { %3934 = vmatmul.mubr.msk.f32.gmra.mxu1 %vm190_vm1, %v2736_v7 }
0x11cb   : > { %3936 = vmatprep.mubr.msk.f32.mxu1 %vm4368_vm0, %v4367_v0 }
0x11ce   : > { %3937 = vmatmul.mubr.msk.f32.gmra.mxu1 %vm190_vm1, %v2737_v22 }
0x11cf   : > { %3939 = vmatprep.mubr.msk.f32.mxu1 %vm4368_vm0, %v4367_v0 }
0x1208   : > { %v3136_v19 = vpop.f32.mrf.mxu0 }
0x1209   : > { %v3164_v56 = vadd.f32 %v3136_v19, %v5450_v46 }
0x120a   : > { %v3961_v63 = vpop.f32.mrf.mxu0 }
0x120b   : > { %v3169_v14 = vadd.f32 %v3512_v21, %v3164_v56 }
0x120d   : > { %v3171_v27 = vrot.slane %v3169_v14, 7  ;;  %v3173_v46 = vrot.slane %v3169_v14, 6  ;;  %v3175_v53 = vrot.slane %v3169_v14, 5  ;;  %v3177_v12 = vrot.slane %v3169_v14, 4 }
0x120e   : > { %v3179_v1 = vrot.slane %v3169_v14, 3  ;;  %v3181_v48 = vrot.slane %v3169_v14, 2 }
0x120f   : > { %v3186_v4 = vsel %vm3185_vm3, %v3169_v14, %v3171_v27 }
0x1231   : > { %v2685_v51 = vpop.xlane.xlu1 %2684 }
0x1232   : > { %v2696_v2 = vmul.f32 0.125, %v2685_v51 }
0x1233   : > { %v2682_v26 = vpop.xlane.xlu0 %2681 }
0x1234   : > { %v2695_v45 = vmul.f32 0.125, %v2682_v26  ;;  %v2703_v38 = vadd.f32 1e-05, %v2696_v2 }
0x1236   : > { %v2702_v33 = vadd.f32 1e-05, %v2695_v45  ;;  %4236 = vrsqrt.f32 %v2703_v38 }
0x1238   : > { %4238 = vrsqrt.f32 %v2702_v33 }
0x123c   : > { %v2691_v49 = vpop.xlane.xlu1 %2690 }
0x123d   : > { %v2698_v42 = vmul.f32 0.125, %v2691_v49 }
0x123e   : > { %v2688_v39 = vpop.xlane.xlu0 %2687 }
0x123f   : > { %v2705_v52 = vadd.f32 1e-05, %v2698_v42  ;;  %v2697_v16 = vmul.f32 0.125, %v2688_v39 }
0x1241   : > { %4240 = vrsqrt.f32 %v2705_v52  ;;  %v2704_v44 = vadd.f32 1e-05, %v2697_v16 }
0x1243   : > { %4242 = vrsqrt.f32 %v2704_v44  ;;  %v4237_v20 = vpop.eup %4236 }
0x1244   : > { %v2717_v17 = vmul.f32 %v4237_v20, %v5551_v50  ;;  %v3188_v50 = vsel %vm3187_vm4, %v3186_v4, %v3173_v46 }
0x1245   : > { %v4239_v62 = vpop.eup %4238  ;;  %v3190_v25 = vsel %vm3189_vm5, %v3188_v50, %v3175_v53 }
0x1246   : > { %v2716_v40 = vmul.f32 %v4239_v62, %v5554_v3  ;;  %v2728_v57 = vmul.f32 %v5469_v23, %v2717_v17  ;;  %v3192_v32 = vsel %vm3191_vm6, %v3190_v25, %v3177_v12 }
0x1248   : > { %v2727_v36 = vmul.f32 %v5469_v23, %v2716_v40  ;;  %v2739_v3 = vadd.f32 %v5471_v43, %v2728_v57 }
0x124a   : > { %v2738_v29 = vadd.f32 %v5471_v43, %v2727_v36 }
0x124c   : > { %3940 = vmatmul.mubr.msk.f32.gmra.mxu1 %vm190_vm1, %v2738_v29 }
0x124d   : > { %3942 = vmatprep.mubr.msk.f32.mxu1 %vm4368_vm0, %v4367_v0 }
0x124e   : > { %v4241_v28 = vpop.eup %4240 }
0x124f   : > { %v2719_v58 = vmul.f32 %v4241_v28, %v5562_v41 }
0x1250   : > { %v4243_v30 = vpop.eup %4242  ;;  %3943 = vmatmul.mubr.msk.f32.gmra.mxu1 %vm190_vm1, %v2739_v3 }
0x1251   : > { %3945 = vmatprep.mubr.msk.f32.mxu1 %vm4368_vm0, %v4367_v0  ;;  %v2718_v59 = vmul.f32 %v4243_v30, %v5564_v13  ;;  %v2730_v10 = vmul.f32 %v5469_v23, %v2719_v58  ;;  %v3194_v13 = vsel %vm3193_vm7, %v3192_v32, %v3179_v1 }
0x1252   : > { %v3196_v9 = vsel %vm3195_vm8, %v3194_v13, %v3181_v48 }
0x1253   : > { %v2729_v5 = vmul.f32 %v5469_v23, %v2718_v59  ;;  %v2741_v41 = vadd.f32 %v5471_v43, %v2730_v10  ;;  %v3183_v23 = vrot.slane %v3169_v14, 1 }
0x1255   : > { %v2740_v8 = vadd.f32 %v5471_v43, %v2729_v5  ;;  %v3198_v60 = vsel %vm3197_vm9, %v3196_v9, %v3183_v23 }
0x1257   : > { %3946 = vmatmul.mubr.msk.f32.gmra.mxu1 %vm190_vm1, %v2740_v8 }
0x1258   : > { %3948 = vmatprep.mubr.msk.f32.mxu1 %vm4368_vm0, %v4367_v0 }
0x125b   : > { %3949 = vmatmul.mubr.msk.f32.gmra.mxu1 %vm190_vm1, %v2741_v41 }
0x125c   : > { %3982 = vmatprep.mubr.msk.f32.mxu1 %vm4368_vm0, %v4367_v0 }
0x125f   : > { %3983 = vmatmul.mubr.msk.f32.vlgmr.msra.gmra.mxu1 %vm190_vm1, %v3198_v60 }
0x128a   : > { %v2838_v15 = vpop.f32.mrf.mxu1 }
0x128b   : > { %v2839_v18 = vadd.f32 %v5505_v47, %v2838_v15 }
0x128c   : > { %v3935_v34 = vpop.f32.mrf.mxu1 }
0x128d   : > { %v2875_v31 = vmul.f32 0.70710677, %v2839_v18  ;;  %v2868_v58 = vmul.f32 0.5, %v2839_v18 }
0x128e   : > { %v2843_v11 = vpop.f32.mrf.mxu1 }
0x128f   : > { %v2896_v61 = vand.u32 2147483647, %v2875_v31  ;;  %v2844_v43 = vadd.f32 %v5505_v47, %v2843_v11  ;;  %vm2882_vm1 = vcmp.ge.f32.partialorder %v2875_v31, 0.0 }
0x1290   : > { %v3938_v37 = vpop.f32.mrf.mxu1  ;;  %v2889_v30 = vsel %vm2882_vm1, 1.0, %v4371_v54 }
0x1291   : > { %v2903_v55 = vmul.f32 0.3275911, %v2896_v61  ;;  %v2876_v35 = vmul.f32 0.70710677, %v2844_v43  ;;  %v2987_v19 = vsub.f32 0.0, %v2896_v61  ;;  %v2869_v32 = vmul.f32 0.5, %v2844_v43 }
0x1293   : > { %v2910_v24 = vadd.f32 1.0, %v2903_v55  ;;  %v2897_v7 = vand.u32 2147483647, %v2876_v35  ;;  %v2994_v63 = vmul.f32 %v2987_v19, %v2896_v61  ;;  %vm2883_vm11 = vcmp.ge.f32.partialorder %v2876_v35, 0.0 }
0x1294   : > { %v2890_v12 = vsel %vm2883_vm11, 1.0, %v4371_v54 }
0x1295   : > { %4244 = vrcp.f32 %v2910_v24  ;;  %v2904_v6 = vmul.f32 0.3275911, %v2897_v7  ;;  %v2988_v51 = vsub.f32 0.0, %v2897_v7  ;;  %v3002_v45 = vmul.f32 1.442695, %v2994_v63 }
0x1297   : > { %v2911_v22 = vadd.f32 1.0, %v2904_v6  ;;  %v2995_v38 = vmul.f32 %v2988_v51, %v2897_v7 }
0x1299   : > { %4246 = vrcp.f32 %v2911_v22  ;;  %v3004_v52 = vmul.f32 1.442695, %v2995_v38  ;;  %v3513_v38 = vld [vmem:[#allocation2 + $0x50] ss:$0 sm:$0xff] }
0x129a   : > { %4248 = vpow2.f32 %v3002_v45 }
0x129b   : > { %4250 = vpow2.f32 %v3004_v52 }
0x12a2   : > { %v4245_v2 = vpop.eup %4244 }
0x12a3   : > { %v2924_v26 = vmul.f32 1.0614054, %v4245_v2 }
0x12a5   : > { %v2931_v33 = vadd.f32 -1.4531521, %v2924_v26 }
0x12a6   : > { %v4247_v49 = vpop.eup %4246 }
0x12a7   : > { %v2938_v42 = vmul.f32 %v4245_v2, %v2931_v33  ;;  %v2925_v39 = vmul.f32 1.0614054, %v4247_v49  ;;  %v4249_v57 = vpop.eup %4248 }
0x12a8   : > { %v4251_v50 = vpop.eup %4250 }
0x12a9   : > { %v2945_v16 = vadd.f32 1.4214138, %v2938_v42  ;;  %v2932_v56 = vadd.f32 -1.4531521, %v2925_v39 }
0x12ab   : > { %v2952_v21 = vmul.f32 %v4245_v2, %v2945_v16  ;;  %v2939_v44 = vmul.f32 %v4247_v49, %v2932_v56 }
0x12ad   : > { %v2959_v20 = vadd.f32 -0.28449672, %v2952_v21  ;;  %v2946_v14 = vadd.f32 1.4214138, %v2939_v44 }
0x12af   : > { %v2966_v62 = vmul.f32 %v4245_v2, %v2959_v20  ;;  %v2953_v40 = vmul.f32 %v4247_v49, %v2946_v14 }
0x12b1   : > { %v2973_v17 = vadd.f32 0.2548296, %v2966_v62  ;;  %v2960_v36 = vadd.f32 -0.28449672, %v2953_v40 }
0x12b3   : > { %v2980_v27 = vmul.f32 %v4245_v2, %v2973_v17  ;;  %v2967_v29 = vmul.f32 %v4247_v49, %v2960_v36 }
0x12b5   : > { %v3015_v46 = vmul.f32 %v4249_v57, %v2980_v27  ;;  %v2974_v4 = vadd.f32 0.2548296, %v2967_v29 }
0x12b7   : > { %v3022_v28 = vsub.f32 1.0, %v3015_v46  ;;  %v2981_v3 = vmul.f32 %v4247_v49, %v2974_v4 }
0x12b9   : > { %v3029_v53 = vmul.f32 %v3022_v28, %v2889_v30  ;;  %v3016_v59 = vmul.f32 %v4251_v50, %v2981_v3 }
0x12bb   : > { %v3036_v25 = vadd.f32 1.0, %v3029_v53  ;;  %v3023_v5 = vsub.f32 1.0, %v3016_v59 }
0x12bd   : > { %v3043_v8 = vmul.f32 %v3036_v25, %v2868_v58  ;;  %v3030_v10 = vmul.f32 %v3023_v5, %v2890_v12 }
0x12bf   : > { %v3037_v1 = vadd.f32 1.0, %v3030_v10  ;;  %3963 = vmatmul.mubr.msk.f32.gmra.mxu0 %vm1618_vm10, %v3043_v8 }
0x12c0   : > { %3965 = vmatprep.mubr.msk.f32.mxu0 %vm4368_vm0, %v4367_v0 }
0x12c1   : > { %v3044_v13 = vmul.f32 %v3037_v1, %v2869_v32 }
0x12c3   : > { %3966 = vmatmul.mubr.msk.f32.gmra.mxu0 %vm1618_vm10, %v3044_v13 }
0x12c4   : > { %3968 = vmatprep.mubr.msk.f32.mxu0 %vm4368_vm0, %v4367_v0 }
0x130c   : > { %v2848_v41 = vpop.f32.mrf.mxu1 }
0x130d   : > { %v5621_v48 = vadd.f32 %v5505_v47, %v2848_v41 }
0x130e   : > { %v3941_v9 = vpop.f32.mrf.mxu1 }
0x130f   : > { %v5624_v23 = vmul.f32 0.70710677, %v5621_v48 }
0x1310   : > { %v2853_v60 = vpop.f32.mrf.mxu1 }
0x1311   : > { %v2898_v15 = vand.u32 2147483647, %v5624_v23  ;;  %v5628_v18 = vadd.f32 %v5505_v47, %v2853_v60  ;;  %vm2884_vm12 = vcmp.ge.f32.partialorder %v5624_v23, 0.0  ;;  %v2870_v23 = vmul.f32 0.5, %v5621_v48 }
0x1312   : > { %v3944_v34 = vpop.f32.mrf.mxu1 }
0x1313   : > { %v2905_v31 = vmul.f32 0.3275911, %v2898_v15  ;;  %v5631_v11 = vmul.f32 0.70710677, %v5628_v18  ;;  %v2989_v51 = vsub.f32 0.0, %v2898_v15 }
0x1315   : > { %v2912_v61 = vadd.f32 1.0, %v2905_v31  ;;  %v2899_v43 = vand.u32 2147483647, %v5631_v11  ;;  %v2996_v39 = vmul.f32 %v2989_v51, %v2898_v15  ;;  %vm2885_vm13 = vcmp.ge.f32.partialorder %v5631_v11, 0.0 }
0x1317   : > { %4252 = vrcp.f32 %v2912_v61  ;;  %v2906_v37 = vmul.f32 0.3275911, %v2899_v43  ;;  %v2858_v55 = vpop.f32.mrf.mxu1  ;;  %v2990_v52 = vsub.f32 0.0, %v2899_v43  ;;  %v3006_v14 = vmul.f32 1.442695, %v2996_v39 }
0x1318   : > { %v5635_v35 = vadd.f32 %v5505_v47, %v2858_v55 }
0x1319   : > { %v2913_v24 = vadd.f32 1.0, %v2906_v37  ;;  %v3947_v7 = vpop.f32.mrf.mxu1  ;;  %v2997_v62 = vmul.f32 %v2990_v52, %v2899_v43 }
0x131a   : > { %v5638_v6 = vmul.f32 0.70710677, %v5635_v35 }
0x131b   : > { %4254 = vrcp.f32 %v2913_v24  ;;  %v2863_v22 = vpop.f32.mrf.mxu1  ;;  %v3008_v57 = vmul.f32 1.442695, %v2997_v62 }
0x131c   : > { %v2900_v19 = vand.u32 2147483647, %v5638_v6  ;;  %v5642_v63 = vadd.f32 %v5505_v47, %v2863_v22  ;;  %vm2886_vm14 = vcmp.ge.f32.partialorder %v5638_v6, 0.0  ;;  %v2872_v6 = vmul.f32 0.5, %v5635_v35 }
0x131d   : > { %v3950_v2 = vpop.f32.mrf.mxu1 }
0x131e   : > { %v2907_v26 = vmul.f32 0.3275911, %v2900_v19  ;;  %v5645_v45 = vmul.f32 0.70710677, %v5642_v63  ;;  %v2991_v36 = vsub.f32 0.0, %v2900_v19 }
0x131f   : > { %v3272_v33 = vpop.f32.mrf.mxu1 }
0x1320   : > { %v2914_v49 = vadd.f32 1.0, %v2907_v26  ;;  %v2901_v42 = vand.u32 2147483647, %v5645_v45  ;;  %v5648_v16 = vadd.f32 %v3513_v38, %v3272_v33  ;;  %v2998_v28 = vmul.f32 %v2991_v36, %v2900_v19 }
0x1321   : > { %v3984_v56 = vpop.f32.mrf.mxu1  ;;  %v2891_v26 = vsel %vm2884_vm12, 1.0, %v4371_v54  ;;  %vm2887_vm15 = vcmp.ge.f32.partialorder %v5645_v45, 0.0 }
0x1322   : > { %4256 = vrcp.f32 %v2914_v49  ;;  %v2908_v21 = vmul.f32 0.3275911, %v2901_v42  ;;  %3276 = vmax.xlane.f32.xlu0 %v5648_v16  ;;  %v2992_v3 = vsub.f32 0.0, %v2901_v42  ;;  %v3010_v5 = vmul.f32 1.442695, %v2998_v28 }
0x1324   : > { %v4253_v47 = vpop.eup %4252  ;;  %v2915_v44 = vadd.f32 1.0, %v2908_v21  ;;  %v2999_v12 = vmul.f32 %v2992_v3, %v2901_v42  ;;  %v2893_v3 = vsel %vm2886_vm14, 1.0, %v4371_v54 }
0x1325   : > { %v2926_v20 = vmul.f32 1.0614054, %v4253_v47 }
0x1326   : > { %4258 = vrcp.f32 %v2915_v44  ;;  %v3012_v15 = vmul.f32 1.442695, %v2999_v12 }
0x1327   : > { %v2933_v40 = vadd.f32 -1.4531521, %v2926_v20  ;;  %4260 = vpow2.f32 %v3006_v14 }
0x1328   : > { %v4255_v17 = vpop.eup %4254  ;;  %4262 = vpow2.f32 %v3008_v57 }
0x1329   : > { %v2940_v27 = vmul.f32 %v4253_v47, %v2933_v40  ;;  %v2927_v29 = vmul.f32 1.0614054, %v4255_v17  ;;  %4264 = vpow2.f32 %v3010_v5  ;;  %v2873_v5 = vmul.f32 0.5, %v5642_v63 }
0x132a   : > { %4266 = vpow2.f32 %v3012_v15 }
0x132b   : > { %v2947_v46 = vadd.f32 1.4214138, %v2940_v27  ;;  %v2934_v4 = vadd.f32 -1.4531521, %v2927_v29  ;;  %v2871_v27 = vmul.f32 0.5, %v5628_v18 }
0x132d   : > { %v2954_v50 = vmul.f32 %v4253_v47, %v2947_v46  ;;  %v2941_v30 = vmul.f32 %v4255_v17, %v2934_v4 }
0x132f   : > { %v4257_v53 = vpop.eup %4256  ;;  %v2961_v59 = vadd.f32 -0.28449672, %v2954_v50  ;;  %v2948_v58 = vadd.f32 1.4214138, %v2941_v30 }
0x1330   : > { %v2928_v25 = vmul.f32 1.0614054, %v4257_v53 }
0x1331   : > { %v2968_v8 = vmul.f32 %v4253_v47, %v2961_v59  ;;  %v2955_v10 = vmul.f32 %v4255_v17, %v2948_v58  ;;  %v2894_v59 = vsel %vm2887_vm15, 1.0, %v4371_v54 }
0x1332   : > { %v2935_v32 = vadd.f32 -1.4531521, %v2928_v25 }
0x1333   : > { %v4259_v1 = vpop.eup %4258  ;;  %v2975_v13 = vadd.f32 0.2548296, %v2968_v8  ;;  %v2962_v41 = vadd.f32 -0.28449672, %v2955_v10 }
0x1334   : > { %v2942_v9 = vmul.f32 %v4257_v53, %v2935_v32  ;;  %v2929_v60 = vmul.f32 1.0614054, %v4259_v1  ;;  %v4261_v61 = vpop.eup %4260 }
0x1335   : > { %v2982_v34 = vmul.f32 %v4253_v47, %v2975_v13  ;;  %v2969_v31 = vmul.f32 %v4255_v17, %v2962_v41  ;;  %v4263_v2 = vpop.eup %4262  ;;  %v2892_v47 = vsel %vm2885_vm13, 1.0, %v4371_v54 }
0x1336   : > { %v2949_v43 = vadd.f32 1.4214138, %v2942_v9  ;;  %v2936_v37 = vadd.f32 -1.4531521, %v2929_v60  ;;  %v4265_v36 = vpop.eup %4264 }
0x1337   : > { %v3017_v55 = vmul.f32 %v4261_v61, %v2982_v34  ;;  %v2976_v24 = vadd.f32 0.2548296, %v2969_v31  ;;  %v4267_v28 = vpop.eup %4266 }
0x1338   : > { %v2956_v7 = vmul.f32 %v4257_v53, %v2949_v43  ;;  %v2943_v22 = vmul.f32 %v4259_v1, %v2936_v37 }
0x1339   : > { %v3024_v19 = vsub.f32 1.0, %v3017_v55  ;;  %v2983_v51 = vmul.f32 %v4255_v17, %v2976_v24 }
0x133a   : > { %v2963_v38 = vadd.f32 -0.28449672, %v2956_v7  ;;  %v2950_v33 = vadd.f32 1.4214138, %v2943_v22 }
0x133b   : > { %v3031_v49 = vmul.f32 %v3024_v19, %v2891_v26  ;;  %v3018_v42 = vmul.f32 %v4263_v2, %v2983_v51 }
0x133c   : > { %v2970_v39 = vmul.f32 %v4257_v53, %v2963_v38  ;;  %v2957_v52 = vmul.f32 %v4259_v1, %v2950_v33 }
0x133d   : > { %v3038_v56 = vadd.f32 1.0, %v3031_v49  ;;  %v3025_v21 = vsub.f32 1.0, %v3018_v42 }
0x133e   : > { %v2977_v44 = vadd.f32 0.2548296, %v2970_v39  ;;  %v2964_v20 = vadd.f32 -0.28449672, %v2957_v52 }
0x133f   : > { %v3045_v14 = vmul.f32 %v3038_v56, %v2870_v23  ;;  %v3032_v62 = vmul.f32 %v3025_v21, %v2892_v47 }
0x1340   : > { %v2984_v40 = vmul.f32 %v4257_v53, %v2977_v44  ;;  %v2971_v17 = vmul.f32 %v4259_v1, %v2964_v20 }
0x1341   : > { %v3039_v29 = vadd.f32 1.0, %v3032_v62  ;;  %3969 = vmatmul.mubr.msk.f32.gmra.mxu0 %vm1618_vm10, %v3045_v14 }
0x1342   : > { %v3019_v11 = vmul.f32 %v4265_v36, %v2984_v40  ;;  %v2978_v48 = vadd.f32 0.2548296, %v2971_v17  ;;  %3971 = vmatprep.mubr.msk.f32.mxu0 %vm4368_vm0, %v4367_v0 }
0x1343   : > { %v3046_v57 = vmul.f32 %v3039_v29, %v2871_v27 }
0x1344   : > { %v3026_v46 = vsub.f32 1.0, %v3019_v11  ;;  %v2985_v4 = vmul.f32 %v4259_v1, %v2978_v48 }
0x1345   : > { %3972 = vmatmul.mubr.msk.f32.gmra.mxu0 %vm1618_vm10, %v3046_v57 }
0x1346   : > { %v3033_v50 = vmul.f32 %v3026_v46, %v2893_v3  ;;  %v3020_v18 = vmul.f32 %v4267_v28, %v2985_v4  ;;  %3974 = vmatprep.mubr.msk.f32.mxu0 %vm4368_vm0, %v4367_v0 }
0x1348   : > { %v3040_v30 = vadd.f32 1.0, %v3033_v50  ;;  %v3027_v53 = vsub.f32 1.0, %v3020_v18 }
0x134a   : > { %v3047_v58 = vmul.f32 %v3040_v30, %v2872_v6  ;;  %v3034_v25 = vmul.f32 %v3027_v53, %v2894_v59 }
0x134c   : > { %v3041_v12 = vadd.f32 1.0, %v3034_v25  ;;  %3975 = vmatmul.mubr.msk.f32.gmra.mxu0 %vm1618_vm10, %v3047_v58 }
0x134d   : > { %3977 = vmatprep.mubr.msk.f32.mxu0 %vm4368_vm0, %v4367_v0 }
0x134e   : > { %v3048_v45 = vmul.f32 %v3041_v12, %v2873_v5 }
0x1350   : > { %3978 = vmatmul.mubr.msk.f32.gmra.mxu0 %vm1618_vm10, %v3048_v45 }
0x137f   : > { %v3141_v8 = vpop.f32.mrf.mxu0 }
0x1381   : > { %v3964_v10 = vpop.f32.mrf.mxu0 }
0x1383   : > { %v3145_v35 = vpop.f32.mrf.mxu0 }
0x1385   : > { %v3967_v32 = vpop.f32.mrf.mxu0 }
0x13ab   : > { %v3277_v1 = vpop.xlane.xlu0 %3276 }
0x13ac   : > { %v3278_v54 = vsub.f32 %v5648_v16, %v3277_v1 }
0x13ae   : > { %v3279_v13 = vmul.f32 1.442695, %v3278_v54 }
0x13b0   : > { %4268 = vpow2.f32 %v3279_v13 }
0x13bd   : > { %v4269_v63 = vpop.eup %4268 }
0x13be   : > { %3281 = vadd.xlane.f32.xlu1 %v4269_v63 }
0x1401   : > { %v3149_v41 = vpop.f32.mrf.mxu0 }
0x1403   : > { %v3970_v9 = vpop.f32.mrf.mxu0 }
0x1405   : > { %v3153_v60 = vpop.f32.mrf.mxu0 }
0x1407   : > { %v3973_v0 = vpop.f32.mrf.mxu0 }
0x140c   : > { %v3157_v15 = vpop.f32.mrf.mxu0 }
0x140e   : > { %v3976_v34 = vpop.f32.mrf.mxu0 }
0x1410   : > { %v3161_v31 = vpop.f32.mrf.mxu0 }
0x1412   : > { %v3979_v61 = vpop.f32.mrf.mxu0 }
0x1447   : > { %v3282_v43 = vpop.xlane.xlu1 %3281 }
0x1448   : > { %4270 = vrcp.f32 %v3282_v43 }
0x1455   : > { %v4271_v16 = vpop.eup %4270 }
0x1456   : > { %v3284_v37 = vmul.f32 %v4271_v16, %v4269_v63 }
0x1458   : > { %3285 = vst [vmem:[%s152_s17] sm:$0xff] %v3284_v37 }
0x1459   : > { %4311 = shalt.err (!%p4308_p0)
}
0x145a   : > { %s4312_s29 = scalar_lea.hbm %s3298_s24, 128  ;;  %s4316_s4 = scalar_lea.hbm %s5710_s2, 256 }
0x145b   : > { %p4313_p1 = scmp.ne.s32.totalorder %s3298_s24, %s4312_s29  ;;  %p4317_p4 = scmp.lt.s32.totalorder %s3298_s24, %s5710_s2 }
0x145c   : > { %p4318_p7 = scmp.lt.s32.totalorder %s4316_s4, %s4312_s29 }
0x145d   : > { %p4314_p2 = pnand %p4313_p1, %p4426_p5 }
0x145e   : > { %p4319_p6 = por %p4318_p7, %p4317_p4 }
0x145f   : > { %p4315_p3 = pneg %p4314_p2 }
0x1461   : > { %p4320_p8 = pnand %p4319_p6, %p4315_p3 }
0x1463   : > { %4323 = shalt.err (!%p4320_p8)
}
0x1464   : > { %3991 = dma.vmem_to_hbm [thread:$0]  (%p4426_p5), %s3301_s21, 128, %s3298_s24, %s3287_s25  }
0x1465 PF: > { %p4003_p9 = scmp.ge.s32.totalorder %s4362_s12, 2  ;;  %s3312_s7 = sand.u32 1, %s4350_s9  }
0x1466   : > { %p5716_p10 = scmp.ne.s32.totalorder %s5712_s20, 0  ;;  %s3313_s8 = scalar_lea.sflag [#allocation4], %s3312_s7 }
0x1468   : > { %p3998_p11 = pnand %p4003_p9, %p5716_p10 }
0x146a   : > { %p3999_p12 = pneg %p3998_p11 }
0x146c   : > { %4345 = dma.done.wait (%p3999_p12), %s3313_s8, 128  }
0x146d   : > { %4347 = vsyncadd (%p3999_p12), %s3313_s8, 4294967168  ;;  %p13_p13 = scmp.ge.s32.totalorder %s4413_s15, 4   ;;  %s5717_s9 = smov %s4354_s10 }
0x146e   : > { %s5718_s10 = smov %s4358_s11  ;;  %s5719_s11 = smov %s4424_s18 }
0x146f   : > { %s5720_s12 = smov %s4413_s15  ;;  %15 = sbr.rel (!%p13_p13) target bundleno = 4 (0x4), region = 68 }
0x1474   :  { %3318 = vsyncpa [#allocation3], 1 }
0x1475   :  { %3320 = vsyncpa [#allocation3 + $0x1], 1 }
0x1476   :  { %3321 = vsyncpa [#allocation4], 1 }
0x1477   :  { %3323 = vsyncpa [#allocation4 + $0x1], 1 }

</bundles_post_ra>
